<compile_context>
chip_gen: v7x
topology: tpu7x:2x2x1
jax: 0.10.0
libtpu: 0.0.40
codegen_flags: <defaults>
</compile_context>

<pallas_src>
import jax
import jax.numpy as jnp
from jax.experimental import pallas as pl
from jax.experimental.pallas import tpu as pltpu

EPS = 1e-5                 # torch.nn.BatchNorm2d default eps
LANE = 128
TM_MATMUL = 512            # M tile for matmul kernels (v7x-safe per review)
TK_MATMUL = 512            # K tile
TM_EPI = 1024              # M tile for the elementwise BN/ReLU epilogue
VMEM_LIMIT = 32 * 1024 * 1024


def _round_up(x, m):
    return (x + m - 1) // m * m


def _pick_tile(dim, max_tile, mult):
    """Largest tile <= max_tile that divides `dim` and is a multiple of `mult`.
    (The full dim is always a legal Pallas block extent.)"""
    if dim <= max_tile:
        return dim
    for t in range(max_tile, mult - 1, -1):
        if t % mult == 0 and dim % t == 0:
            return t
    return dim


# ------------------------- Pallas kernels -------------------------

def _gmm_stats_kernel(p_ref, w_ref, y_ref, stats_ref, acc_ref):
    """Grouped matmul (bf16 MXU, f32 accum) + per-tile per-channel sum/sumsq."""
    k = pl.program_id(2)

    @pl.when(k == 0)
    def _():
        acc_ref[...] = jnp.zeros_like(acc_ref)

    acc_ref[...] += jnp.dot(p_ref[...], w_ref[...],
                            preferred_element_type=jnp.float32)

    @pl.when(k == pl.num_programs(2) - 1)
    def _():
        y = acc_ref[...]
        y_ref[...] = y.astype(y_ref.dtype)
        s = jnp.sum(y, axis=0, keepdims=True)
        ss = jnp.sum(y * y, axis=0, keepdims=True)
        stats_ref[...] = jnp.concatenate([s, ss], axis=0)


def _gmm_tanh_kernel(p_ref, w_ref, y_ref, acc_ref):
    """Grouped matmul (bf16 MXU, f32 accum) with fused tanh epilogue."""
    k = pl.program_id(2)

    @pl.when(k == 0)
    def _():
        acc_ref[...] = jnp.zeros_like(acc_ref)

    acc_ref[...] += jnp.dot(p_ref[...], w_ref[...],
                            preferred_element_type=jnp.float32)

    @pl.when(k == pl.num_programs(2) - 1)
    def _():
        y_ref[...] = jnp.tanh(acc_ref[...]).astype(y_ref.dtype)


def _bn_relu_kernel(y_ref, scale_ref, shift_ref, o_ref):
    """BatchNorm pass 2: y*scale + shift, ReLU, bf16 out."""
    y = y_ref[...].astype(jnp.float32)
    o_ref[...] = jnp.maximum(y * scale_ref[...] + shift_ref[...],
                             0.0).astype(o_ref.dtype)


# ------------------------- pallas_call wrappers -------------------------

def _grouped_matmul(p, w, *, with_stats):
    """p: (G, M, K) bf16, w: (G, K, Cn) bf16 with Cn a multiple of 128.

    with_stats=True : returns (y=(G,M,Cn) bf16, stats=(2,Cn) f32) where
                      stats[0]=sum, stats[1]=sumsq reduced over all G*M rows.
    with_stats=False: returns y=(G,M,Cn) f32 with fused tanh."""
    G, M, K = p.shape
    Cn = w.shape[2]
    tm = _pick_tile(M, TM_MATMUL, 8)
    tk = _pick_tile(K, TK_MATMUL, 128)
    n_mt, n_kt = M // tm, K // tk
    grid = (G, n_mt, n_kt)

    in_specs = [
        pl.BlockSpec((None, tm, tk), lambda g, i, k: (g, i, k)),
        pl.BlockSpec((None, tk, Cn), lambda g, i, k: (g, k, 0)),
    ]
    cparams = pltpu.CompilerParams(
        dimension_semantics=("parallel", "parallel", "arbitrary"),
        vmem_limit_bytes=VMEM_LIMIT)
    flops = 2 * G * M * K * Cn

    if with_stats:
        y, partial = pl.pallas_call(
            _gmm_stats_kernel,
            out_shape=(jax.ShapeDtypeStruct((G, M, Cn), jnp.bfloat16),
                       jax.ShapeDtypeStruct((G * n_mt, 2, Cn), jnp.float32)),
            grid_spec=pltpu.PrefetchScalarGridSpec(
                num_scalar_prefetch=0,
                grid=grid,
                in_specs=in_specs,
                out_specs=[
                    pl.BlockSpec((None, tm, Cn), lambda g, i, k: (g, i, 0)),
                    pl.BlockSpec((None, 2, Cn),
                                 lambda g, i, k: (g * n_mt + i, 0, 0)),
                ],
                scratch_shapes=[pltpu.VMEM((tm, Cn), jnp.float32)]),
            compiler_params=cparams,
            cost_estimate=pl.CostEstimate(
                flops=flops, transcendentals=0,
                bytes_accessed=2 * (p.size + w.size + G * M * Cn)),
        )(p, w)
        stats = jnp.sum(partial, axis=0)                 # (2, Cn) f32, exact
        return y, stats

    y = pl.pallas_call(
        _gmm_tanh_kernel,
        out_shape=jax.ShapeDtypeStruct((G, M, Cn), jnp.float32),
        grid_spec=pltpu.PrefetchScalarGridSpec(
            num_scalar_prefetch=0,
            grid=grid,
            in_specs=in_specs,
            out_specs=pl.BlockSpec((None, tm, Cn), lambda g, i, k: (g, i, 0)),
            scratch_shapes=[pltpu.VMEM((tm, Cn), jnp.float32)]),
        compiler_params=cparams,
        cost_estimate=pl.CostEstimate(
            flops=flops, transcendentals=G * M * Cn,
            bytes_accessed=2 * (p.size + w.size) + 4 * G * M * Cn),
    )(p, w)
    return y


def _bn_scale_shift(stats, gamma, beta, cn, m_total):
    """Per-channel affine from batch sum/sumsq (biased variance, torch-style)."""
    cout = gamma.shape[0]
    g = jnp.pad(gamma.astype(jnp.float32), (0, cn - cout))
    b = jnp.pad(beta.astype(jnp.float32), (0, cn - cout))
    mean = stats[0] / m_total
    var = jnp.maximum(stats[1] / m_total - mean * mean, 0.0)
    inv = jax.lax.rsqrt(var + EPS)
    scale = g * inv
    shift = b - mean * scale
    return scale[None, :], shift[None, :]                 # (1, Cn) f32 each


def _bn_relu_apply(y, scale, shift):
    G, M, Cn = y.shape
    tm = _pick_tile(M, TM_EPI, 8)
    return pl.pallas_call(
        _bn_relu_kernel,
        out_shape=jax.ShapeDtypeStruct((G, M, Cn), jnp.bfloat16),
        grid_spec=pltpu.PrefetchScalarGridSpec(
            num_scalar_prefetch=0,
            grid=(G, M // tm),
            in_specs=[
                pl.BlockSpec((None, tm, Cn), lambda g, i: (g, i, 0)),
                pl.BlockSpec((1, Cn), lambda g, i: (0, 0)),
                pl.BlockSpec((1, Cn), lambda g, i: (0, 0)),
            ],
            out_specs=pl.BlockSpec((None, tm, Cn), lambda g, i: (g, i, 0))),
        compiler_params=pltpu.CompilerParams(
            dimension_semantics=("parallel", "parallel"),
            vmem_limit_bytes=VMEM_LIMIT),
    )(y, scale, shift)


# ------------------------- layers (glue = data movement only) -------------------------

def _first_layer(z, w, gamma, beta):
    """ConvTranspose2d(nz, C, 4, 1, 0) on a 1x1 input + BN + ReLU.
    16 independent (N, nz) x (nz, C) matmuls, one per output pixel."""
    n, nz = z.shape
    cout = w.shape[1]
    cn = _round_up(cout, LANE)
    wm = jnp.transpose(w, (2, 3, 0, 1)).reshape(16, nz, cout)   # (ky*4+kx, nz, C)
    wm = jnp.pad(wm, ((0, 0), (0, 0), (0, cn - cout))).astype(jnp.bfloat16)
    p = jnp.broadcast_to(z.astype(jnp.bfloat16)[None], (16, n, nz))
    y, stats = _grouped_matmul(p, wm, with_stats=True)
    scale, shift = _bn_scale_shift(stats, gamma, beta, cn, 16 * n)
    y = _bn_relu_apply(y, scale, shift)                         # (16, N, cn)
    x = jnp.transpose(y.reshape(4, 4, n, cn), (2, 0, 1, 3))     # (N, 4, 4, cn)
    return x[:, :, :, :cout]


def _up_layer(x, w, gamma=None, beta=None, final_tanh=False):
    """ConvTranspose2d(Cin, Cout, 4, 2, 1): sub-pixel decomposition into the 4
    output parities; each parity is a 2x2-tap conv (K = 4*Cin, no zeros)."""
    n, h, wd, cin = x.shape
    cout = w.shape[1]
    cn = _round_up(cout, LANE)

    xp = jnp.pad(x, ((0, 0), (1, 1), (1, 1), (0, 0)))
    p_groups, w_groups = [], []
    for ry in (0, 1):
        for rx in (0, 1):
            taps, wtaps = [], []
            for ty in (0, 1):
                for tx in (0, 1):
                    # output (2a+ry, 2b+rx) reads input (a+ry+ty-1, b+rx+tx-1)
                    # against kernel tap (3-ry-2*ty, 3-rx-2*tx)
                    taps.append(xp[:, ry + ty:ry + ty + h,
                                   rx + tx:rx + tx + wd, :])
                    wtaps.append(w[:, :, 3 - ry - 2 * ty, 3 - rx - 2 * tx])
            pg = jnp.stack(taps, axis=3)                        # (N,H,W,4,Cin)
            p_groups.append(pg.reshape(n * h * wd, 4 * cin))
            w_groups.append(jnp.stack(wtaps, axis=0).reshape(4 * cin, cout))

    p = jnp.stack(p_groups, axis=0).astype(jnp.bfloat16)        # (4, N*H*W, 4Cin)
    wg = jnp.stack(w_groups, axis=0)
    wg = jnp.pad(wg, ((0, 0), (0, 0), (0, cn - cout))).astype(jnp.bfloat16)

    if final_tanh:
        y = _grouped_matmul(p, wg, with_stats=False)            # (4, M, cn) f32
    else:
        y, stats = _grouped_matmul(p, wg, with_stats=True)
        scale, shift = _bn_scale_shift(stats, gamma, beta, cn, 4 * n * h * wd)
        y = _bn_relu_apply(y, scale, shift)                     # (4, M, cn) bf16

    # interleave parities: out[:, 2a+ry, 2b+rx, :] = y[ry*2+rx, (n,a,b), :]
    y = y.reshape(2, 2, n, h, wd, cn)
    out = jnp.transpose(y, (2, 3, 0, 4, 1, 5)).reshape(n, 2 * h, 2 * wd, cn)
    return out[:, :, :, :cout]


def generator_forward(z_nchw, params):
    n = z_nchw.shape[0]
    z = z_nchw.reshape(n, -1)                                       # 1x1 spatial
    x = _first_layer(z, params["w1"], params["g1"], params["b1"])   # 4x4,  ngf*8
    x = _up_layer(x, params["w2"], params["g2"], params["b2"])      # 8x8,  ngf*4
    x = _up_layer(x, params["w3"], params["g3"], params["b3"])      # 16x16, ngf*2
    x = _up_layer(x, params["w4"], params["g4"], params["b4"])      # 32x32, ngf
    x = _up_layer(x, params["w5"], final_tanh=True)                 # 64x64, nc
    return jnp.transpose(x, (0, 3, 1, 2)).astype(jnp.float32)       # NCHW


# ------------------------- pure-XLA reference (validation only) -------------------------

def _ref_generator(z_nchw, params):
    def convt(x, w, stride, pad):
        k = w.shape[2]
        rhs = jnp.transpose(jnp.flip(w, (2, 3)), (2, 3, 0, 1))   # (kh,kw,Cin,Cout)
        q = k - 1 - pad
        return jax.lax.conv_general_dilated(
            x, rhs, window_strides=(1, 1), padding=[(q, q), (q, q)],
            lhs_dilation=(stride, stride),
            dimension_numbers=("NHWC", "HWIO", "NHWC"))

    def bn_relu(y, g, b):
        mean = jnp.mean(y, axis=(0, 1, 2), keepdims=True)
        var = jnp.mean((y - mean) ** 2, axis=(0, 1, 2), keepdims=True)
        return jnp.maximum((y - mean) * jax.lax.rsqrt(var + EPS) * g + b, 0.0)

    x = jnp.transpose(z_nchw, (0, 2, 3, 1)).astype(jnp.float32)
    x = bn_relu(convt(x, params["w1"], 1, 0), params["g1"], params["b1"])
    x = bn_relu(convt(x, params["w2"], 2, 1), params["g2"], params["b2"])
    x = bn_relu(convt(x, params["w3"], 2, 1), params["g3"], params["b3"])
    x = bn_relu(convt(x, params["w4"], 2, 1), params["g4"], params["b4"])
    x = jnp.tanh(convt(x, params["w5"], 2, 1))
    return jnp.transpose(x, (0, 3, 1, 2))


# ------------------------- demo / smoke test -------------------------

if __name__ == "__main__":
    # Scaled-down GANConfig: nz=16, ngf=8, nc=3, batch=2 (architecture identical).
    NZ, NGF, NC, BATCH = 16, 8, 3, 2

    key = jax.random.PRNGKey(0)
    ks = jax.random.split(key, 14)

    def wn(k, shape):
        return 0.05 * jax.random.normal(k, shape, jnp.float32)

    params = {
        "w1": wn(ks[0], (NZ,      NGF * 8, 4, 4)),
        "g1": 1.0 + 0.1 * jax.random.normal(ks[1], (NGF * 8,), jnp.float32),
        "b1": 0.1 * jax.random.normal(ks[2], (NGF * 8,), jnp.float32),
        "w2": wn(ks[3], (NGF * 8, NGF * 4, 4, 4)),
        "g2": 1.0 + 0.1 * jax.random.normal(ks[4], (NGF * 4,), jnp.float32),
        "b2": 0.1 * jax.random.normal(ks[5], (NGF * 4,), jnp.float32),
        "w3": wn(ks[6], (NGF * 4, NGF * 2, 4, 4)),
        "g3": 1.0 + 0.1 * jax.random.normal(ks[7], (NGF * 2,), jnp.float32),
        "b3": 0.1 * jax.random.normal(ks[8], (NGF * 2,), jnp.float32),
        "w4": wn(ks[9], (NGF * 2, NGF,     4, 4)),
        "g4": 1.0 + 0.1 * jax.random.normal(ks[10], (NGF,), jnp.float32),
        "b4": 0.1 * jax.random.normal(ks[11], (NGF,), jnp.float32),
        "w5": wn(ks[12], (NGF,    NC,      4, 4)),
    }

    z = jax.random.normal(ks[13], (BATCH, NZ, 1, 1), jnp.float32)   # NCHW latent

    out = jax.block_until_ready(jax.jit(generator_forward)(z, params))
    ref = jax.block_until_ready(jax.jit(_ref_generator)(z, params))

    assert out.shape == (BATCH, NC, 64, 64), out.shape
    assert bool(jnp.all(jnp.isfinite(out)))
    assert bool(jnp.all(jnp.abs(out) <= 1.0 + 1e-6))       # tanh range
    max_diff = float(jnp.max(jnp.abs(out - ref)))           # bf16-activation path
    assert max_diff < 0.1, f"max abs diff vs XLA reference: {max_diff}"
    print("KERNEL_OK")
</pallas_src>

<mosaic_0001>
module attributes {stable_mosaic.version = 11 : i64} {
  func.func @_bn_relu_kernel(%arg0: i32, %arg1: i32, %arg2: memref<1x2x128xbf16, #tpu.memory_space<vmem>>, %arg3: memref<1x128xf32, #tpu.memory_space<vmem>>, %arg4: memref<1x128xf32, #tpu.memory_space<vmem>>, %arg5: memref<1x2x128xbf16, #tpu.memory_space<vmem>>) attributes {dimension_semantics = [#tpu.dimension_semantics<parallel>, #tpu.dimension_semantics<parallel>], iteration_bounds = array<i64: 16, 1>, scalar_prefetch = 0 : i64, scratch_operands = 0 : i64, tpu.core_type = #tpu.core_type<tc>, window_params = [{transform_indices = @transform_0, window_bounds = array<i64: 1, 2, 128>}, {pipeline_mode = #tpu.pipeline_mode<synchronous>, transform_indices = @transform_1, window_bounds = array<i64: 1, 128>}, {pipeline_mode = #tpu.pipeline_mode<synchronous>, transform_indices = @transform_2, window_bounds = array<i64: 1, 128>}, {transform_indices = @transform_3, window_bounds = array<i64: 1, 2, 128>}]} {
    %c0 = arith.constant 0 : index
    %c0_0 = arith.constant 0 : index
    %c0_1 = arith.constant 0 : index
    %0 = vector.load %arg2[%c0, %c0_0, %c0_1] : memref<1x2x128xbf16, #tpu.memory_space<vmem>>, vector<1x2x128xbf16>
    %1 = vector.shape_cast %0 : vector<1x2x128xbf16> to vector<2x128xbf16>
    %2 = arith.extf %1 : vector<2x128xbf16> to vector<2x128xf32>
    %c0_2 = arith.constant 0 : index
    %c0_3 = arith.constant 0 : index
    %3 = vector.load %arg3[%c0_2, %c0_3] : memref<1x128xf32, #tpu.memory_space<vmem>>, vector<1x128xf32>
    %4 = vector.broadcast %3 : vector<1x128xf32> to vector<2x128xf32>
    %5 = arith.mulf %2, %4 : vector<2x128xf32>
    %c0_4 = arith.constant 0 : index
    %c0_5 = arith.constant 0 : index
    %6 = vector.load %arg4[%c0_4, %c0_5] : memref<1x128xf32, #tpu.memory_space<vmem>>, vector<1x128xf32>
    %7 = vector.broadcast %6 : vector<1x128xf32> to vector<2x128xf32>
    %8 = arith.addf %5, %7 : vector<2x128xf32>
    %cst = arith.constant 0.000000e+00 : f32
    %9 = vector.broadcast %cst : f32 to vector<2x128xf32>
    %10 = arith.maximumf %8, %9 : vector<2x128xf32>
    %11 = arith.truncf %10 : vector<2x128xf32> to vector<2x128xbf16>
    %c0_6 = arith.constant 0 : index
    %c0_7 = arith.constant 0 : index
    %c0_8 = arith.constant 0 : index
    %12 = vector.load %arg5[%c0_6, %c0_7, %c0_8] : memref<1x2x128xbf16, #tpu.memory_space<vmem>>, vector<1x2x128xbf16>
    %13 = vector.shape_cast %12 : vector<1x2x128xbf16> to vector<2x128xbf16>
    %14 = vector.shape_cast %11 : vector<2x128xbf16> to vector<1x2x128xbf16>
    tpu.vector_store %arg5[%c0_6, %c0_7, %c0_8], %14 {strides = array<i32>} : memref<1x2x128xbf16, #tpu.memory_space<vmem>>, vector<1x2x128xbf16>,
    return
  }
  func.func @transform_0(%arg0: i32, %arg1: i32) -> (i32, i32, i32) {
    %c0_i32 = arith.constant 0 : i32
    %c0_i32_0 = arith.constant 0 : i32
    return %arg0, %arg1, %c0_i32 : i32, i32, i32
  }
  func.func @transform_1(%arg0: i32, %arg1: i32) -> (i32, i32) {
    %c0_i32 = arith.constant 0 : i32
    %c0_i32_0 = arith.constant 0 : i32
    %c0_i32_1 = arith.constant 0 : i32
    return %c0_i32, %c0_i32_0 : i32, i32
  }
  func.func @transform_2(%arg0: i32, %arg1: i32) -> (i32, i32) {
    %c0_i32 = arith.constant 0 : i32
    %c0_i32_0 = arith.constant 0 : i32
    %c0_i32_1 = arith.constant 0 : i32
    return %c0_i32, %c0_i32_0 : i32, i32
  }
  func.func @transform_3(%arg0: i32, %arg1: i32) -> (i32, i32, i32) {
    %c0_i32 = arith.constant 0 : i32
    %c0_i32_0 = arith.constant 0 : i32
    return %arg0, %arg1, %c0_i32 : i32, i32, i32
  }
}

module attributes {stable_mosaic.version = 11 : i64} {
  func.func @_gmm_stats_kernel(%arg0: i32, %arg1: i32, %arg2: i32, %arg3: memref<1x2x16xbf16, #tpu.memory_space<vmem>>, %arg4: memref<1x16x128xbf16, #tpu.memory_space<vmem>>, %arg5: memref<1x2x128xbf16, #tpu.memory_space<vmem>>, %arg6: memref<1x2x128xf32, #tpu.memory_space<vmem>>, %arg7: memref<2x128xf32, #tpu.memory_space<vmem>>) attributes {dimension_semantics = [#tpu.dimension_semantics<parallel>, #tpu.dimension_semantics<parallel>, #tpu.dimension_semantics<arbitrary>], iteration_bounds = array<i64: 16, 1, 1>, scalar_prefetch = 0 : i64, scratch_operands = 1 : i64, tpu.core_type = #tpu.core_type<tc>, window_params = [{transform_indices = @transform_0, window_bounds = array<i64: 1, 2, 16>}, {transform_indices = @transform_1, window_bounds = array<i64: 1, 16, 128>}, {transform_indices = @transform_2, window_bounds = array<i64: 1, 2, 128>}, {transform_indices = @transform_3, window_bounds = array<i64: 1, 2, 128>}]} {
    %c0_i32 = arith.constant 0 : i32
    %0 = arith.cmpi eq, %arg2, %c0_i32 : i32
    %1 = arith.extui %0 : i1 to i32
    %c0_i32_0 = arith.constant 0 : i32
    %2 = arith.cmpi ne, %1, %c0_i32_0 : i32
    scf.if %2 {
      %cst_12 = arith.constant 0.000000e+00 : f32
      %14 = vector.broadcast %cst_12 : f32 to vector<2x128xf32>
      %c0_13 = arith.constant 0 : index
      %c0_14 = arith.constant 0 : index
      %15 = vector.load %arg7[%c0_13, %c0_14] : memref<2x128xf32, #tpu.memory_space<vmem>>, vector<2x128xf32>
      tpu.vector_store %arg7[%c0_13, %c0_14], %14 {strides = array<i32>} : memref<2x128xf32, #tpu.memory_space<vmem>>, vector<2x128xf32>,
    } else {
    }
    %c0 = arith.constant 0 : index
    %c0_1 = arith.constant 0 : index
    %3 = vector.load %arg7[%c0, %c0_1] : memref<2x128xf32, #tpu.memory_space<vmem>>, vector<2x128xf32>
    %c0_2 = arith.constant 0 : index
    %c0_3 = arith.constant 0 : index
    %c0_4 = arith.constant 0 : index
    %4 = vector.load %arg3[%c0_2, %c0_3, %c0_4] : memref<1x2x16xbf16, #tpu.memory_space<vmem>>, vector<1x2x16xbf16>
    %5 = vector.shape_cast %4 : vector<1x2x16xbf16> to vector<2x16xbf16>
    %c0_5 = arith.constant 0 : index
    %c0_6 = arith.constant 0 : index
    %c0_7 = arith.constant 0 : index
    %6 = vector.load %arg4[%c0_5, %c0_6, %c0_7] : memref<1x16x128xbf16, #tpu.memory_space<vmem>>, vector<1x16x128xbf16>
    %7 = vector.shape_cast %6 : vector<1x16x128xbf16> to vector<16x128xbf16>
    %cst = arith.constant dense<0.000000e+00> : vector<2x128xf32>
    %8 = tpu.matmul %5, %7, %cst {dimension_numbers = #tpu.dot_dimension_numbers<[1], [0], [0], [1], [0, 0, 1, 1], [], []>} : vector<2x16xbf16>, vector<16x128xbf16>, vector<2x128xf32> -> vector<2x128xf32>
    %9 = arith.addf %3, %8 : vector<2x128xf32>
    %c0_8 = arith.constant 0 : index
    %c0_9 = arith.constant 0 : index
    %10 = vector.load %arg7[%c0_8, %c0_9] : memref<2x128xf32, #tpu.memory_space<vmem>>, vector<2x128xf32>
    tpu.vector_store %arg7[%c0_8, %c0_9], %9 {strides = array<i32>} : memref<2x128xf32, #tpu.memory_space<vmem>>, vector<2x128xf32>,
    %c0_i32_10 = arith.constant 0 : i32
    %11 = arith.cmpi eq, %arg2, %c0_i32_10 : i32
    %12 = arith.extui %11 : i1 to i32
    %c0_i32_11 = arith.constant 0 : i32
    %13 = arith.cmpi ne, %12, %c0_i32_11 : i32
    scf.if %13 {
      %c0_12 = arith.constant 0 : index
      %c0_13 = arith.constant 0 : index
      %14 = vector.load %arg7[%c0_12, %c0_13] : memref<2x128xf32, #tpu.memory_space<vmem>>, vector<2x128xf32>
      %15 = arith.truncf %14 : vector<2x128xf32> to vector<2x128xbf16>
      %c0_14 = arith.constant 0 : index
      %c0_15 = arith.constant 0 : index
      %c0_16 = arith.constant 0 : index
      %16 = vector.load %arg5[%c0_14, %c0_15, %c0_16] : memref<1x2x128xbf16, #tpu.memory_space<vmem>>, vector<1x2x128xbf16>
      %17 = vector.shape_cast %16 : vector<1x2x128xbf16> to vector<2x128xbf16>
      %18 = vector.shape_cast %15 : vector<2x128xbf16> to vector<1x2x128xbf16>
      tpu.vector_store %arg5[%c0_14, %c0_15, %c0_16], %18 {strides = array<i32>} : memref<1x2x128xbf16, #tpu.memory_space<vmem>>, vector<1x2x128xbf16>,
      %cst_17 = arith.constant dense<0.000000e+00> : vector<128xf32>
      %19 = vector.multi_reduction <add>, %14, %cst_17 [0] : vector<2x128xf32> to vector<128xf32>
      %20 = vector.shape_cast %19 : vector<128xf32> to vector<1x128xf32>
      %21 = arith.mulf %14, %14 : vector<2x128xf32>
      %cst_18 = arith.constant dense<0.000000e+00> : vector<128xf32>
      %22 = vector.multi_reduction <add>, %21, %cst_18 [0] : vector<2x128xf32> to vector<128xf32>
      %23 = vector.shape_cast %22 : vector<128xf32> to vector<1x128xf32>
      %24 = tpu.concatenate %20, %23 in 0 : vector<1x128xf32>, vector<1x128xf32> -> vector<2x128xf32>
      %c0_19 = arith.constant 0 : index
      %c0_20 = arith.constant 0 : index
      %c0_21 = arith.constant 0 : index
      %25 = vector.load %arg6[%c0_19, %c0_20, %c0_21] : memref<1x2x128xf32, #tpu.memory_space<vmem>>, vector<1x2x128xf32>
      %26 = vector.shape_cast %25 : vector<1x2x128xf32> to vector<2x128xf32>
      %27 = vector.shape_cast %24 : vector<2x128xf32> to vector<1x2x128xf32>
      tpu.vector_store %arg6[%c0_19, %c0_20, %c0_21], %27 {strides = array<i32>} : memref<1x2x128xf32, #tpu.memory_space<vmem>>, vector<1x2x128xf32>,
    } else {
    }
    return
  }
  func.func @transform_0(%arg0: i32, %arg1: i32, %arg2: i32) -> (i32, i32, i32) {
    %c0_i32 = arith.constant 0 : i32
    return %arg0, %arg1, %arg2 : i32, i32, i32
  }
  func.func @transform_1(%arg0: i32, %arg1: i32, %arg2: i32) -> (i32, i32, i32) {
    %c0_i32 = arith.constant 0 : i32
    %c0_i32_0 = arith.constant 0 : i32
    return %arg0, %arg2, %c0_i32 : i32, i32, i32
  }
  func.func @transform_2(%arg0: i32, %arg1: i32, %arg2: i32) -> (i32, i32, i32) {
    %c0_i32 = arith.constant 0 : i32
    %c0_i32_0 = arith.constant 0 : i32
    return %arg0, %arg1, %c0_i32 : i32, i32, i32
  }
  func.func @transform_3(%arg0: i32, %arg1: i32, %arg2: i32) -> (i32, i32, i32) {
    %c1_i32 = arith.constant 1 : i32
    %0 = arith.muli %arg0, %c1_i32 : i32
    %1 = arith.addi %0, %arg1 : i32
    %c0_i32 = arith.constant 0 : i32
    %c0_i32_0 = arith.constant 0 : i32
    %c0_i32_1 = arith.constant 0 : i32
    return %1, %c0_i32, %c0_i32_0 : i32, i32, i32
  }
}

module attributes {stable_mosaic.version = 11 : i64} {
  func.func @_bn_relu_kernel(%arg0: i32, %arg1: i32, %arg2: memref<1x32x128xbf16, #tpu.memory_space<vmem>>, %arg3: memref<1x128xf32, #tpu.memory_space<vmem>>, %arg4: memref<1x128xf32, #tpu.memory_space<vmem>>, %arg5: memref<1x32x128xbf16, #tpu.memory_space<vmem>>) attributes {dimension_semantics = [#tpu.dimension_semantics<parallel>, #tpu.dimension_semantics<parallel>], iteration_bounds = array<i64: 4, 1>, scalar_prefetch = 0 : i64, scratch_operands = 0 : i64, tpu.core_type = #tpu.core_type<tc>, window_params = [{transform_indices = @transform_0, window_bounds = array<i64: 1, 32, 128>}, {pipeline_mode = #tpu.pipeline_mode<synchronous>, transform_indices = @transform_1, window_bounds = array<i64: 1, 128>}, {pipeline_mode = #tpu.pipeline_mode<synchronous>, transform_indices = @transform_2, window_bounds = array<i64: 1, 128>}, {transform_indices = @transform_3, window_bounds = array<i64: 1, 32, 128>}]} {
    %c0 = arith.constant 0 : index
    %c0_0 = arith.constant 0 : index
    %c0_1 = arith.constant 0 : index
    %0 = vector.load %arg2[%c0, %c0_0, %c0_1] : memref<1x32x128xbf16, #tpu.memory_space<vmem>>, vector<1x32x128xbf16>
    %1 = vector.shape_cast %0 : vector<1x32x128xbf16> to vector<32x128xbf16>
    %2 = arith.extf %1 : vector<32x128xbf16> to vector<32x128xf32>
    %c0_2 = arith.constant 0 : index
    %c0_3 = arith.constant 0 : index
    %3 = vector.load %arg3[%c0_2, %c0_3] : memref<1x128xf32, #tpu.memory_space<vmem>>, vector<1x128xf32>
    %4 = vector.broadcast %3 : vector<1x128xf32> to vector<32x128xf32>
    %5 = arith.mulf %2, %4 : vector<32x128xf32>
    %c0_4 = arith.constant 0 : index
    %c0_5 = arith.constant 0 : index
    %6 = vector.load %arg4[%c0_4, %c0_5] : memref<1x128xf32, #tpu.memory_space<vmem>>, vector<1x128xf32>
    %7 = vector.broadcast %6 : vector<1x128xf32> to vector<32x128xf32>
    %8 = arith.addf %5, %7 : vector<32x128xf32>
    %cst = arith.constant 0.000000e+00 : f32
    %9 = vector.broadcast %cst : f32 to vector<32x128xf32>
    %10 = arith.maximumf %8, %9 : vector<32x128xf32>
    %11 = arith.truncf %10 : vector<32x128xf32> to vector<32x128xbf16>
    %c0_6 = arith.constant 0 : index
    %c0_7 = arith.constant 0 : index
    %c0_8 = arith.constant 0 : index
    %12 = vector.load %arg5[%c0_6, %c0_7, %c0_8] : memref<1x32x128xbf16, #tpu.memory_space<vmem>>, vector<1x32x128xbf16>
    %13 = vector.shape_cast %12 : vector<1x32x128xbf16> to vector<32x128xbf16>
    %14 = vector.shape_cast %11 : vector<32x128xbf16> to vector<1x32x128xbf16>
    tpu.vector_store %arg5[%c0_6, %c0_7, %c0_8], %14 {strides = array<i32>} : memref<1x32x128xbf16, #tpu.memory_space<vmem>>, vector<1x32x128xbf16>,
    return
  }
  func.func @transform_0(%arg0: i32, %arg1: i32) -> (i32, i32, i32) {
    %c0_i32 = arith.constant 0 : i32
    %c0_i32_0 = arith.constant 0 : i32
    return %arg0, %arg1, %c0_i32 : i32, i32, i32
  }
  func.func @transform_1(%arg0: i32, %arg1: i32) -> (i32, i32) {
    %c0_i32 = arith.constant 0 : i32
    %c0_i32_0 = arith.constant 0 : i32
    %c0_i32_1 = arith.constant 0 : i32
    return %c0_i32, %c0_i32_0 : i32, i32
  }
  func.func @transform_2(%arg0: i32, %arg1: i32) -> (i32, i32) {
    %c0_i32 = arith.constant 0 : i32
    %c0_i32_0 = arith.constant 0 : i32
    %c0_i32_1 = arith.constant 0 : i32
    return %c0_i32, %c0_i32_0 : i32, i32
  }
  func.func @transform_3(%arg0: i32, %arg1: i32) -> (i32, i32, i32) {
    %c0_i32 = arith.constant 0 : i32
    %c0_i32_0 = arith.constant 0 : i32
    return %arg0, %arg1, %c0_i32 : i32, i32, i32
  }
}

module attributes {stable_mosaic.version = 11 : i64} {
  func.func @_gmm_stats_kernel(%arg0: i32, %arg1: i32, %arg2: i32, %arg3: memref<1x32x256xbf16, #tpu.memory_space<vmem>>, %arg4: memref<1x256x128xbf16, #tpu.memory_space<vmem>>, %arg5: memref<1x32x128xbf16, #tpu.memory_space<vmem>>, %arg6: memref<1x2x128xf32, #tpu.memory_space<vmem>>, %arg7: memref<32x128xf32, #tpu.memory_space<vmem>>) attributes {dimension_semantics = [#tpu.dimension_semantics<parallel>, #tpu.dimension_semantics<parallel>, #tpu.dimension_semantics<arbitrary>], iteration_bounds = array<i64: 4, 1, 1>, scalar_prefetch = 0 : i64, scratch_operands = 1 : i64, tpu.core_type = #tpu.core_type<tc>, window_params = [{transform_indices = @transform_0, window_bounds = array<i64: 1, 32, 256>}, {transform_indices = @transform_1, window_bounds = array<i64: 1, 256, 128>}, {transform_indices = @transform_2, window_bounds = array<i64: 1, 32, 128>}, {transform_indices = @transform_3, window_bounds = array<i64: 1, 2, 128>}]} {
    %c0_i32 = arith.constant 0 : i32
    %0 = arith.cmpi eq, %arg2, %c0_i32 : i32
    %1 = arith.extui %0 : i1 to i32
    %c0_i32_0 = arith.constant 0 : i32
    %2 = arith.cmpi ne, %1, %c0_i32_0 : i32
    scf.if %2 {
      %cst_12 = arith.constant 0.000000e+00 : f32
      %14 = vector.broadcast %cst_12 : f32 to vector<32x128xf32>
      %c0_13 = arith.constant 0 : index
      %c0_14 = arith.constant 0 : index
      %15 = vector.load %arg7[%c0_13, %c0_14] : memref<32x128xf32, #tpu.memory_space<vmem>>, vector<32x128xf32>
      tpu.vector_store %arg7[%c0_13, %c0_14], %14 {strides = array<i32>} : memref<32x128xf32, #tpu.memory_space<vmem>>, vector<32x128xf32>,
    } else {
    }
    %c0 = arith.constant 0 : index
    %c0_1 = arith.constant 0 : index
    %3 = vector.load %arg7[%c0, %c0_1] : memref<32x128xf32, #tpu.memory_space<vmem>>, vector<32x128xf32>
    %c0_2 = arith.constant 0 : index
    %c0_3 = arith.constant 0 : index
    %c0_4 = arith.constant 0 : index
    %4 = vector.load %arg3[%c0_2, %c0_3, %c0_4] : memref<1x32x256xbf16, #tpu.memory_space<vmem>>, vector<1x32x256xbf16>
    %5 = vector.shape_cast %4 : vector<1x32x256xbf16> to vector<32x256xbf16>
    %c0_5 = arith.constant 0 : index
    %c0_6 = arith.constant 0 : index
    %c0_7 = arith.constant 0 : index
    %6 = vector.load %arg4[%c0_5, %c0_6, %c0_7] : memref<1x256x128xbf16, #tpu.memory_space<vmem>>, vector<1x256x128xbf16>
    %7 = vector.shape_cast %6 : vector<1x256x128xbf16> to vector<256x128xbf16>
    %cst = arith.constant dense<0.000000e+00> : vector<32x128xf32>
    %8 = tpu.matmul %5, %7, %cst {dimension_numbers = #tpu.dot_dimension_numbers<[1], [0], [0], [1], [0, 0, 1, 1], [], []>} : vector<32x256xbf16>, vector<256x128xbf16>, vector<32x128xf32> -> vector<32x128xf32>
    %9 = arith.addf %3, %8 : vector<32x128xf32>
    %c0_8 = arith.constant 0 : index
    %c0_9 = arith.constant 0 : index
    %10 = vector.load %arg7[%c0_8, %c0_9] : memref<32x128xf32, #tpu.memory_space<vmem>>, vector<32x128xf32>
    tpu.vector_store %arg7[%c0_8, %c0_9], %9 {strides = array<i32>} : memref<32x128xf32, #tpu.memory_space<vmem>>, vector<32x128xf32>,
    %c0_i32_10 = arith.constant 0 : i32
    %11 = arith.cmpi eq, %arg2, %c0_i32_10 : i32
    %12 = arith.extui %11 : i1 to i32
    %c0_i32_11 = arith.constant 0 : i32
    %13 = arith.cmpi ne, %12, %c0_i32_11 : i32
    scf.if %13 {
      %c0_12 = arith.constant 0 : index
      %c0_13 = arith.constant 0 : index
      %14 = vector.load %arg7[%c0_12, %c0_13] : memref<32x128xf32, #tpu.memory_space<vmem>>, vector<32x128xf32>
      %15 = arith.truncf %14 : vector<32x128xf32> to vector<32x128xbf16>
      %c0_14 = arith.constant 0 : index
      %c0_15 = arith.constant 0 : index
      %c0_16 = arith.constant 0 : index
      %16 = vector.load %arg5[%c0_14, %c0_15, %c0_16] : memref<1x32x128xbf16, #tpu.memory_space<vmem>>, vector<1x32x128xbf16>
      %17 = vector.shape_cast %16 : vector<1x32x128xbf16> to vector<32x128xbf16>
      %18 = vector.shape_cast %15 : vector<32x128xbf16> to vector<1x32x128xbf16>
      tpu.vector_store %arg5[%c0_14, %c0_15, %c0_16], %18 {strides = array<i32>} : memref<1x32x128xbf16, #tpu.memory_space<vmem>>, vector<1x32x128xbf16>,
      %cst_17 = arith.constant dense<0.000000e+00> : vector<128xf32>
      %19 = vector.multi_reduction <add>, %14, %cst_17 [0] : vector<32x128xf32> to vector<128xf32>
      %20 = vector.shape_cast %19 : vector<128xf32> to vector<1x128xf32>
      %21 = arith.mulf %14, %14 : vector<32x128xf32>
      %cst_18 = arith.constant dense<0.000000e+00> : vector<128xf32>
      %22 = vector.multi_reduction <add>, %21, %cst_18 [0] : vector<32x128xf32> to vector<128xf32>
      %23 = vector.shape_cast %22 : vector<128xf32> to vector<1x128xf32>
      %24 = tpu.concatenate %20, %23 in 0 : vector<1x128xf32>, vector<1x128xf32> -> vector<2x128xf32>
      %c0_19 = arith.constant 0 : index
      %c0_20 = arith.constant 0 : index
      %c0_21 = arith.constant 0 : index
      %25 = vector.load %arg6[%c0_19, %c0_20, %c0_21] : memref<1x2x128xf32, #tpu.memory_space<vmem>>, vector<1x2x128xf32>
      %26 = vector.shape_cast %25 : vector<1x2x128xf32> to vector<2x128xf32>
      %27 = vector.shape_cast %24 : vector<2x128xf32> to vector<1x2x128xf32>
      tpu.vector_store %arg6[%c0_19, %c0_20, %c0_21], %27 {strides = array<i32>} : memref<1x2x128xf32, #tpu.memory_space<vmem>>, vector<1x2x128xf32>,
    } else {
    }
    return
  }
  func.func @transform_0(%arg0: i32, %arg1: i32, %arg2: i32) -> (i32, i32, i32) {
    %c0_i32 = arith.constant 0 : i32
    return %arg0, %arg1, %arg2 : i32, i32, i32
  }
  func.func @transform_1(%arg0: i32, %arg1: i32, %arg2: i32) -> (i32, i32, i32) {
    %c0_i32 = arith.constant 0 : i32
    %c0_i32_0 = arith.constant 0 : i32
    return %arg0, %arg2, %c0_i32 : i32, i32, i32
  }
  func.func @transform_2(%arg0: i32, %arg1: i32, %arg2: i32) -> (i32, i32, i32) {
    %c0_i32 = arith.constant 0 : i32
    %c0_i32_0 = arith.constant 0 : i32
    return %arg0, %arg1, %c0_i32 : i32, i32, i32
  }
  func.func @transform_3(%arg0: i32, %arg1: i32, %arg2: i32) -> (i32, i32, i32) {
    %c1_i32 = arith.constant 1 : i32
    %0 = arith.muli %arg0, %c1_i32 : i32
    %1 = arith.addi %0, %arg1 : i32
    %c0_i32 = arith.constant 0 : i32
    %c0_i32_0 = arith.constant 0 : i32
    %c0_i32_1 = arith.constant 0 : i32
    return %1, %c0_i32, %c0_i32_0 : i32, i32, i32
  }
}

module attributes {stable_mosaic.version = 11 : i64} {
  func.func @_gmm_stats_kernel(%arg0: i32, %arg1: i32, %arg2: i32, %arg3: memref<1x128x128xbf16, #tpu.memory_space<vmem>>, %arg4: memref<1x128x128xbf16, #tpu.memory_space<vmem>>, %arg5: memref<1x128x128xbf16, #tpu.memory_space<vmem>>, %arg6: memref<1x2x128xf32, #tpu.memory_space<vmem>>, %arg7: memref<128x128xf32, #tpu.memory_space<vmem>>) attributes {dimension_semantics = [#tpu.dimension_semantics<parallel>, #tpu.dimension_semantics<parallel>, #tpu.dimension_semantics<arbitrary>], iteration_bounds = array<i64: 4, 1, 1>, scalar_prefetch = 0 : i64, scratch_operands = 1 : i64, tpu.core_type = #tpu.core_type<tc>, window_params = [{transform_indices = @transform_0, window_bounds = array<i64: 1, 128, 128>}, {transform_indices = @transform_1, window_bounds = array<i64: 1, 128, 128>}, {transform_indices = @transform_2, window_bounds = array<i64: 1, 128, 128>}, {transform_indices = @transform_3, window_bounds = array<i64: 1, 2, 128>}]} {
    %c0_i32 = arith.constant 0 : i32
    %0 = arith.cmpi eq, %arg2, %c0_i32 : i32
    %1 = arith.extui %0 : i1 to i32
    %c0_i32_0 = arith.constant 0 : i32
    %2 = arith.cmpi ne, %1, %c0_i32_0 : i32
    scf.if %2 {
      %cst_12 = arith.constant 0.000000e+00 : f32
      %14 = vector.broadcast %cst_12 : f32 to vector<128x128xf32>
      %c0_13 = arith.constant 0 : index
      %c0_14 = arith.constant 0 : index
      %15 = vector.load %arg7[%c0_13, %c0_14] : memref<128x128xf32, #tpu.memory_space<vmem>>, vector<128x128xf32>
      tpu.vector_store %arg7[%c0_13, %c0_14], %14 {strides = array<i32>} : memref<128x128xf32, #tpu.memory_space<vmem>>, vector<128x128xf32>,
    } else {
    }
    %c0 = arith.constant 0 : index
    %c0_1 = arith.constant 0 : index
    %3 = vector.load %arg7[%c0, %c0_1] : memref<128x128xf32, #tpu.memory_space<vmem>>, vector<128x128xf32>
    %c0_2 = arith.constant 0 : index
    %c0_3 = arith.constant 0 : index
    %c0_4 = arith.constant 0 : index
    %4 = vector.load %arg3[%c0_2, %c0_3, %c0_4] : memref<1x128x128xbf16, #tpu.memory_space<vmem>>, vector<1x128x128xbf16>
    %5 = vector.shape_cast %4 : vector<1x128x128xbf16> to vector<128x128xbf16>
    %c0_5 = arith.constant 0 : index
    %c0_6 = arith.constant 0 : index
    %c0_7 = arith.constant 0 : index
    %6 = vector.load %arg4[%c0_5, %c0_6, %c0_7] : memref<1x128x128xbf16, #tpu.memory_space<vmem>>, vector<1x128x128xbf16>
    %7 = vector.shape_cast %6 : vector<1x128x128xbf16> to vector<128x128xbf16>
    %cst = arith.constant dense<0.000000e+00> : vector<128x128xf32>
    %8 = tpu.matmul %5, %7, %cst {dimension_numbers = #tpu.dot_dimension_numbers<[1], [0], [0], [1], [0, 0, 1, 1], [], []>} : vector<128x128xbf16>, vector<128x128xbf16>, vector<128x128xf32> -> vector<128x128xf32>
    %9 = arith.addf %3, %8 : vector<128x128xf32>
    %c0_8 = arith.constant 0 : index
    %c0_9 = arith.constant 0 : index
    %10 = vector.load %arg7[%c0_8, %c0_9] : memref<128x128xf32, #tpu.memory_space<vmem>>, vector<128x128xf32>
    tpu.vector_store %arg7[%c0_8, %c0_9], %9 {strides = array<i32>} : memref<128x128xf32, #tpu.memory_space<vmem>>, vector<128x128xf32>,
    %c0_i32_10 = arith.constant 0 : i32
    %11 = arith.cmpi eq, %arg2, %c0_i32_10 : i32
    %12 = arith.extui %11 : i1 to i32
    %c0_i32_11 = arith.constant 0 : i32
    %13 = arith.cmpi ne, %12, %c0_i32_11 : i32
    scf.if %13 {
      %c0_12 = arith.constant 0 : index
      %c0_13 = arith.constant 0 : index
      %14 = vector.load %arg7[%c0_12, %c0_13] : memref<128x128xf32, #tpu.memory_space<vmem>>, vector<128x128xf32>
      %15 = arith.truncf %14 : vector<128x128xf32> to vector<128x128xbf16>
      %c0_14 = arith.constant 0 : index
      %c0_15 = arith.constant 0 : index
      %c0_16 = arith.constant 0 : index
      %16 = vector.load %arg5[%c0_14, %c0_15, %c0_16] : memref<1x128x128xbf16, #tpu.memory_space<vmem>>, vector<1x128x128xbf16>
      %17 = vector.shape_cast %16 : vector<1x128x128xbf16> to vector<128x128xbf16>
      %18 = vector.shape_cast %15 : vector<128x128xbf16> to vector<1x128x128xbf16>
      tpu.vector_store %arg5[%c0_14, %c0_15, %c0_16], %18 {strides = array<i32>} : memref<1x128x128xbf16, #tpu.memory_space<vmem>>, vector<1x128x128xbf16>,
      %cst_17 = arith.constant dense<0.000000e+00> : vector<128xf32>
      %19 = vector.multi_reduction <add>, %14, %cst_17 [0] : vector<128x128xf32> to vector<128xf32>
      %20 = vector.shape_cast %19 : vector<128xf32> to vector<1x128xf32>
      %21 = arith.mulf %14, %14 : vector<128x128xf32>
      %cst_18 = arith.constant dense<0.000000e+00> : vector<128xf32>
      %22 = vector.multi_reduction <add>, %21, %cst_18 [0] : vector<128x128xf32> to vector<128xf32>
      %23 = vector.shape_cast %22 : vector<128xf32> to vector<1x128xf32>
      %24 = tpu.concatenate %20, %23 in 0 : vector<1x128xf32>, vector<1x128xf32> -> vector<2x128xf32>
      %c0_19 = arith.constant 0 : index
      %c0_20 = arith.constant 0 : index
      %c0_21 = arith.constant 0 : index
      %25 = vector.load %arg6[%c0_19, %c0_20, %c0_21] : memref<1x2x128xf32, #tpu.memory_space<vmem>>, vector<1x2x128xf32>
      %26 = vector.shape_cast %25 : vector<1x2x128xf32> to vector<2x128xf32>
      %27 = vector.shape_cast %24 : vector<2x128xf32> to vector<1x2x128xf32>
      tpu.vector_store %arg6[%c0_19, %c0_20, %c0_21], %27 {strides = array<i32>} : memref<1x2x128xf32, #tpu.memory_space<vmem>>, vector<1x2x128xf32>,
    } else {
    }
    return
  }
  func.func @transform_0(%arg0: i32, %arg1: i32, %arg2: i32) -> (i32, i32, i32) {
    %c0_i32 = arith.constant 0 : i32
    return %arg0, %arg1, %arg2 : i32, i32, i32
  }
  func.func @transform_1(%arg0: i32, %arg1: i32, %arg2: i32) -> (i32, i32, i32) {
    %c0_i32 = arith.constant 0 : i32
    %c0_i32_0 = arith.constant 0 : i32
    return %arg0, %arg2, %c0_i32 : i32, i32, i32
  }
  func.func @transform_2(%arg0: i32, %arg1: i32, %arg2: i32) -> (i32, i32, i32) {
    %c0_i32 = arith.constant 0 : i32
    %c0_i32_0 = arith.constant 0 : i32
    return %arg0, %arg1, %c0_i32 : i32, i32, i32
  }
  func.func @transform_3(%arg0: i32, %arg1: i32, %arg2: i32) -> (i32, i32, i32) {
    %c1_i32 = arith.constant 1 : i32
    %0 = arith.muli %arg0, %c1_i32 : i32
    %1 = arith.addi %0, %arg1 : i32
    %c0_i32 = arith.constant 0 : i32
    %c0_i32_0 = arith.constant 0 : i32
    %c0_i32_1 = arith.constant 0 : i32
    return %1, %c0_i32, %c0_i32_0 : i32, i32, i32
  }
}

module attributes {stable_mosaic.version = 11 : i64} {
  func.func @_bn_relu_kernel(%arg0: i32, %arg1: i32, %arg2: memref<1x128x128xbf16, #tpu.memory_space<vmem>>, %arg3: memref<1x128xf32, #tpu.memory_space<vmem>>, %arg4: memref<1x128xf32, #tpu.memory_space<vmem>>, %arg5: memref<1x128x128xbf16, #tpu.memory_space<vmem>>) attributes {dimension_semantics = [#tpu.dimension_semantics<parallel>, #tpu.dimension_semantics<parallel>], iteration_bounds = array<i64: 4, 1>, scalar_prefetch = 0 : i64, scratch_operands = 0 : i64, tpu.core_type = #tpu.core_type<tc>, window_params = [{transform_indices = @transform_0, window_bounds = array<i64: 1, 128, 128>}, {pipeline_mode = #tpu.pipeline_mode<synchronous>, transform_indices = @transform_1, window_bounds = array<i64: 1, 128>}, {pipeline_mode = #tpu.pipeline_mode<synchronous>, transform_indices = @transform_2, window_bounds = array<i64: 1, 128>}, {transform_indices = @transform_3, window_bounds = array<i64: 1, 128, 128>}]} {
    %c0 = arith.constant 0 : index
    %c0_0 = arith.constant 0 : index
    %c0_1 = arith.constant 0 : index
    %0 = vector.load %arg2[%c0, %c0_0, %c0_1] : memref<1x128x128xbf16, #tpu.memory_space<vmem>>, vector<1x128x128xbf16>
    %1 = vector.shape_cast %0 : vector<1x128x128xbf16> to vector<128x128xbf16>
    %2 = arith.extf %1 : vector<128x128xbf16> to vector<128x128xf32>
    %c0_2 = arith.constant 0 : index
    %c0_3 = arith.constant 0 : index
    %3 = vector.load %arg3[%c0_2, %c0_3] : memref<1x128xf32, #tpu.memory_space<vmem>>, vector<1x128xf32>
    %4 = vector.broadcast %3 : vector<1x128xf32> to vector<128x128xf32>
    %5 = arith.mulf %2, %4 : vector<128x128xf32>
    %c0_4 = arith.constant 0 : index
    %c0_5 = arith.constant 0 : index
    %6 = vector.load %arg4[%c0_4, %c0_5] : memref<1x128xf32, #tpu.memory_space<vmem>>, vector<1x128xf32>
    %7 = vector.broadcast %6 : vector<1x128xf32> to vector<128x128xf32>
    %8 = arith.addf %5, %7 : vector<128x128xf32>
    %cst = arith.constant 0.000000e+00 : f32
    %9 = vector.broadcast %cst : f32 to vector<128x128xf32>
    %10 = arith.maximumf %8, %9 : vector<128x128xf32>
    %11 = arith.truncf %10 : vector<128x128xf32> to vector<128x128xbf16>
    %c0_6 = arith.constant 0 : index
    %c0_7 = arith.constant 0 : index
    %c0_8 = arith.constant 0 : index
    %12 = vector.load %arg5[%c0_6, %c0_7, %c0_8] : memref<1x128x128xbf16, #tpu.memory_space<vmem>>, vector<1x128x128xbf16>
    %13 = vector.shape_cast %12 : vector<1x128x128xbf16> to vector<128x128xbf16>
    %14 = vector.shape_cast %11 : vector<128x128xbf16> to vector<1x128x128xbf16>
    tpu.vector_store %arg5[%c0_6, %c0_7, %c0_8], %14 {strides = array<i32>} : memref<1x128x128xbf16, #tpu.memory_space<vmem>>, vector<1x128x128xbf16>,
    return
  }
  func.func @transform_0(%arg0: i32, %arg1: i32) -> (i32, i32, i32) {
    %c0_i32 = arith.constant 0 : i32
    %c0_i32_0 = arith.constant 0 : i32
    return %arg0, %arg1, %c0_i32 : i32, i32, i32
  }
  func.func @transform_1(%arg0: i32, %arg1: i32) -> (i32, i32) {
    %c0_i32 = arith.constant 0 : i32
    %c0_i32_0 = arith.constant 0 : i32
    %c0_i32_1 = arith.constant 0 : i32
    return %c0_i32, %c0_i32_0 : i32, i32
  }
  func.func @transform_2(%arg0: i32, %arg1: i32) -> (i32, i32) {
    %c0_i32 = arith.constant 0 : i32
    %c0_i32_0 = arith.constant 0 : i32
    %c0_i32_1 = arith.constant 0 : i32
    return %c0_i32, %c0_i32_0 : i32, i32
  }
  func.func @transform_3(%arg0: i32, %arg1: i32) -> (i32, i32, i32) {
    %c0_i32 = arith.constant 0 : i32
    %c0_i32_0 = arith.constant 0 : i32
    return %arg0, %arg1, %c0_i32 : i32, i32, i32
  }
}

module attributes {stable_mosaic.version = 11 : i64} {
  func.func @_gmm_stats_kernel(%arg0: i32, %arg1: i32, %arg2: i32, %arg3: memref<1x512x64xbf16, #tpu.memory_space<vmem>>, %arg4: memref<1x64x128xbf16, #tpu.memory_space<vmem>>, %arg5: memref<1x512x128xbf16, #tpu.memory_space<vmem>>, %arg6: memref<1x2x128xf32, #tpu.memory_space<vmem>>, %arg7: memref<512x128xf32, #tpu.memory_space<vmem>>) attributes {dimension_semantics = [#tpu.dimension_semantics<parallel>, #tpu.dimension_semantics<parallel>, #tpu.dimension_semantics<arbitrary>], iteration_bounds = array<i64: 4, 1, 1>, scalar_prefetch = 0 : i64, scratch_operands = 1 : i64, tpu.core_type = #tpu.core_type<tc>, window_params = [{transform_indices = @transform_0, window_bounds = array<i64: 1, 512, 64>}, {transform_indices = @transform_1, window_bounds = array<i64: 1, 64, 128>}, {transform_indices = @transform_2, window_bounds = array<i64: 1, 512, 128>}, {transform_indices = @transform_3, window_bounds = array<i64: 1, 2, 128>}]} {
    %c0_i32 = arith.constant 0 : i32
    %0 = arith.cmpi eq, %arg2, %c0_i32 : i32
    %1 = arith.extui %0 : i1 to i32
    %c0_i32_0 = arith.constant 0 : i32
    %2 = arith.cmpi ne, %1, %c0_i32_0 : i32
    scf.if %2 {
      %cst_12 = arith.constant 0.000000e+00 : f32
      %14 = vector.broadcast %cst_12 : f32 to vector<512x128xf32>
      %c0_13 = arith.constant 0 : index
      %c0_14 = arith.constant 0 : index
      %15 = vector.load %arg7[%c0_13, %c0_14] : memref<512x128xf32, #tpu.memory_space<vmem>>, vector<512x128xf32>
      tpu.vector_store %arg7[%c0_13, %c0_14], %14 {strides = array<i32>} : memref<512x128xf32, #tpu.memory_space<vmem>>, vector<512x128xf32>,
    } else {
    }
    %c0 = arith.constant 0 : index
    %c0_1 = arith.constant 0 : index
    %3 = vector.load %arg7[%c0, %c0_1] : memref<512x128xf32, #tpu.memory_space<vmem>>, vector<512x128xf32>
    %c0_2 = arith.constant 0 : index
    %c0_3 = arith.constant 0 : index
    %c0_4 = arith.constant 0 : index
    %4 = vector.load %arg3[%c0_2, %c0_3, %c0_4] : memref<1x512x64xbf16, #tpu.memory_space<vmem>>, vector<1x512x64xbf16>
    %5 = vector.shape_cast %4 : vector<1x512x64xbf16> to vector<512x64xbf16>
    %c0_5 = arith.constant 0 : index
    %c0_6 = arith.constant 0 : index
    %c0_7 = arith.constant 0 : index
    %6 = vector.load %arg4[%c0_5, %c0_6, %c0_7] : memref<1x64x128xbf16, #tpu.memory_space<vmem>>, vector<1x64x128xbf16>
    %7 = vector.shape_cast %6 : vector<1x64x128xbf16> to vector<64x128xbf16>
    %cst = arith.constant dense<0.000000e+00> : vector<512x128xf32>
    %8 = tpu.matmul %5, %7, %cst {dimension_numbers = #tpu.dot_dimension_numbers<[1], [0], [0], [1], [0, 0, 1, 1], [], []>} : vector<512x64xbf16>, vector<64x128xbf16>, vector<512x128xf32> -> vector<512x128xf32>
    %9 = arith.addf %3, %8 : vector<512x128xf32>
    %c0_8 = arith.constant 0 : index
    %c0_9 = arith.constant 0 : index
    %10 = vector.load %arg7[%c0_8, %c0_9] : memref<512x128xf32, #tpu.memory_space<vmem>>, vector<512x128xf32>
    tpu.vector_store %arg7[%c0_8, %c0_9], %9 {strides = array<i32>} : memref<512x128xf32, #tpu.memory_space<vmem>>, vector<512x128xf32>,
    %c0_i32_10 = arith.constant 0 : i32
    %11 = arith.cmpi eq, %arg2, %c0_i32_10 : i32
    %12 = arith.extui %11 : i1 to i32
    %c0_i32_11 = arith.constant 0 : i32
    %13 = arith.cmpi ne, %12, %c0_i32_11 : i32
    scf.if %13 {
      %c0_12 = arith.constant 0 : index
      %c0_13 = arith.constant 0 : index
      %14 = vector.load %arg7[%c0_12, %c0_13] : memref<512x128xf32, #tpu.memory_space<vmem>>, vector<512x128xf32>
      %15 = arith.truncf %14 : vector<512x128xf32> to vector<512x128xbf16>
      %c0_14 = arith.constant 0 : index
      %c0_15 = arith.constant 0 : index
      %c0_16 = arith.constant 0 : index
      %16 = vector.load %arg5[%c0_14, %c0_15, %c0_16] : memref<1x512x128xbf16, #tpu.memory_space<vmem>>, vector<1x512x128xbf16>
      %17 = vector.shape_cast %16 : vector<1x512x128xbf16> to vector<512x128xbf16>
      %18 = vector.shape_cast %15 : vector<512x128xbf16> to vector<1x512x128xbf16>
      tpu.vector_store %arg5[%c0_14, %c0_15, %c0_16], %18 {strides = array<i32>} : memref<1x512x128xbf16, #tpu.memory_space<vmem>>, vector<1x512x128xbf16>,
      %cst_17 = arith.constant dense<0.000000e+00> : vector<128xf32>
      %19 = vector.multi_reduction <add>, %14, %cst_17 [0] : vector<512x128xf32> to vector<128xf32>
      %20 = vector.shape_cast %19 : vector<128xf32> to vector<1x128xf32>
      %21 = arith.mulf %14, %14 : vector<512x128xf32>
      %cst_18 = arith.constant dense<0.000000e+00> : vector<128xf32>
      %22 = vector.multi_reduction <add>, %21, %cst_18 [0] : vector<512x128xf32> to vector<128xf32>
      %23 = vector.shape_cast %22 : vector<128xf32> to vector<1x128xf32>
      %24 = tpu.concatenate %20, %23 in 0 : vector<1x128xf32>, vector<1x128xf32> -> vector<2x128xf32>
      %c0_19 = arith.constant 0 : index
      %c0_20 = arith.constant 0 : index
      %c0_21 = arith.constant 0 : index
      %25 = vector.load %arg6[%c0_19, %c0_20, %c0_21] : memref<1x2x128xf32, #tpu.memory_space<vmem>>, vector<1x2x128xf32>
      %26 = vector.shape_cast %25 : vector<1x2x128xf32> to vector<2x128xf32>
      %27 = vector.shape_cast %24 : vector<2x128xf32> to vector<1x2x128xf32>
      tpu.vector_store %arg6[%c0_19, %c0_20, %c0_21], %27 {strides = array<i32>} : memref<1x2x128xf32, #tpu.memory_space<vmem>>, vector<1x2x128xf32>,
    } else {
    }
    return
  }
  func.func @transform_0(%arg0: i32, %arg1: i32, %arg2: i32) -> (i32, i32, i32) {
    %c0_i32 = arith.constant 0 : i32
    return %arg0, %arg1, %arg2 : i32, i32, i32
  }
  func.func @transform_1(%arg0: i32, %arg1: i32, %arg2: i32) -> (i32, i32, i32) {
    %c0_i32 = arith.constant 0 : i32
    %c0_i32_0 = arith.constant 0 : i32
    return %arg0, %arg2, %c0_i32 : i32, i32, i32
  }
  func.func @transform_2(%arg0: i32, %arg1: i32, %arg2: i32) -> (i32, i32, i32) {
    %c0_i32 = arith.constant 0 : i32
    %c0_i32_0 = arith.constant 0 : i32
    return %arg0, %arg1, %c0_i32 : i32, i32, i32
  }
  func.func @transform_3(%arg0: i32, %arg1: i32, %arg2: i32) -> (i32, i32, i32) {
    %c1_i32 = arith.constant 1 : i32
    %0 = arith.muli %arg0, %c1_i32 : i32
    %1 = arith.addi %0, %arg1 : i32
    %c0_i32 = arith.constant 0 : i32
    %c0_i32_0 = arith.constant 0 : i32
    %c0_i32_1 = arith.constant 0 : i32
    return %1, %c0_i32, %c0_i32_0 : i32, i32, i32
  }
}

module attributes {stable_mosaic.version = 11 : i64} {
  func.func @_bn_relu_kernel(%arg0: i32, %arg1: i32, %arg2: memref<1x512x128xbf16, #tpu.memory_space<vmem>>, %arg3: memref<1x128xf32, #tpu.memory_space<vmem>>, %arg4: memref<1x128xf32, #tpu.memory_space<vmem>>, %arg5: memref<1x512x128xbf16, #tpu.memory_space<vmem>>) attributes {dimension_semantics = [#tpu.dimension_semantics<parallel>, #tpu.dimension_semantics<parallel>], iteration_bounds = array<i64: 4, 1>, scalar_prefetch = 0 : i64, scratch_operands = 0 : i64, tpu.core_type = #tpu.core_type<tc>, window_params = [{transform_indices = @transform_0, window_bounds = array<i64: 1, 512, 128>}, {pipeline_mode = #tpu.pipeline_mode<synchronous>, transform_indices = @transform_1, window_bounds = array<i64: 1, 128>}, {pipeline_mode = #tpu.pipeline_mode<synchronous>, transform_indices = @transform_2, window_bounds = array<i64: 1, 128>}, {transform_indices = @transform_3, window_bounds = array<i64: 1, 512, 128>}]} {
    %c0 = arith.constant 0 : index
    %c0_0 = arith.constant 0 : index
    %c0_1 = arith.constant 0 : index
    %0 = vector.load %arg2[%c0, %c0_0, %c0_1] : memref<1x512x128xbf16, #tpu.memory_space<vmem>>, vector<1x512x128xbf16>
    %1 = vector.shape_cast %0 : vector<1x512x128xbf16> to vector<512x128xbf16>
    %2 = arith.extf %1 : vector<512x128xbf16> to vector<512x128xf32>
    %c0_2 = arith.constant 0 : index
    %c0_3 = arith.constant 0 : index
    %3 = vector.load %arg3[%c0_2, %c0_3] : memref<1x128xf32, #tpu.memory_space<vmem>>, vector<1x128xf32>
    %4 = vector.broadcast %3 : vector<1x128xf32> to vector<512x128xf32>
    %5 = arith.mulf %2, %4 : vector<512x128xf32>
    %c0_4 = arith.constant 0 : index
    %c0_5 = arith.constant 0 : index
    %6 = vector.load %arg4[%c0_4, %c0_5] : memref<1x128xf32, #tpu.memory_space<vmem>>, vector<1x128xf32>
    %7 = vector.broadcast %6 : vector<1x128xf32> to vector<512x128xf32>
    %8 = arith.addf %5, %7 : vector<512x128xf32>
    %cst = arith.constant 0.000000e+00 : f32
    %9 = vector.broadcast %cst : f32 to vector<512x128xf32>
    %10 = arith.maximumf %8, %9 : vector<512x128xf32>
    %11 = arith.truncf %10 : vector<512x128xf32> to vector<512x128xbf16>
    %c0_6 = arith.constant 0 : index
    %c0_7 = arith.constant 0 : index
    %c0_8 = arith.constant 0 : index
    %12 = vector.load %arg5[%c0_6, %c0_7, %c0_8] : memref<1x512x128xbf16, #tpu.memory_space<vmem>>, vector<1x512x128xbf16>
    %13 = vector.shape_cast %12 : vector<1x512x128xbf16> to vector<512x128xbf16>
    %14 = vector.shape_cast %11 : vector<512x128xbf16> to vector<1x512x128xbf16>
    tpu.vector_store %arg5[%c0_6, %c0_7, %c0_8], %14 {strides = array<i32>} : memref<1x512x128xbf16, #tpu.memory_space<vmem>>, vector<1x512x128xbf16>,
    return
  }
  func.func @transform_0(%arg0: i32, %arg1: i32) -> (i32, i32, i32) {
    %c0_i32 = arith.constant 0 : i32
    %c0_i32_0 = arith.constant 0 : i32
    return %arg0, %arg1, %c0_i32 : i32, i32, i32
  }
  func.func @transform_1(%arg0: i32, %arg1: i32) -> (i32, i32) {
    %c0_i32 = arith.constant 0 : i32
    %c0_i32_0 = arith.constant 0 : i32
    %c0_i32_1 = arith.constant 0 : i32
    return %c0_i32, %c0_i32_0 : i32, i32
  }
  func.func @transform_2(%arg0: i32, %arg1: i32) -> (i32, i32) {
    %c0_i32 = arith.constant 0 : i32
    %c0_i32_0 = arith.constant 0 : i32
    %c0_i32_1 = arith.constant 0 : i32
    return %c0_i32, %c0_i32_0 : i32, i32
  }
  func.func @transform_3(%arg0: i32, %arg1: i32) -> (i32, i32, i32) {
    %c0_i32 = arith.constant 0 : i32
    %c0_i32_0 = arith.constant 0 : i32
    return %arg0, %arg1, %c0_i32 : i32, i32, i32
  }
}

module attributes {stable_mosaic.version = 11 : i64} {
  func.func @_gmm_tanh_kernel(%arg0: i32, %arg1: i32, %arg2: i32, %arg3: memref<1x512x32xbf16, #tpu.memory_space<vmem>>, %arg4: memref<1x32x128xbf16, #tpu.memory_space<vmem>>, %arg5: memref<1x512x128xf32, #tpu.memory_space<vmem>>, %arg6: memref<512x128xf32, #tpu.memory_space<vmem>>) attributes {dimension_semantics = [#tpu.dimension_semantics<parallel>, #tpu.dimension_semantics<parallel>, #tpu.dimension_semantics<arbitrary>], iteration_bounds = array<i64: 4, 4, 1>, scalar_prefetch = 0 : i64, scratch_operands = 1 : i64, tpu.core_type = #tpu.core_type<tc>, window_params = [{transform_indices = @transform_0, window_bounds = array<i64: 1, 512, 32>}, {transform_indices = @transform_1, window_bounds = array<i64: 1, 32, 128>}, {transform_indices = @transform_2, window_bounds = array<i64: 1, 512, 128>}]} {
    %c0_i32 = arith.constant 0 : i32
    %0 = arith.cmpi eq, %arg2, %c0_i32 : i32
    %1 = arith.extui %0 : i1 to i32
    %c0_i32_0 = arith.constant 0 : i32
    %2 = arith.cmpi ne, %1, %c0_i32_0 : i32
    scf.if %2 {
      %cst_12 = arith.constant 0.000000e+00 : f32
      %14 = vector.broadcast %cst_12 : f32 to vector<512x128xf32>
      %c0_13 = arith.constant 0 : index
      %c0_14 = arith.constant 0 : index
      %15 = vector.load %arg6[%c0_13, %c0_14] : memref<512x128xf32, #tpu.memory_space<vmem>>, vector<512x128xf32>
      tpu.vector_store %arg6[%c0_13, %c0_14], %14 {strides = array<i32>} : memref<512x128xf32, #tpu.memory_space<vmem>>, vector<512x128xf32>,
    } else {
    }
    %c0 = arith.constant 0 : index
    %c0_1 = arith.constant 0 : index
    %3 = vector.load %arg6[%c0, %c0_1] : memref<512x128xf32, #tpu.memory_space<vmem>>, vector<512x128xf32>
    %c0_2 = arith.constant 0 : index
    %c0_3 = arith.constant 0 : index
    %c0_4 = arith.constant 0 : index
    %4 = vector.load %arg3[%c0_2, %c0_3, %c0_4] : memref<1x512x32xbf16, #tpu.memory_space<vmem>>, vector<1x512x32xbf16>
    %5 = vector.shape_cast %4 : vector<1x512x32xbf16> to vector<512x32xbf16>
    %c0_5 = arith.constant 0 : index
    %c0_6 = arith.constant 0 : index
    %c0_7 = arith.constant 0 : index
    %6 = vector.load %arg4[%c0_5, %c0_6, %c0_7] : memref<1x32x128xbf16, #tpu.memory_space<vmem>>, vector<1x32x128xbf16>
    %7 = vector.shape_cast %6 : vector<1x32x128xbf16> to vector<32x128xbf16>
    %cst = arith.constant dense<0.000000e+00> : vector<512x128xf32>
    %8 = tpu.matmul %5, %7, %cst {dimension_numbers = #tpu.dot_dimension_numbers<[1], [0], [0], [1], [0, 0, 1, 1], [], []>} : vector<512x32xbf16>, vector<32x128xbf16>, vector<512x128xf32> -> vector<512x128xf32>
    %9 = arith.addf %3, %8 : vector<512x128xf32>
    %c0_8 = arith.constant 0 : index
    %c0_9 = arith.constant 0 : index
    %10 = vector.load %arg6[%c0_8, %c0_9] : memref<512x128xf32, #tpu.memory_space<vmem>>, vector<512x128xf32>
    tpu.vector_store %arg6[%c0_8, %c0_9], %9 {strides = array<i32>} : memref<512x128xf32, #tpu.memory_space<vmem>>, vector<512x128xf32>,
    %c0_i32_10 = arith.constant 0 : i32
    %11 = arith.cmpi eq, %arg2, %c0_i32_10 : i32
    %12 = arith.extui %11 : i1 to i32
    %c0_i32_11 = arith.constant 0 : i32
    %13 = arith.cmpi ne, %12, %c0_i32_11 : i32
    scf.if %13 {
      %c0_12 = arith.constant 0 : index
      %c0_13 = arith.constant 0 : index
      %14 = vector.load %arg6[%c0_12, %c0_13] : memref<512x128xf32, #tpu.memory_space<vmem>>, vector<512x128xf32>
      %15 = math.tanh %14 : vector<512x128xf32>
      %c0_14 = arith.constant 0 : index
      %c0_15 = arith.constant 0 : index
      %c0_16 = arith.constant 0 : index
      %16 = vector.load %arg5[%c0_14, %c0_15, %c0_16] : memref<1x512x128xf32, #tpu.memory_space<vmem>>, vector<1x512x128xf32>
      %17 = vector.shape_cast %16 : vector<1x512x128xf32> to vector<512x128xf32>
      %18 = vector.shape_cast %15 : vector<512x128xf32> to vector<1x512x128xf32>
      tpu.vector_store %arg5[%c0_14, %c0_15, %c0_16], %18 {strides = array<i32>} : memref<1x512x128xf32, #tpu.memory_space<vmem>>, vector<1x512x128xf32>,
    } else {
    }
    return
  }
  func.func @transform_0(%arg0: i32, %arg1: i32, %arg2: i32) -> (i32, i32, i32) {
    %c0_i32 = arith.constant 0 : i32
    return %arg0, %arg1, %arg2 : i32, i32, i32
  }
  func.func @transform_1(%arg0: i32, %arg1: i32, %arg2: i32) -> (i32, i32, i32) {
    %c0_i32 = arith.constant 0 : i32
    %c0_i32_0 = arith.constant 0 : i32
    return %arg0, %arg2, %c0_i32 : i32, i32, i32
  }
  func.func @transform_2(%arg0: i32, %arg1: i32, %arg2: i32) -> (i32, i32, i32) {
    %c0_i32 = arith.constant 0 : i32
    %c0_i32_0 = arith.constant 0 : i32
    return %arg0, %arg1, %c0_i32 : i32, i32, i32
  }
}

</mosaic_0001>

<bundles_post_ra>
// kernel: generator_forward.10
= control target key start
LH: loop header
LB: loop body
LE: loop exit
PB: predicated region body
PF: predicated region fallthrough
CT: control target
= control target key end

     0   :  { %s355_s12 = smov 0   ;;  %s357_s13 = smov 0   ;;  %s382_s0 = inlined_call_operand.vmem [shape: bf16[16,2,128], index: 0, kind: input, shape index: {}]   ;;  %s383_s1 = inlined_call_operand.vmem [shape: f32[1,128], index: 1, kind: input, shape index: {}]   ;;  %s384_s2 = inlined_call_operand.vmem [shape: f32[1,128], index: 2, kind: input, shape index: {}]   ;;  %s385_s3 = inlined_call_operand.vmem [shape: bf16[16,2,128], index: 3, kind: output, shape index: {}]  }
   0x1   :  { %s359_s14 = smov 0  }
   0x2 LB: > { %s25_s15 = sadd.s32 1, %s329_s13  ;;  %p282_p0 = scmp.ge.s32.totalorder %s333_s14, 1  ;;  %s333_s14 = sphi %s359_s14, %s13_s14   ;;  %s329_s13 = sphi %s357_s13, %s387_s13   ;;  %s325_s12 = sphi %s355_s12, %s386_s12  }
   0x3   : > { %p27_p1 = scmp.ge.s32.totalorder %s25_s15, 16  ;;  %p154_p2 = scmp.lt.s32.totalorder %s333_s14, 17 }
   0x5   : > { %s389_s15 = smov (%p27_p1, %s25_s15), 0  ;;  %p155_p3 = pnand %p282_p0, %p154_p2 }
   0x6   : > { %p180_p4 = scmp.lt.s32.totalorder (!%p155_p3), %s325_s12, 15  ;;  %v283_v1 = vld [vmem:[%s383_s1] ss:$0 sm:$0xff] (!%p155_p3) }
   0x7   : > { %158 = sbr.rel (%p155_p3) target bundleno = 28 (0x1c), region = 32  ;;  %v284_v3 = vld [vmem:[%s384_s2] ss:$0 sm:$0xff] (!%p155_p3) }
   0xe   : > { %s391_s12 = smov (!%p180_p4, %s325_s12), 15 }
   0xf   : > { %s185_s18 = scalar_lea.vmem %s382_s0, %s391_s12  ;;  %s191_s25 = scalar_lea.vmem %s385_s3, %s391_s12 }
  0x10   : > { %v192_v0 = vld [vmem:[%s185_s18] sm:$0x1] }
  0x11   : > { %v193_v2 = vunpack.c.l.bf16 %v192_v0 }
  0x13   : > { %v201_v4 = vmul.f32 %v283_v1, %v193_v2 }
  0x15   : > { %v209_v5 = vadd.f32 %v284_v3, %v201_v4 }
  0x17   : > { %v210_v6 = vmax.f32 %v209_v5, 0.0 }
  0x19   : > { %v211_v7 = vpack.c.bf16 %v210_v6, %v210_v6 }
  0x1b   : > { %212 = vst [vmem:[%s191_s25] sm:$0x1] %v211_v7 }
  0x1c PF: > { %s13_s14 = sadd.s32 1, %s333_s14   ;;  %s386_s12 = smov %s329_s13 }
  0x1d   : > { %p10_p5 = scmp.ge.s32.totalorder %s13_s14, 18   ;;  %s387_s13 = smov %s389_s15 }
  0x1f   :  { %12 = sbr.rel (!%p10_p5) target bundleno = 2 (0x2), region = 62 }

// kernel: generator_forward.9
= control target key start
LH: loop header
LB: loop body
LE: loop exit
PB: predicated region body
PF: predicated region fallthrough
CT: control target
= control target key end

     0   :  { %s567_s12 = smov 0   ;;  %s569_s13 = smov 0   ;;  %s612_s0 = inlined_call_operand.vmem [shape: bf16[16,2,16], index: 0, kind: input, shape index: {}]   ;;  %s613_s1 = inlined_call_operand.vmem [shape: bf16[16,16,128], index: 1, kind: input, shape index: {}]   ;;  %s614_s2 = inlined_call_operand.vmem [shape: bf16[16,2,128], index: 2, kind: output, shape index: {0}]   ;;  %s615_s3 = inlined_call_operand.vmem [shape: f32[16,2,128], index: 3, kind: output, shape index: {1}]  }
   0x1   :  { %s571_s14 = smov 0  }
   0x2 LB: > { %s33_s15 = sadd.s32 1, %s539_s13  ;;  %p477_p0 = scmp.ge.s32.totalorder %s543_s14, 1  ;;  %s543_s14 = sphi %s571_s14, %s14_s14   ;;  %s539_s13 = sphi %s569_s13, %s617_s13   ;;  %s535_s12 = sphi %s567_s12, %s616_s12  }
   0x3   : > { %p35_p1 = scmp.ge.s32.totalorder %s33_s15, 16  ;;  %p188_p2 = scmp.lt.s32.totalorder %s543_s14, 17 }
   0x5   : > { %s619_s15 = smov (%p35_p1, %s33_s15), 0  ;;  %p189_p3 = pnand %p477_p0, %p188_p2 }
   0x6   : > { %p231_p4 = scmp.lt.s32.totalorder (!%p189_p3), %s535_s12, 15  ;;  %v545_v0 = vmov (!%p189_p3), 0.0   ;;  %vm546_vm0 = vmmov (!%p189_p3), 0   ;;  %vm278_vm1 = vcmask (!%p189_p3), 130048   ;;  %vm330_vm2 = vcmask (!%p189_p3), 1041408  }
   0x7   : > { %192 = sbr.rel (%p189_p3) target bundleno = 260 (0x104), region = 28  ;;  %267 = vst [vmem:[#allocation2] sm:$0x3] (!%p189_p3), %v545_v0  ;;  %488 = vmatprep.subr.bf16.mxu0 (!%p189_p3), %v545_v0  ;;  %490 = vmatprep.mubr.msk.bf16.mxu0 (!%p189_p3), %vm546_vm0, %v545_v0  ;;  %vm346_vm3 = vcmask (!%p189_p3), 1040384  }
   0xe   : > { %s621_s12 = smov (!%p231_p4, %s535_s12), 15  ;;  %v268_v3 = vld [vmem:[#allocation2] sm:$0x3] }
   0xf   : > { %s485_s16 = sshll.u32 %s621_s12, 3  ;;  %s239_s22 = scalar_lea.vmem %s612_s0, %s621_s12 }
  0x10   : > { %s248_s19 = scalar_lea.vmem %s613_s1, %s485_s16  ;;  %v269_v2 = vld [vmem:[%s239_s22] sm:$0x1]  ;;  %s255_s25 = scalar_lea.vmem %s614_s2, %s621_s12 }
  0x11   : > { %v520_v1 = vld [vmem:[%s248_s19] sm:$0xff]   ;;  %s480_s26 = sshll.u32 %s621_s12, 1 }
  0x12   : > { %489 = vmatpush3.bf16.msra.mxu0 %v520_v1  ;;  %s260_s29 = scalar_lea.vmem %s615_s3, %s480_s26 }
  0x15   : > { %491 = vmatmul.mubr.msk.bf16.vlgmr.msra.gmra.mrb[0].mxu0 %vm278_vm1, %v269_v2 }
  0xe8   : > { %v316_v4 = vpop.f32.mrb[0].mxu0 }
  0xe9   : > { %v322_v5 = vadd.f32 %v316_v4, %v268_v3  ;;  %v492_v6 = vpop.f32.mrb[1].mxu0 }
  0xea   : > { %v319_v7 = vpop.f32.mrb[2].mxu0 }
  0xeb   : > { %323 = vst [vmem:[#allocation2] sm:$0x3] %v322_v5  ;;  %v493_v8 = vpop.f32.mrb[3].mxu0 }
  0xf2   : > { %v327_v9 = vld [vmem:[#allocation2] sm:$0x3] }
  0xf3   : > { %v328_v10 = vpack.c.bf16 %v327_v9, %v327_v9  ;;  %v331_v11 = vsel %vm330_vm2, %v327_v9, 0.0  ;;  %v338_v12 = vmul.f32 %v327_v9, %v327_v9 }
  0xf4   : > { %v332_v13 = vrot.slane %v331_v11, 4 }
  0xf5   : > { %329 = vst [vmem:[%s255_s25] sm:$0x1] %v328_v10  ;;  %v339_v14 = vsel %vm330_vm2, %v338_v12, 0.0 }
  0xf6   : > { %v333_v15 = vadd.f32 %v332_v13, %v331_v11  ;;  %v340_v16 = vrot.slane %v339_v14, 4 }
  0xf8   : > { %v334_v17 = vrot.slane %v333_v15, 2  ;;  %v341_v18 = vadd.f32 %v340_v16, %v339_v14 }
  0xfa   : > { %v335_v19 = vadd.f32 %v334_v17, %v333_v15  ;;  %v342_v20 = vrot.slane %v341_v18, 2 }
  0xfc   : > { %v336_v21 = vrot.slane %v335_v19, 1  ;;  %v343_v22 = vadd.f32 %v342_v20, %v341_v18 }
  0xfe   : > { %v344_v23 = vrot.slane %v343_v22, 1  ;;  %v337_v24 = vadd.f32 %v336_v21, %v335_v19 }
 0x100   : > { %v345_v25 = vadd.f32 %v344_v23, %v343_v22 }
 0x102   : > { %v347_v26 = vsel %vm346_vm3, %v337_v24, %v345_v25 }
 0x103   : > { %348 = vst [vmem:[%s260_s29] sm:$0x3] %v347_v26 }
 0x104 PF: > { %s14_s14 = sadd.s32 1, %s543_s14   ;;  %s616_s12 = smov %s539_s13 }
 0x105   : > { %p11_p5 = scmp.ge.s32.totalorder %s14_s14, 18   ;;  %s617_s13 = smov %s619_s15 }
 0x107   :  { %13 = sbr.rel (!%p11_p5) target bundleno = 2 (0x2), region = 81 }

// kernel: generator_forward.12
= control target key start
LH: loop header
LB: loop body
LE: loop exit
PB: predicated region body
PF: predicated region fallthrough
CT: control target
= control target key end

     0   :  { %s462_s12 = smov 0   ;;  %s464_s13 = smov 0   ;;  %s501_s0 = inlined_call_operand.vmem [shape: bf16[4,32,128], index: 0, kind: input, shape index: {}]   ;;  %s502_s1 = inlined_call_operand.vmem [shape: f32[1,128], index: 1, kind: input, shape index: {}]   ;;  %s503_s2 = inlined_call_operand.vmem [shape: f32[1,128], index: 2, kind: input, shape index: {}]   ;;  %s504_s3 = inlined_call_operand.vmem [shape: bf16[4,32,128], index: 3, kind: output, shape index: {}]  }
   0x1   :  { %s466_s14 = smov 0  }
   0x2 LB: > { %s25_s15 = sadd.s32 1, %s436_s13  ;;  %p355_p0 = scmp.ge.s32.totalorder %s440_s14, 1  ;;  %s440_s14 = sphi %s466_s14, %s13_s14   ;;  %s436_s13 = sphi %s464_s13, %s506_s13   ;;  %s432_s12 = sphi %s462_s12, %s505_s12  }
   0x3   : > { %p27_p1 = scmp.ge.s32.totalorder %s25_s15, 4  ;;  %p158_p2 = scmp.lt.s32.totalorder %s440_s14, 5 }
   0x5   : > { %s508_s15 = smov (%p27_p1, %s25_s15), 0  ;;  %p159_p3 = pnand %p355_p0, %p158_p2 }
   0x6   : > { %p191_p4 = scmp.lt.s32.totalorder (!%p159_p3), %s432_s12, 3  ;;  %v360_v2 = vld [vmem:[%s502_s1] ss:$0 sm:$0xff] (!%p159_p3) }
   0x7   : > { %162 = sbr.rel (%p159_p3) target bundleno = 29 (0x1d), region = 32  ;;  %v361_v7 = vld [vmem:[%s503_s2] ss:$0 sm:$0xff] (!%p159_p3) }
   0xe   : > { %s510_s12 = smov (!%p191_p4, %s432_s12), 3 }
   0xf   : > { %s368_s16 = sshll.u32 %s510_s12, 4 }
  0x10   : > { %s198_s19 = scalar_lea.vmem %s501_s0, %s368_s16  ;;  %s208_s26 = scalar_lea.vmem %s504_s3, %s368_s16 }
  0x11   : > { %v375_v0 = vld [vmem:[%s198_s19] sm:$0xff]   ;;  %v392_v1 = vld [vmem:[%s198_s19 + $0x8] sm:$0xff]  }
  0x12   : > { %v376_v3 = vunpack.c.l.bf16 %v375_v0  ;;  %v377_v4 = vunpack.c.h.bf16 %v375_v0  ;;  %v380_v5 = vunpack.c.l.bf16 %v392_v1  ;;  %v381_v6 = vunpack.c.h.bf16 %v392_v1 }
  0x14   : > { %v225_v8 = vmul.f32 %v376_v3, %v360_v2  ;;  %v226_v9 = vmul.f32 %v377_v4, %v360_v2  ;;  %v227_v10 = vmul.f32 %v380_v5, %v360_v2  ;;  %v228_v11 = vmul.f32 %v381_v6, %v360_v2 }
  0x16   : > { %v236_v12 = vadd.f32 %v361_v7, %v225_v8  ;;  %v237_v13 = vadd.f32 %v361_v7, %v226_v9  ;;  %v238_v14 = vadd.f32 %v361_v7, %v227_v10  ;;  %v239_v15 = vadd.f32 %v361_v7, %v228_v11 }
  0x18   : > { %v240_v16 = vmax.f32 %v236_v12, 0.0  ;;  %v241_v17 = vmax.f32 %v237_v13, 0.0  ;;  %v242_v18 = vmax.f32 %v238_v14, 0.0  ;;  %v243_v19 = vmax.f32 %v239_v15, 0.0 }
  0x1a   : > { %v385_v20 = vpack.c.bf16 %v241_v17, %v240_v16  ;;  %v390_v21 = vpack.c.bf16 %v243_v19, %v242_v18 }
  0x1c   : > { %386 = vst [vmem:[%s208_s26] sm:$0xff] %v385_v20   ;;  %393 = vst [vmem:[%s208_s26 + $0x8] sm:$0xff] %v390_v21  }
  0x1d PF: > { %s13_s14 = sadd.s32 1, %s440_s14   ;;  %s505_s12 = smov %s436_s13 }
  0x1e   : > { %p10_p5 = scmp.ge.s32.totalorder %s13_s14, 6   ;;  %s506_s13 = smov %s508_s15 }
  0x20   :  { %12 = sbr.rel (!%p10_p5) target bundleno = 2 (0x2), region = 62 }

// kernel: generator_forward.11
= control target key start
LH: loop header
LB: loop body
LE: loop exit
PB: predicated region body
PF: predicated region fallthrough
CT: control target
= control target key end

     0   :  { %s900_s12 = smov 0   ;;  %s902_s13 = smov 0   ;;  %s963_s0 = inlined_call_operand.vmem [shape: bf16[4,32,256], index: 0, kind: input, shape index: {}]   ;;  %s964_s1 = inlined_call_operand.vmem [shape: bf16[4,256,128], index: 1, kind: input, shape index: {}]   ;;  %s965_s2 = inlined_call_operand.vmem [shape: bf16[4,32,128], index: 2, kind: output, shape index: {0}]   ;;  %s966_s3 = inlined_call_operand.vmem [shape: f32[4,2,128], index: 3, kind: output, shape index: {1}]  }
   0x1   :  { %s904_s14 = smov 0  }
   0x2 LB: > { %s33_s15 = sadd.s32 1, %s874_s13  ;;  %p714_p0 = scmp.ge.s32.totalorder %s878_s14, 1  ;;  %s878_s14 = sphi %s904_s14, %s14_s14   ;;  %s874_s13 = sphi %s902_s13, %s968_s13   ;;  %s870_s12 = sphi %s900_s12, %s967_s12  }
   0x3   : > { %p35_p1 = scmp.ge.s32.totalorder %s33_s15, 4  ;;  %p195_p2 = scmp.lt.s32.totalorder %s878_s14, 5 }
   0x5   : > { %s970_s15 = smov (%p35_p1, %s33_s15), 0  ;;  %p196_p3 = pnand %p714_p0, %p195_p2 }
   0x6   : > { %p248_p4 = scmp.lt.s32.totalorder (!%p196_p3), %s870_s12, 3  ;;  %vm559_vm0 = vcmask (!%p196_p3), 1040384  }
   0x7   : > { %199 = sbr.rel (%p196_p3) target bundleno = 289 (0x121), region = 28 }
   0xe   : > { %s972_s12 = smov (!%p248_p4, %s870_s12), 3 }
   0xf   : > { %s749_s16 = sshll.u32 %s972_s12, 7  ;;  %s748_s20 = sshll.u32 %s972_s12, 5 }
  0x10   : > { %s924_s19 = scalar_lea.vmem %s964_s1, %s749_s16  ;;  %s259_s23 = scalar_lea.vmem %s963_s0, %s748_s20 }
  0x11   : > { %v834_v0 = vld [vmem:[%s924_s19 + $0x40] sm:$0xff]   ;;  %v836_v2 = vld [vmem:[%s924_s19 + $0x48] sm:$0xff]   ;;  %v838_v4 = vld [vmem:[%s924_s19 + $0x50] sm:$0xff]   ;;  %s750_s24 = sshll.u32 %s972_s12, 4  ;;  %s721_s28 = sshll.u32 %s972_s12, 1 }
  0x12   : > { %v835_v1 = vld [vmem:[%s924_s19] sm:$0xff]   ;;  %766 = vmatprep.subr.bf16.mxu0 %v834_v0  ;;  %794 = vmatprep.subr.bf16.mxu1 %v834_v0  ;;  %v837_v3 = vld [vmem:[%s924_s19 + $0x8] sm:$0xff]   ;;  %v839_v5 = vld [vmem:[%s924_s19 + $0x10] sm:$0xff]   ;;  %s280_s27 = scalar_lea.vmem %s965_s2, %s750_s24  ;;  %s286_s4 = scalar_lea.vmem %s966_s3, %s721_s28 }
  0x13   : > { %767 = vmatpush3.bf16.msra.mxu0 %v835_v1  ;;  %802 = vmatpush3.bf16.msra.mxu1 %v835_v1  ;;  %v840_v6 = vld [vmem:[%s924_s19 + $0x58] sm:$0xff]   ;;  %v842_v8 = vld [vmem:[%s924_s19 + $0x60] sm:$0xff]   ;;  %v844_v10 = vld [vmem:[%s924_s19 + $0x68] sm:$0xff]  }
  0x14   : > { %768 = vmatprep.subr.bf16.mxu0 %v836_v2  ;;  %795 = vmatprep.subr.bf16.mxu1 %v836_v2  ;;  %v841_v7 = vld [vmem:[%s924_s19 + $0x18] sm:$0xff]   ;;  %v843_v9 = vld [vmem:[%s924_s19 + $0x20] sm:$0xff]   ;;  %v845_v13 = vld [vmem:[%s924_s19 + $0x28] sm:$0xff]  }
  0x15   : > { %v852_v11 = vld [vmem:[%s259_s23 + $0x4] ss:$8 sps:$4 sm:$0xff]   ;;  %v855_v12 = vld [vmem:[%s259_s23 + $0x14] ss:$8 sps:$4 sm:$0xff]   ;;  %v850_v18 = vld [vmem:[%s259_s23] ss:$8 sps:$4 sm:$0xff]  }
  0x16   : > { %v846_v14 = vld [vmem:[%s924_s19 + $0x70] sm:$0xff]   ;;  %485 = vmatprep.mubr.bf16.mxu0 %v852_v11  ;;  %493 = vmatprep.mubr.bf16.mxu1 %v855_v12  ;;  %v848_v16 = vld [vmem:[%s924_s19 + $0x78] sm:$0xff]  }
  0x17   : > { %769 = vmatpush3.bf16.msra.mxu0 %v837_v3  ;;  %803 = vmatpush3.bf16.msra.mxu1 %v837_v3  ;;  %v847_v15 = vld [vmem:[%s924_s19 + $0x30] sm:$0xff]   ;;  %v849_v17 = vld [vmem:[%s924_s19 + $0x38] sm:$0xff]  }
  0x18   : > { %770 = vmatprep.subr.bf16.mxu0 %v838_v4  ;;  %796 = vmatprep.subr.bf16.mxu1 %v838_v4  ;;  %v853_v19 = vld [vmem:[%s259_s23 + $0x10] ss:$8 sps:$4 sm:$0xff]  }
  0x1b   : > { %771 = vmatpush3.bf16.msra.mxu0 %v839_v5  ;;  %804 = vmatpush3.bf16.msra.mxu1 %v839_v5 }
  0x1c   : > { %772 = vmatprep.subr.bf16.mxu0 %v840_v6  ;;  %797 = vmatprep.subr.bf16.mxu1 %v840_v6 }
  0x1f   : > { %773 = vmatpush3.bf16.msra.mxu0 %v841_v7  ;;  %805 = vmatpush3.bf16.msra.mxu1 %v841_v7 }
  0x20   : > { %774 = vmatprep.subr.bf16.mxu0 %v842_v8  ;;  %798 = vmatprep.subr.bf16.mxu1 %v842_v8 }
  0x23   : > { %775 = vmatpush3.bf16.msra.mxu0 %v843_v9  ;;  %806 = vmatpush3.bf16.msra.mxu1 %v843_v9 }
  0x24   : > { %776 = vmatprep.subr.bf16.mxu0 %v844_v10  ;;  %799 = vmatprep.subr.bf16.mxu1 %v844_v10 }
  0x27   : > { %777 = vmatpush3.bf16.msra.mxu0 %v845_v13  ;;  %807 = vmatpush3.bf16.msra.mxu1 %v845_v13 }
  0x28   : > { %778 = vmatprep.subr.bf16.mxu0 %v846_v14  ;;  %800 = vmatprep.subr.bf16.mxu1 %v846_v14 }
  0x2b   : > { %779 = vmatpush3.bf16.msra.mxu0 %v847_v15  ;;  %808 = vmatpush3.bf16.msra.mxu1 %v847_v15 }
  0x2c   : > { %780 = vmatprep.subr.bf16.mxu0 %v848_v16  ;;  %801 = vmatprep.subr.bf16.mxu1 %v848_v16 }
  0x2f   : > { %781 = vmatpush3.bf16.msra.mxu0 %v849_v17  ;;  %809 = vmatpush3.bf16.msra.mxu1 %v849_v17 }
  0x32   : > { %486 = vmatmul.mubr.bf16.vlgmr.msra.gmra.mrb[0].mxu0 %v850_v18  ;;  %494 = vmatmul.mubr.bf16.vlgmr.msra.gmra.mrb[0].mxu1 %v853_v19 }
 0x105   : > { %v782_v20 = vpop.f32.mrb[0].mxu0  ;;  %v788_v21 = vpop.f32.mrb[0].mxu1 }
 0x106   : > { %v783_v22 = vpop.f32.mrb[1].mxu0  ;;  %v789_v23 = vpop.f32.mrb[1].mxu1 }
 0x107   : > { %v784_v24 = vadd.f32 %v783_v22, %v782_v20  ;;  %v785_v25 = vpop.f32.mrb[2].mxu0  ;;  %v790_v26 = vadd.f32 %v789_v23, %v788_v21  ;;  %v791_v27 = vpop.f32.mrb[2].mxu1 }
 0x108   : > { %v786_v28 = vpop.f32.mrb[3].mxu0  ;;  %v792_v29 = vpop.f32.mrb[3].mxu1 }
 0x109   : > { %v787_v30 = vadd.f32 %v786_v28, %v785_v25  ;;  %v793_v31 = vadd.f32 %v792_v29, %v791_v27  ;;  %v546_v32 = vmul.f32 %v784_v24, %v784_v24  ;;  %v548_v33 = vmul.f32 %v790_v26, %v790_v26 }
 0x10b   : > { %v758_v34 = vpack.c.bf16 %v787_v30, %v784_v24  ;;  %v537_v35 = vadd.f32 %v787_v30, %v784_v24  ;;  %v547_v36 = vmul.f32 %v787_v30, %v787_v30  ;;  %v763_v37 = vpack.c.bf16 %v793_v31, %v790_v26 }
 0x10c   : > { %v549_v41 = vmul.f32 %v793_v31, %v793_v31 }
 0x10d   : > { %759 = vst [vmem:[%s280_s27] sm:$0xff] %v758_v34   ;;  %v550_v38 = vadd.f32 %v547_v36, %v546_v32  ;;  %765 = vst [vmem:[%s280_s27 + $0x8] sm:$0xff] %v763_v37   ;;  %v538_v39 = vadd.f32 %v790_v26, %v537_v35 }
 0x10f   : > { %v539_v40 = vadd.f32 %v793_v31, %v538_v39  ;;  %v551_v42 = vadd.f32 %v550_v38, %v548_v33 }
 0x111   : > { %v540_v43 = vrot.slane %v539_v40, 4  ;;  %v552_v44 = vadd.f32 %v551_v42, %v549_v41 }
 0x113   : > { %v541_v45 = vadd.f32 %v540_v43, %v539_v40  ;;  %v553_v46 = vrot.slane %v552_v44, 4 }
 0x115   : > { %v542_v47 = vrot.slane %v541_v45, 2  ;;  %v554_v48 = vadd.f32 %v553_v46, %v552_v44 }
 0x117   : > { %v543_v49 = vadd.f32 %v542_v47, %v541_v45  ;;  %v555_v50 = vrot.slane %v554_v48, 2 }
 0x119   : > { %v544_v51 = vrot.slane %v543_v49, 1  ;;  %v556_v52 = vadd.f32 %v555_v50, %v554_v48 }
 0x11b   : > { %v557_v53 = vrot.slane %v556_v52, 1  ;;  %v545_v54 = vadd.f32 %v544_v51, %v543_v49 }
 0x11d   : > { %v558_v55 = vadd.f32 %v557_v53, %v556_v52 }
 0x11f   : > { %v560_v56 = vsel %vm559_vm0, %v545_v54, %v558_v55 }
 0x120   : > { %561 = vst [vmem:[%s286_s4] sm:$0x3] %v560_v56 }
 0x121 PF: > { %s14_s14 = sadd.s32 1, %s878_s14   ;;  %s967_s12 = smov %s874_s13 }
 0x122   : > { %p11_p5 = scmp.ge.s32.totalorder %s14_s14, 6   ;;  %s968_s13 = smov %s970_s15 }
 0x124   :  { %13 = sbr.rel (!%p11_p5) target bundleno = 2 (0x2), region = 81 }

// kernel: generator_forward.14
= control target key start
LH: loop header
LB: loop body
LE: loop exit
PB: predicated region body
PF: predicated region fallthrough
CT: control target
= control target key end

     0   :  { %s672_s12 = smov 0   ;;  %s674_s13 = smov 0   ;;  %s774_s0 = inlined_call_operand.vmem [shape: bf16[4,128,128], index: 0, kind: input, shape index: {}]   ;;  %s775_s1 = inlined_call_operand.vmem [shape: f32[1,128], index: 1, kind: input, shape index: {}]   ;;  %s776_s2 = inlined_call_operand.vmem [shape: f32[1,128], index: 2, kind: input, shape index: {}]   ;;  %s777_s3 = inlined_call_operand.vmem [shape: bf16[4,128,128], index: 3, kind: output, shape index: {}]  }
   0x1   :  { %s676_s14 = smov 0  }
   0x2 LB: > { %s25_s15 = sadd.s32 1, %s646_s13  ;;  %p475_p0 = scmp.ge.s32.totalorder %s650_s14, 1  ;;  %s650_s14 = sphi %s676_s14, %s13_s14   ;;  %s646_s13 = sphi %s674_s13, %s779_s13   ;;  %s642_s12 = sphi %s672_s12, %s778_s12  }
   0x3   : > { %p27_p1 = scmp.ge.s32.totalorder %s25_s15, 4  ;;  %p158_p2 = scmp.lt.s32.totalorder %s650_s14, 5 }
   0x5   : > { %s781_s15 = smov (%p27_p1, %s25_s15), 0  ;;  %p159_p3 = pnand %p475_p0, %p158_p2 }
   0x6   : > { %p191_p4 = scmp.lt.s32.totalorder (!%p159_p3), %s642_s12, 3  ;;  %v703_v0 = vld [vmem:[%s775_s1] ss:$0 sm:$0xff] (!%p159_p3) }
   0x7   : > { %162 = sbr.rel (%p159_p3) target bundleno = 40 (0x28), region = 32  ;;  %v712_v9 = vld [vmem:[%s776_s2] ss:$0 sm:$0xff] (!%p159_p3) }
   0xe   : > { %s783_s12 = smov (!%p191_p4, %s642_s12), 3 }
   0xf   : > { %s500_s16 = sshll.u32 %s783_s12, 6 }
  0x10   : > { %s698_s19 = scalar_lea.vmem %s774_s0, %s500_s16  ;;  %s737_s26 = scalar_lea.vmem %s777_s3, %s500_s16 }
  0x11   : > { %v519_v1 = vld [vmem:[%s698_s19] sm:$0xff]   ;;  %v590_v2 = vld [vmem:[%s698_s19 + $0x8] sm:$0xff]   ;;  %v591_v3 = vld [vmem:[%s698_s19 + $0x10] sm:$0xff]  }
  0x12   : > { %v520_v4 = vunpack.c.l.bf16 %v519_v1  ;;  %v521_v5 = vunpack.c.h.bf16 %v519_v1  ;;  %v524_v6 = vunpack.c.l.bf16 %v590_v2  ;;  %v525_v7 = vunpack.c.h.bf16 %v590_v2  ;;  %v592_v8 = vld [vmem:[%s698_s19 + $0x18] sm:$0xff]   ;;  %v593_v30 = vld [vmem:[%s698_s19 + $0x20] sm:$0xff]   ;;  %v594_v35 = vld [vmem:[%s698_s19 + $0x28] sm:$0xff]  }
  0x13   : > { %v528_v10 = vunpack.c.l.bf16 %v591_v3  ;;  %v529_v11 = vunpack.c.h.bf16 %v591_v3  ;;  %v532_v12 = vunpack.c.l.bf16 %v592_v8  ;;  %v533_v13 = vunpack.c.h.bf16 %v592_v8  ;;  %v595_v40 = vld [vmem:[%s698_s19 + $0x30] sm:$0xff]   ;;  %v596_v45 = vld [vmem:[%s698_s19 + $0x38] sm:$0xff]  }
  0x14   : > { %v249_v14 = vmul.f32 %v520_v4, %v703_v0  ;;  %v250_v15 = vmul.f32 %v521_v5, %v703_v0  ;;  %v251_v16 = vmul.f32 %v524_v6, %v703_v0  ;;  %v252_v17 = vmul.f32 %v525_v7, %v703_v0 }
  0x15   : > { %v253_v18 = vmul.f32 %v528_v10, %v703_v0  ;;  %v254_v19 = vmul.f32 %v529_v11, %v703_v0  ;;  %v255_v20 = vmul.f32 %v532_v12, %v703_v0  ;;  %v256_v21 = vmul.f32 %v533_v13, %v703_v0 }
  0x16   : > { %v272_v22 = vadd.f32 %v712_v9, %v249_v14  ;;  %v273_v23 = vadd.f32 %v712_v9, %v250_v15  ;;  %v274_v24 = vadd.f32 %v712_v9, %v251_v16  ;;  %v275_v25 = vadd.f32 %v712_v9, %v252_v17 }
  0x17   : > { %v276_v26 = vadd.f32 %v712_v9, %v253_v18  ;;  %v277_v27 = vadd.f32 %v712_v9, %v254_v19  ;;  %v278_v28 = vadd.f32 %v712_v9, %v255_v20  ;;  %v279_v29 = vadd.f32 %v712_v9, %v256_v21 }
  0x18   : > { %v288_v31 = vmax.f32 %v272_v22, 0.0  ;;  %v289_v32 = vmax.f32 %v273_v23, 0.0  ;;  %v290_v33 = vmax.f32 %v274_v24, 0.0  ;;  %v291_v34 = vmax.f32 %v275_v25, 0.0 }
  0x19   : > { %v292_v36 = vmax.f32 %v276_v26, 0.0  ;;  %v293_v37 = vmax.f32 %v277_v27, 0.0  ;;  %v294_v38 = vmax.f32 %v278_v28, 0.0  ;;  %v295_v39 = vmax.f32 %v279_v29, 0.0 }
  0x1a   : > { %v553_v41 = vpack.c.bf16 %v289_v32, %v288_v31  ;;  %v558_v42 = vpack.c.bf16 %v291_v34, %v290_v33  ;;  %v536_v43 = vunpack.c.l.bf16 %v593_v30  ;;  %v537_v44 = vunpack.c.h.bf16 %v593_v30 }
  0x1b   : > { %v563_v46 = vpack.c.bf16 %v293_v37, %v292_v36  ;;  %v568_v47 = vpack.c.bf16 %v295_v39, %v294_v38  ;;  %v540_v48 = vunpack.c.l.bf16 %v594_v35  ;;  %v541_v49 = vunpack.c.h.bf16 %v594_v35 }
  0x1c   : > { %554 = vst [vmem:[%s737_s26] sm:$0xff] %v553_v41   ;;  %597 = vst [vmem:[%s737_s26 + $0x8] sm:$0xff] %v558_v42   ;;  %v257_v50 = vmul.f32 %v536_v43, %v703_v0  ;;  %v258_v51 = vmul.f32 %v537_v44, %v703_v0  ;;  %v544_v52 = vunpack.c.l.bf16 %v595_v40  ;;  %v545_v53 = vunpack.c.h.bf16 %v595_v40 }
  0x1d   : > { %598 = vst [vmem:[%s737_s26 + $0x10] sm:$0xff] %v563_v46   ;;  %599 = vst [vmem:[%s737_s26 + $0x18] sm:$0xff] %v568_v47   ;;  %v259_v54 = vmul.f32 %v540_v48, %v703_v0  ;;  %v260_v55 = vmul.f32 %v541_v49, %v703_v0  ;;  %v548_v56 = vunpack.c.l.bf16 %v596_v45  ;;  %v549_v57 = vunpack.c.h.bf16 %v596_v45 }
  0x1e   : > { %v280_v58 = vadd.f32 %v712_v9, %v257_v50  ;;  %v281_v59 = vadd.f32 %v712_v9, %v258_v51  ;;  %v261_v60 = vmul.f32 %v544_v52, %v703_v0  ;;  %v262_v61 = vmul.f32 %v545_v53, %v703_v0 }
  0x1f   : > { %v282_v62 = vadd.f32 %v712_v9, %v259_v54  ;;  %v283_v63 = vadd.f32 %v712_v9, %v260_v55  ;;  %v263_v1 = vmul.f32 %v548_v56, %v703_v0  ;;  %v264_v2 = vmul.f32 %v549_v57, %v703_v0 }
  0x20   : > { %v296_v3 = vmax.f32 %v280_v58, 0.0  ;;  %v297_v4 = vmax.f32 %v281_v59, 0.0  ;;  %v284_v5 = vadd.f32 %v712_v9, %v261_v60  ;;  %v285_v6 = vadd.f32 %v712_v9, %v262_v61 }
  0x21   : > { %v298_v7 = vmax.f32 %v282_v62, 0.0  ;;  %v299_v8 = vmax.f32 %v283_v63, 0.0  ;;  %v286_v10 = vadd.f32 %v712_v9, %v263_v1  ;;  %v287_v11 = vadd.f32 %v712_v9, %v264_v2 }
  0x22   : > { %v573_v12 = vpack.c.bf16 %v297_v4, %v296_v3  ;;  %v300_v13 = vmax.f32 %v284_v5, 0.0  ;;  %v301_v14 = vmax.f32 %v285_v6, 0.0 }
  0x23   : > { %v578_v15 = vpack.c.bf16 %v299_v8, %v298_v7  ;;  %v302_v0 = vmax.f32 %v286_v10, 0.0  ;;  %v303_v16 = vmax.f32 %v287_v11, 0.0 }
  0x24   : > { %600 = vst [vmem:[%s737_s26 + $0x20] sm:$0xff] %v573_v12   ;;  %v583_v17 = vpack.c.bf16 %v301_v14, %v300_v13 }
  0x25   : > { %601 = vst [vmem:[%s737_s26 + $0x28] sm:$0xff] %v578_v15   ;;  %v588_v18 = vpack.c.bf16 %v303_v16, %v302_v0 }
  0x26   : > { %602 = vst [vmem:[%s737_s26 + $0x30] sm:$0xff] %v583_v17  }
  0x27   : > { %603 = vst [vmem:[%s737_s26 + $0x38] sm:$0xff] %v588_v18  }
  0x28 PF: > { %s13_s14 = sadd.s32 1, %s650_s14   ;;  %s778_s12 = smov %s646_s13 }
  0x29   : > { %p10_p5 = scmp.ge.s32.totalorder %s13_s14, 6   ;;  %s779_s13 = smov %s781_s15 }
  0x2b   :  { %12 = sbr.rel (!%p10_p5) target bundleno = 2 (0x2), region = 62 }

// kernel: generator_forward.13
= control target key start
LH: loop header
LB: loop body
LE: loop exit
PB: predicated region body
PF: predicated region fallthrough
CT: control target
= control target key end

     0   :  { %s1139_s12 = smov 0   ;;  %s1141_s13 = smov 0   ;;  %s1217_s0 = inlined_call_operand.vmem [shape: bf16[4,128,128], index: 0, kind: input, shape index: {}]   ;;  %s1218_s1 = inlined_call_operand.vmem [shape: bf16[4,128,128], index: 1, kind: input, shape index: {}]   ;;  %s1219_s2 = inlined_call_operand.vmem [shape: bf16[4,128,128], index: 2, kind: output, shape index: {0}]   ;;  %s1220_s3 = inlined_call_operand.vmem [shape: f32[4,2,128], index: 3, kind: output, shape index: {1}]  }
   0x1   :  { %s1143_s14 = smov 0  }
   0x2 LB: > { %s33_s15 = sadd.s32 1, %s1113_s13  ;;  %p883_p0 = scmp.ge.s32.totalorder %s1117_s14, 1  ;;  %s1117_s14 = sphi %s1143_s14, %s14_s14   ;;  %s1113_s13 = sphi %s1141_s13, %s1222_s13   ;;  %s1109_s12 = sphi %s1139_s12, %s1221_s12  }
   0x3   : > { %p35_p1 = scmp.ge.s32.totalorder %s33_s15, 4  ;;  %p192_p2 = scmp.lt.s32.totalorder %s1117_s14, 5 }
   0x5   : > { %s1224_s15 = smov (%p35_p1, %s33_s15), 0  ;;  %p193_p3 = pnand %p883_p0, %p192_p2 }
   0x6   : > { %p242_p4 = scmp.lt.s32.totalorder (!%p193_p3), %s1109_s12, 3  ;;  %vm731_vm0 = vcmask (!%p193_p3), 1040384  }
   0x7   : > { %196 = sbr.rel (%p193_p3) target bundleno = 311 (0x137), region = 28 }
   0xe   : > { %s1226_s12 = smov (!%p242_p4, %s1109_s12), 3 }
   0xf   : > { %s1160_s16 = sshll.u32 %s1226_s12, 6  ;;  %s890_s26 = sshll.u32 %s1226_s12, 1 }
  0x10   : > { %s1166_s19 = scalar_lea.vmem %s1218_s1, %s1160_s16  ;;  %s1175_s22 = scalar_lea.vmem %s1217_s0, %s1160_s16 }
  0x11   : > { %v1079_v0 = vld [vmem:[%s1166_s19] sm:$0xff]   ;;  %v1080_v1 = vld [vmem:[%s1166_s19 + $0x8] sm:$0xff]   ;;  %v1081_v2 = vld [vmem:[%s1166_s19 + $0x10] sm:$0xff]   ;;  %s1194_s25 = scalar_lea.vmem %s1219_s2, %s1160_s16  ;;  %s278_s29 = scalar_lea.vmem %s1220_s3, %s890_s26 }
  0x12   : > { %1007 = vmatprep.subr.bf16.mxu0 %v1079_v0  ;;  %1039 = vmatprep.subr.bf16.mxu1 %v1079_v0  ;;  %v1082_v3 = vld [vmem:[%s1166_s19 + $0x18] sm:$0xff]   ;;  %v1087_v4 = vld [vmem:[%s1175_s22] sm:$0xff]   ;;  %v1084_v7 = vld [vmem:[%s1166_s19 + $0x28] sm:$0xff]  }
  0x13   : > { %1008 = vmatpush3.bf16.msra.mxu0 %v1079_v0  ;;  %1047 = vmatpush3.bf16.msra.mxu1 %v1079_v0  ;;  %v1083_v5 = vld [vmem:[%s1166_s19 + $0x20] sm:$0xff]   ;;  %v1085_v8 = vld [vmem:[%s1166_s19 + $0x30] sm:$0xff]   ;;  %v1086_v9 = vld [vmem:[%s1166_s19 + $0x38] sm:$0xff]  }
  0x14   : > { %1009 = vmatprep.subr.bf16.mxu0 %v1080_v1  ;;  %1040 = vmatprep.subr.bf16.mxu1 %v1080_v1  ;;  %v1091_v6 = vld [vmem:[%s1175_s22 + $0x20] sm:$0xff]   ;;  %v1088_v10 = vld [vmem:[%s1175_s22 + $0x8] sm:$0xff]   ;;  %v1089_v12 = vld [vmem:[%s1175_s22 + $0x10] sm:$0xff]  }
  0x15   : > { %1023 = vmatprep.mubr.bf16.mxu0 %v1087_v4  ;;  %1031 = vmatprep.mubr.bf16.mxu1 %v1091_v6  ;;  %v1092_v11 = vld [vmem:[%s1175_s22 + $0x28] sm:$0xff]   ;;  %v1093_v13 = vld [vmem:[%s1175_s22 + $0x30] sm:$0xff]   ;;  %v1090_v14 = vld [vmem:[%s1175_s22 + $0x18] sm:$0xff]  }
  0x16   : > { %v1094_v15 = vld [vmem:[%s1175_s22 + $0x38] sm:$0xff]  }
  0x17   : > { %1010 = vmatpush3.bf16.msra.mxu0 %v1080_v1  ;;  %1048 = vmatpush3.bf16.msra.mxu1 %v1080_v1 }
  0x18   : > { %1011 = vmatprep.subr.bf16.mxu0 %v1081_v2  ;;  %1041 = vmatprep.subr.bf16.mxu1 %v1081_v2 }
  0x1b   : > { %1012 = vmatpush3.bf16.msra.mxu0 %v1081_v2  ;;  %1049 = vmatpush3.bf16.msra.mxu1 %v1081_v2 }
  0x1c   : > { %1013 = vmatprep.subr.bf16.mxu0 %v1082_v3  ;;  %1042 = vmatprep.subr.bf16.mxu1 %v1082_v3 }
  0x1f   : > { %1014 = vmatpush3.bf16.msra.mxu0 %v1082_v3  ;;  %1050 = vmatpush3.bf16.msra.mxu1 %v1082_v3 }
  0x20   : > { %1015 = vmatprep.subr.bf16.mxu0 %v1083_v5  ;;  %1043 = vmatprep.subr.bf16.mxu1 %v1083_v5 }
  0x23   : > { %1016 = vmatpush3.bf16.msra.mxu0 %v1083_v5  ;;  %1051 = vmatpush3.bf16.msra.mxu1 %v1083_v5 }
  0x24   : > { %1017 = vmatprep.subr.bf16.mxu0 %v1084_v7  ;;  %1044 = vmatprep.subr.bf16.mxu1 %v1084_v7 }
  0x27   : > { %1018 = vmatpush3.bf16.msra.mxu0 %v1084_v7  ;;  %1052 = vmatpush3.bf16.msra.mxu1 %v1084_v7 }
  0x28   : > { %1019 = vmatprep.subr.bf16.mxu0 %v1085_v8  ;;  %1045 = vmatprep.subr.bf16.mxu1 %v1085_v8 }
  0x2b   : > { %1020 = vmatpush3.bf16.msra.mxu0 %v1085_v8  ;;  %1053 = vmatpush3.bf16.msra.mxu1 %v1085_v8 }
  0x2c   : > { %1021 = vmatprep.subr.bf16.mxu0 %v1086_v9  ;;  %1046 = vmatprep.subr.bf16.mxu1 %v1086_v9 }
  0x2f   : > { %1022 = vmatpush3.bf16.msra.mxu0 %v1086_v9  ;;  %1054 = vmatpush3.bf16.msra.mxu1 %v1086_v9 }
  0x32   : > { %1024 = vmatmul.mubr.bf16.vlgmr.msra.gmra.mrb[0].mxu0 %v1088_v10  ;;  %1032 = vmatmul.mubr.bf16.vlgmr.msra.gmra.mrb[0].mxu1 %v1092_v11 }
  0x33   : > { %1027 = vmatprep.mubr.bf16.mxu0 %v1089_v12  ;;  %1035 = vmatprep.mubr.bf16.mxu1 %v1093_v13 }
  0x3a   : > { %1028 = vmatmul.mubr.bf16.gmra.mrb[4].mxu0 %v1090_v14  ;;  %1036 = vmatmul.mubr.bf16.gmra.mrb[4].mxu1 %v1094_v15 }
 0x105   : > { %v1025_v16 = vpop.f32.mrb[0].mxu0  ;;  %v1033_v17 = vpop.f32.mrb[0].mxu1 }
 0x106   : > { %v479_v18 = vpop.f32.mrb[1].mxu0  ;;  %v511_v19 = vpop.f32.mrb[1].mxu1  ;;  %v696_v31 = vmul.f32 %v1025_v16, %v1025_v16  ;;  %v704_v3 = vmul.f32 %v1033_v17, %v1033_v17 }
 0x107   : > { %v1026_v20 = vpop.f32.mrb[2].mxu0  ;;  %v1034_v21 = vpop.f32.mrb[2].mxu1  ;;  %v694_v22 = vmul.f32 %v479_v18, %v479_v18  ;;  %v702_v61 = vmul.f32 %v511_v19, %v511_v19 }
 0x108   : > { %v952_v23 = vpack.c.bf16 %v1026_v20, %v1025_v16  ;;  %v482_v24 = vpop.f32.mrb[3].mxu0  ;;  %v972_v25 = vpack.c.bf16 %v1034_v21, %v1033_v17  ;;  %v514_v26 = vpop.f32.mrb[3].mxu1  ;;  %v697_v34 = vmul.f32 %v1026_v20, %v1026_v20  ;;  %v705_v6 = vmul.f32 %v1034_v21, %v1034_v21 }
 0x109   : > { %v947_v27 = vpack.c.bf16 %v482_v24, %v479_v18  ;;  %v673_v28 = vadd.f32 %v482_v24, %v479_v18  ;;  %v695_v29 = vmul.f32 %v482_v24, %v482_v24  ;;  %v967_v30 = vpack.c.bf16 %v514_v26, %v511_v19 }
 0x10a   : > { %984 = vst [vmem:[%s1194_s25 + $0x8] sm:$0xff] %v952_v23   ;;  %988 = vst [vmem:[%s1194_s25 + $0x28] sm:$0xff] %v972_v25   ;;  %v703_v2 = vmul.f32 %v514_v26, %v514_v26 }
 0x10b   : > { %948 = vst [vmem:[%s1194_s25] sm:$0xff] %v947_v27   ;;  %v674_v32 = vadd.f32 %v1025_v16, %v673_v28  ;;  %v710_v33 = vadd.f32 %v695_v29, %v694_v22  ;;  %987 = vst [vmem:[%s1194_s25 + $0x20] sm:$0xff] %v967_v30  }
 0x10d   : > { %v711_v35 = vadd.f32 %v710_v33, %v696_v31  ;;  %v1029_v36 = vpop.f32.mrb[4].mxu0  ;;  %v675_v37 = vadd.f32 %v1026_v20, %v674_v32  ;;  %v1037_v38 = vpop.f32.mrb[4].mxu1 }
 0x10e   : > { %v495_v39 = vpop.f32.mrb[5].mxu0  ;;  %v527_v40 = vpop.f32.mrb[5].mxu1  ;;  %v700_v55 = vmul.f32 %v1029_v36, %v1029_v36  ;;  %v708_v15 = vmul.f32 %v1037_v38, %v1037_v38 }
 0x10f   : > { %v676_v41 = vadd.f32 %v675_v37, %v495_v39  ;;  %v698_v42 = vmul.f32 %v495_v39, %v495_v39  ;;  %v712_v43 = vadd.f32 %v711_v35, %v697_v34  ;;  %v1030_v44 = vpop.f32.mrb[6].mxu0  ;;  %v1038_v45 = vpop.f32.mrb[6].mxu1  ;;  %v706_v9 = vmul.f32 %v527_v40, %v527_v40 }
 0x110   : > { %v962_v46 = vpack.c.bf16 %v1030_v44, %v1029_v36  ;;  %v498_v47 = vpop.f32.mrb[7].mxu0  ;;  %v982_v48 = vpack.c.bf16 %v1038_v45, %v1037_v38  ;;  %v530_v49 = vpop.f32.mrb[7].mxu1  ;;  %v701_v58 = vmul.f32 %v1030_v44, %v1030_v44 }
 0x111   : > { %v713_v50 = vadd.f32 %v712_v43, %v698_v42  ;;  %v957_v51 = vpack.c.bf16 %v498_v47, %v495_v39  ;;  %v677_v52 = vadd.f32 %v676_v41, %v498_v47  ;;  %v699_v53 = vmul.f32 %v498_v47, %v498_v47 }
 0x112   : > { %986 = vst [vmem:[%s1194_s25 + $0x18] sm:$0xff] %v962_v46   ;;  %990 = vst [vmem:[%s1194_s25 + $0x38] sm:$0xff] %v982_v48   ;;  %v977_v54 = vpack.c.bf16 %v530_v49, %v527_v40  ;;  %v707_v14 = vmul.f32 %v530_v49, %v530_v49 }
 0x113   : > { %985 = vst [vmem:[%s1194_s25 + $0x10] sm:$0xff] %v957_v51   ;;  %v678_v56 = vadd.f32 %v1029_v36, %v677_v52  ;;  %v714_v57 = vadd.f32 %v713_v50, %v699_v53 }
 0x114   : > { %989 = vst [vmem:[%s1194_s25 + $0x30] sm:$0xff] %v977_v54  }
 0x115   : > { %v715_v59 = vadd.f32 %v714_v57, %v700_v55  ;;  %v679_v60 = vadd.f32 %v1030_v44, %v678_v56 }
 0x117   : > { %v680_v62 = vadd.f32 %v679_v60, %v511_v19  ;;  %v716_v63 = vadd.f32 %v715_v59, %v701_v58  ;;  %v709_v19 = vmul.f32 %v1038_v45, %v1038_v45 }
 0x119   : > { %v717_v0 = vadd.f32 %v716_v63, %v702_v61  ;;  %v681_v1 = vadd.f32 %v680_v62, %v514_v26 }
 0x11b   : > { %v682_v4 = vadd.f32 %v1033_v17, %v681_v1  ;;  %v718_v5 = vadd.f32 %v717_v0, %v703_v2 }
 0x11d   : > { %v719_v7 = vadd.f32 %v718_v5, %v704_v3  ;;  %v683_v8 = vadd.f32 %v1034_v21, %v682_v4 }
 0x11f   : > { %v684_v10 = vadd.f32 %v683_v8, %v527_v40  ;;  %v720_v11 = vadd.f32 %v719_v7, %v705_v6 }
 0x121   : > { %v721_v12 = vadd.f32 %v720_v11, %v706_v9  ;;  %v685_v13 = vadd.f32 %v684_v10, %v530_v49 }
 0x123   : > { %v686_v16 = vadd.f32 %v1037_v38, %v685_v13  ;;  %v722_v18 = vadd.f32 %v721_v12, %v707_v14 }
 0x125   : > { %v687_v20 = vadd.f32 %v1038_v45, %v686_v16  ;;  %v723_v22 = vadd.f32 %v722_v18, %v708_v15 }
 0x127   : > { %v688_v23 = vrot.slane %v687_v20, 4  ;;  %v724_v24 = vadd.f32 %v723_v22, %v709_v19 }
 0x129   : > { %v689_v17 = vadd.f32 %v688_v23, %v687_v20  ;;  %v725_v25 = vrot.slane %v724_v24, 4 }
 0x12b   : > { %v690_v26 = vrot.slane %v689_v17, 2  ;;  %v726_v27 = vadd.f32 %v725_v25, %v724_v24 }
 0x12d   : > { %v691_v21 = vadd.f32 %v690_v26, %v689_v17  ;;  %v727_v28 = vrot.slane %v726_v27, 2 }
 0x12f   : > { %v692_v29 = vrot.slane %v691_v21, 1  ;;  %v728_v30 = vadd.f32 %v727_v28, %v726_v27 }
 0x131   : > { %v729_v31 = vrot.slane %v728_v30, 1  ;;  %v693_v32 = vadd.f32 %v692_v29, %v691_v21 }
 0x133   : > { %v730_v33 = vadd.f32 %v729_v31, %v728_v30 }
 0x135   : > { %v732_v34 = vsel %vm731_vm0, %v693_v32, %v730_v33 }
 0x136   : > { %733 = vst [vmem:[%s278_s29] sm:$0x3] %v732_v34 }
 0x137 PF: > { %s14_s14 = sadd.s32 1, %s1117_s14   ;;  %s1221_s12 = smov %s1113_s13 }
 0x138   : > { %p11_p5 = scmp.ge.s32.totalorder %s14_s14, 6   ;;  %s1222_s13 = smov %s1224_s15 }
 0x13a   :  { %13 = sbr.rel (!%p11_p5) target bundleno = 2 (0x2), region = 81 }

// kernel: generator_forward.16
= control target key start
LH: loop header
LB: loop body
LE: loop exit
PB: predicated region body
PF: predicated region fallthrough
CT: control target
= control target key end

     0   :  { %s1512_s12 = smov 0   ;;  %s1514_s13 = smov 0   ;;  %s1758_s0 = inlined_call_operand.vmem [shape: bf16[4,512,128], index: 0, kind: input, shape index: {}]   ;;  %s1759_s1 = inlined_call_operand.vmem [shape: f32[1,128], index: 1, kind: input, shape index: {}]   ;;  %s1760_s2 = inlined_call_operand.vmem [shape: f32[1,128], index: 2, kind: input, shape index: {}]   ;;  %s1761_s3 = inlined_call_operand.vmem [shape: bf16[4,512,128], index: 3, kind: output, shape index: {}]  }
   0x1   :  { %s1516_s14 = smov 0  }
   0x2 LB: > { %s25_s15 = sadd.s32 1, %s1486_s13  ;;  %p955_p0 = scmp.ge.s32.totalorder %s1490_s14, 1  ;;  %s1490_s14 = sphi %s1516_s14, %s13_s14   ;;  %s1486_s13 = sphi %s1514_s13, %s1763_s13   ;;  %s1482_s12 = sphi %s1512_s12, %s1762_s12  }
   0x3   : > { %p27_p1 = scmp.ge.s32.totalorder %s25_s15, 4  ;;  %p158_p2 = scmp.lt.s32.totalorder %s1490_s14, 5 }
   0x5   : > { %s1765_s15 = smov (%p27_p1, %s25_s15), 0  ;;  %p159_p3 = pnand %p955_p0, %p158_p2 }
   0x6   : > { %p191_p4 = scmp.lt.s32.totalorder (!%p159_p3), %s1482_s12, 3  ;;  %v1543_v0 = vld [vmem:[%s1759_s1] ss:$0 sm:$0xff] (!%p159_p3) }
   0x7   : > { %162 = sbr.rel (%p159_p3) target bundleno = 96 (0x60), region = 32  ;;  %v1552_v9 = vld [vmem:[%s1760_s2] ss:$0 sm:$0xff] (!%p159_p3) }
   0xe   : > { %s1767_s12 = smov (!%p191_p4, %s1482_s12), 3 }
   0xf   : > { %s1028_s16 = sshll.u32 %s1767_s12, 8 }
  0x10   : > { %s1538_s19 = scalar_lea.vmem %s1758_s0, %s1028_s16  ;;  %s1577_s26 = scalar_lea.vmem %s1761_s3, %s1028_s16 }
  0x11   : > { %v1095_v1 = vld [vmem:[%s1538_s19] sm:$0xff]   ;;  %v1382_v2 = vld [vmem:[%s1538_s19 + $0x8] sm:$0xff]   ;;  %v1383_v3 = vld [vmem:[%s1538_s19 + $0x10] sm:$0xff]  }
  0x12   : > { %v1096_v4 = vunpack.c.l.bf16 %v1095_v1  ;;  %v1097_v5 = vunpack.c.h.bf16 %v1095_v1  ;;  %v1100_v6 = vunpack.c.l.bf16 %v1382_v2  ;;  %v1101_v7 = vunpack.c.h.bf16 %v1382_v2  ;;  %v1384_v8 = vld [vmem:[%s1538_s19 + $0x18] sm:$0xff]   ;;  %v1385_v30 = vld [vmem:[%s1538_s19 + $0x20] sm:$0xff]   ;;  %v1386_v35 = vld [vmem:[%s1538_s19 + $0x28] sm:$0xff]  }
  0x13   : > { %v1104_v10 = vunpack.c.l.bf16 %v1383_v3  ;;  %v1105_v11 = vunpack.c.h.bf16 %v1383_v3  ;;  %v1108_v12 = vunpack.c.l.bf16 %v1384_v8  ;;  %v1109_v13 = vunpack.c.h.bf16 %v1384_v8  ;;  %v1387_v40 = vld [vmem:[%s1538_s19 + $0x30] sm:$0xff]   ;;  %v1388_v45 = vld [vmem:[%s1538_s19 + $0x38] sm:$0xff]   ;;  %v1389_v3 = vld [vmem:[%s1538_s19 + $0x40] sm:$0xff]  }
  0x14   : > { %v345_v14 = vmul.f32 %v1096_v4, %v1543_v0  ;;  %v346_v15 = vmul.f32 %v1097_v5, %v1543_v0  ;;  %v347_v16 = vmul.f32 %v1100_v6, %v1543_v0  ;;  %v348_v17 = vmul.f32 %v1101_v7, %v1543_v0 }
  0x15   : > { %v349_v18 = vmul.f32 %v1104_v10, %v1543_v0  ;;  %v350_v19 = vmul.f32 %v1105_v11, %v1543_v0  ;;  %v351_v20 = vmul.f32 %v1108_v12, %v1543_v0  ;;  %v352_v21 = vmul.f32 %v1109_v13, %v1543_v0  ;;  %v1390_v13 = vld [vmem:[%s1538_s19 + $0x48] sm:$0xff]  }
  0x16   : > { %v416_v22 = vadd.f32 %v1552_v9, %v345_v14  ;;  %v417_v23 = vadd.f32 %v1552_v9, %v346_v15  ;;  %v418_v24 = vadd.f32 %v1552_v9, %v347_v16  ;;  %v419_v25 = vadd.f32 %v1552_v9, %v348_v17 }
  0x17   : > { %v420_v26 = vadd.f32 %v1552_v9, %v349_v18  ;;  %v421_v27 = vadd.f32 %v1552_v9, %v350_v19  ;;  %v422_v28 = vadd.f32 %v1552_v9, %v351_v20  ;;  %v423_v29 = vadd.f32 %v1552_v9, %v352_v21  ;;  %v1391_v18 = vld [vmem:[%s1538_s19 + $0x50] sm:$0xff]  }
  0x18   : > { %v480_v31 = vmax.f32 %v416_v22, 0.0  ;;  %v481_v32 = vmax.f32 %v417_v23, 0.0  ;;  %v482_v33 = vmax.f32 %v418_v24, 0.0  ;;  %v483_v34 = vmax.f32 %v419_v25, 0.0  ;;  %v1392_v23 = vld [vmem:[%s1538_s19 + $0x58] sm:$0xff]  }
  0x19   : > { %v484_v36 = vmax.f32 %v420_v26, 0.0  ;;  %v485_v37 = vmax.f32 %v421_v27, 0.0  ;;  %v486_v38 = vmax.f32 %v422_v28, 0.0  ;;  %v487_v39 = vmax.f32 %v423_v29, 0.0 }
  0x1a   : > { %v1225_v41 = vpack.c.bf16 %v481_v32, %v480_v31  ;;  %v1230_v42 = vpack.c.bf16 %v483_v34, %v482_v33  ;;  %v1112_v43 = vunpack.c.l.bf16 %v1385_v30  ;;  %v1113_v44 = vunpack.c.h.bf16 %v1385_v30 }
  0x1b   : > { %v1235_v46 = vpack.c.bf16 %v485_v37, %v484_v36  ;;  %v1240_v47 = vpack.c.bf16 %v487_v39, %v486_v38  ;;  %v1116_v48 = vunpack.c.l.bf16 %v1386_v35  ;;  %v1117_v49 = vunpack.c.h.bf16 %v1386_v35 }
  0x1c   : > { %1226 = vst [vmem:[%s1577_s26] sm:$0xff] %v1225_v41   ;;  %1413 = vst [vmem:[%s1577_s26 + $0x8] sm:$0xff] %v1230_v42   ;;  %v353_v50 = vmul.f32 %v1112_v43, %v1543_v0  ;;  %v354_v51 = vmul.f32 %v1113_v44, %v1543_v0  ;;  %v1120_v52 = vunpack.c.l.bf16 %v1387_v40  ;;  %v1121_v53 = vunpack.c.h.bf16 %v1387_v40  ;;  %v1393_v40 = vld [vmem:[%s1538_s19 + $0x60] sm:$0xff]  }
  0x1d   : > { %1414 = vst [vmem:[%s1577_s26 + $0x10] sm:$0xff] %v1235_v46   ;;  %1415 = vst [vmem:[%s1577_s26 + $0x18] sm:$0xff] %v1240_v47   ;;  %v355_v54 = vmul.f32 %v1116_v48, %v1543_v0  ;;  %v356_v55 = vmul.f32 %v1117_v49, %v1543_v0  ;;  %v1124_v56 = vunpack.c.l.bf16 %v1388_v45  ;;  %v1125_v57 = vunpack.c.h.bf16 %v1388_v45 }
  0x1e   : > { %v424_v58 = vadd.f32 %v1552_v9, %v353_v50  ;;  %v425_v59 = vadd.f32 %v1552_v9, %v354_v51  ;;  %v357_v60 = vmul.f32 %v1120_v52, %v1543_v0  ;;  %v358_v61 = vmul.f32 %v1121_v53, %v1543_v0  ;;  %v1394_v53 = vld [vmem:[%s1538_s19 + $0x68] sm:$0xff]  }
  0x1f   : > { %v426_v62 = vadd.f32 %v1552_v9, %v355_v54  ;;  %v427_v63 = vadd.f32 %v1552_v9, %v356_v55  ;;  %v359_v1 = vmul.f32 %v1124_v56, %v1543_v0  ;;  %v360_v2 = vmul.f32 %v1125_v57, %v1543_v0 }
  0x20   : > { %v488_v4 = vmax.f32 %v424_v58, 0.0  ;;  %v489_v5 = vmax.f32 %v425_v59, 0.0  ;;  %v428_v6 = vadd.f32 %v1552_v9, %v357_v60  ;;  %v429_v7 = vadd.f32 %v1552_v9, %v358_v61  ;;  %v1395_v58 = vld [vmem:[%s1538_s19 + $0x70] sm:$0xff]  }
  0x21   : > { %v490_v8 = vmax.f32 %v426_v62, 0.0  ;;  %v491_v10 = vmax.f32 %v427_v63, 0.0  ;;  %v430_v11 = vadd.f32 %v1552_v9, %v359_v1  ;;  %v431_v12 = vadd.f32 %v1552_v9, %v360_v2  ;;  %v1396_v63 = vld [vmem:[%s1538_s19 + $0x78] sm:$0xff]  }
  0x22   : > { %v1245_v14 = vpack.c.bf16 %v489_v5, %v488_v4  ;;  %v492_v15 = vmax.f32 %v428_v6, 0.0  ;;  %v493_v16 = vmax.f32 %v429_v7, 0.0  ;;  %v1128_v17 = vunpack.c.l.bf16 %v1389_v3 }
  0x23   : > { %v1250_v19 = vpack.c.bf16 %v491_v10, %v490_v8  ;;  %v494_v20 = vmax.f32 %v430_v11, 0.0  ;;  %v495_v21 = vmax.f32 %v431_v12, 0.0  ;;  %v1129_v22 = vunpack.c.h.bf16 %v1389_v3 }
  0x24   : > { %1416 = vst [vmem:[%s1577_s26 + $0x20] sm:$0xff] %v1245_v14   ;;  %v1255_v24 = vpack.c.bf16 %v493_v16, %v492_v15  ;;  %v361_v25 = vmul.f32 %v1128_v17, %v1543_v0  ;;  %v1132_v26 = vunpack.c.l.bf16 %v1390_v13  ;;  %v1133_v27 = vunpack.c.h.bf16 %v1390_v13  ;;  %v1397_v14 = vld [vmem:[%s1538_s19 + $0x80] sm:$0xff]  }
  0x25   : > { %1417 = vst [vmem:[%s1577_s26 + $0x28] sm:$0xff] %v1250_v19   ;;  %v1260_v28 = vpack.c.bf16 %v495_v21, %v494_v20  ;;  %v362_v29 = vmul.f32 %v1129_v22, %v1543_v0  ;;  %v1136_v30 = vunpack.c.l.bf16 %v1391_v18  ;;  %v1137_v31 = vunpack.c.h.bf16 %v1391_v18 }
  0x26   : > { %1418 = vst [vmem:[%s1577_s26 + $0x30] sm:$0xff] %v1255_v24   ;;  %v432_v32 = vadd.f32 %v1552_v9, %v361_v25  ;;  %v363_v33 = vmul.f32 %v1132_v26, %v1543_v0  ;;  %v364_v34 = vmul.f32 %v1133_v27, %v1543_v0  ;;  %v1140_v35 = vunpack.c.l.bf16 %v1392_v23 }
  0x27   : > { %1419 = vst [vmem:[%s1577_s26 + $0x38] sm:$0xff] %v1260_v28   ;;  %v433_v36 = vadd.f32 %v1552_v9, %v362_v29  ;;  %v365_v37 = vmul.f32 %v1136_v30, %v1543_v0  ;;  %v366_v38 = vmul.f32 %v1137_v31, %v1543_v0  ;;  %v1141_v39 = vunpack.c.h.bf16 %v1392_v23  ;;  %v1398_v31 = vld [vmem:[%s1538_s19 + $0x88] sm:$0xff]  }
  0x28   : > { %v496_v41 = vmax.f32 %v432_v32, 0.0  ;;  %v434_v42 = vadd.f32 %v1552_v9, %v363_v33  ;;  %v435_v43 = vadd.f32 %v1552_v9, %v364_v34  ;;  %v367_v44 = vmul.f32 %v1140_v35, %v1543_v0 }
  0x29   : > { %v497_v45 = vmax.f32 %v433_v36, 0.0  ;;  %v436_v46 = vadd.f32 %v1552_v9, %v365_v37  ;;  %v437_v47 = vadd.f32 %v1552_v9, %v366_v38  ;;  %v368_v48 = vmul.f32 %v1141_v39, %v1543_v0  ;;  %v1399_v36 = vld [vmem:[%s1538_s19 + $0x90] sm:$0xff]  }
  0x2a   : > { %v498_v49 = vmax.f32 %v434_v42, 0.0  ;;  %v499_v50 = vmax.f32 %v435_v43, 0.0  ;;  %v438_v51 = vadd.f32 %v1552_v9, %v367_v44  ;;  %v1144_v52 = vunpack.c.l.bf16 %v1393_v40 }
  0x2b   : > { %v1265_v54 = vpack.c.bf16 %v497_v45, %v496_v41  ;;  %v500_v55 = vmax.f32 %v436_v46, 0.0  ;;  %v501_v56 = vmax.f32 %v437_v47, 0.0  ;;  %v439_v57 = vadd.f32 %v1552_v9, %v368_v48  ;;  %v1400_v41 = vld [vmem:[%s1538_s19 + $0x98] sm:$0xff]  }
  0x2c   : > { %v1270_v59 = vpack.c.bf16 %v499_v50, %v498_v49  ;;  %v502_v60 = vmax.f32 %v438_v51, 0.0  ;;  %v1145_v61 = vunpack.c.h.bf16 %v1393_v40  ;;  %v369_v62 = vmul.f32 %v1144_v52, %v1543_v0 }
  0x2d   : > { %1420 = vst [vmem:[%s1577_s26 + $0x40] sm:$0xff] %v1265_v54   ;;  %v1275_v1 = vpack.c.bf16 %v501_v56, %v500_v55  ;;  %v503_v2 = vmax.f32 %v439_v57, 0.0  ;;  %v1148_v3 = vunpack.c.l.bf16 %v1394_v53  ;;  %v1149_v4 = vunpack.c.h.bf16 %v1394_v53  ;;  %v1401_v54 = vld [vmem:[%s1538_s19 + $0xa0] sm:$0xff]  }
  0x2e   : > { %1421 = vst [vmem:[%s1577_s26 + $0x48] sm:$0xff] %v1270_v59   ;;  %v370_v5 = vmul.f32 %v1145_v61, %v1543_v0  ;;  %v440_v6 = vadd.f32 %v1552_v9, %v369_v62  ;;  %v1152_v7 = vunpack.c.l.bf16 %v1395_v58  ;;  %v1153_v8 = vunpack.c.h.bf16 %v1395_v58 }
  0x2f   : > { %1422 = vst [vmem:[%s1577_s26 + $0x50] sm:$0xff] %v1275_v1   ;;  %v1280_v10 = vpack.c.bf16 %v503_v2, %v502_v60  ;;  %v371_v11 = vmul.f32 %v1148_v3, %v1543_v0  ;;  %v372_v12 = vmul.f32 %v1149_v4, %v1543_v0  ;;  %v1156_v13 = vunpack.c.l.bf16 %v1396_v63  ;;  %v1402_v4 = vld [vmem:[%s1538_s19 + $0xa8] sm:$0xff]  }
  0x30   : > { %v441_v15 = vadd.f32 %v1552_v9, %v370_v5  ;;  %v504_v16 = vmax.f32 %v440_v6, 0.0  ;;  %v373_v17 = vmul.f32 %v1152_v7, %v1543_v0  ;;  %v374_v18 = vmul.f32 %v1153_v8, %v1543_v0 }
  0x31   : > { %1423 = vst [vmem:[%s1577_s26 + $0x58] sm:$0xff] %v1280_v10   ;;  %v442_v19 = vadd.f32 %v1552_v9, %v371_v11  ;;  %v443_v20 = vadd.f32 %v1552_v9, %v372_v12  ;;  %v1157_v21 = vunpack.c.h.bf16 %v1396_v63  ;;  %v375_v22 = vmul.f32 %v1156_v13, %v1543_v0 }
  0x32   : > { %v505_v23 = vmax.f32 %v441_v15, 0.0  ;;  %v444_v24 = vadd.f32 %v1552_v9, %v373_v17  ;;  %v445_v25 = vadd.f32 %v1552_v9, %v374_v18  ;;  %v1160_v26 = vunpack.c.l.bf16 %v1397_v14 }
  0x33   : > { %v506_v27 = vmax.f32 %v442_v19, 0.0  ;;  %v507_v28 = vmax.f32 %v443_v20, 0.0  ;;  %v376_v29 = vmul.f32 %v1157_v21, %v1543_v0  ;;  %v446_v30 = vadd.f32 %v1552_v9, %v375_v22  ;;  %v1404_v19 = vld [vmem:[%s1538_s19 + $0xb8] sm:$0xff]  }
  0x34   : > { %v1285_v32 = vpack.c.bf16 %v505_v23, %v504_v16  ;;  %v508_v33 = vmax.f32 %v444_v24, 0.0  ;;  %v509_v34 = vmax.f32 %v445_v25, 0.0  ;;  %v1161_v35 = vunpack.c.h.bf16 %v1397_v14  ;;  %v1403_v14 = vld [vmem:[%s1538_s19 + $0xb0] sm:$0xff]  }
  0x35   : > { %v1290_v37 = vpack.c.bf16 %v507_v28, %v506_v27  ;;  %v447_v38 = vadd.f32 %v1552_v9, %v376_v29  ;;  %v510_v39 = vmax.f32 %v446_v30, 0.0  ;;  %v377_v40 = vmul.f32 %v1160_v26, %v1543_v0 }
  0x36   : > { %1424 = vst [vmem:[%s1577_s26 + $0x60] sm:$0xff] %v1285_v32   ;;  %v1295_v42 = vpack.c.bf16 %v509_v34, %v508_v33  ;;  %v378_v43 = vmul.f32 %v1161_v35, %v1543_v0  ;;  %v1164_v44 = vunpack.c.l.bf16 %v1398_v31  ;;  %v1165_v45 = vunpack.c.h.bf16 %v1398_v31  ;;  %v1405_v32 = vld [vmem:[%s1538_s19 + $0xc0] sm:$0xff]  }
  0x37   : > { %1425 = vst [vmem:[%s1577_s26 + $0x68] sm:$0xff] %v1290_v37   ;;  %v511_v46 = vmax.f32 %v447_v38, 0.0  ;;  %v448_v47 = vadd.f32 %v1552_v9, %v377_v40  ;;  %v1168_v48 = vunpack.c.l.bf16 %v1399_v36  ;;  %v1169_v49 = vunpack.c.h.bf16 %v1399_v36 }
  0x38   : > { %1426 = vst [vmem:[%s1577_s26 + $0x70] sm:$0xff] %v1295_v42   ;;  %v449_v50 = vadd.f32 %v1552_v9, %v378_v43  ;;  %v379_v51 = vmul.f32 %v1164_v44, %v1543_v0  ;;  %v380_v52 = vmul.f32 %v1165_v45, %v1543_v0  ;;  %v1172_v53 = vunpack.c.l.bf16 %v1400_v41  ;;  %v1406_v45 = vld [vmem:[%s1538_s19 + $0xc8] sm:$0xff]  }
  0x39   : > { %v1300_v55 = vpack.c.bf16 %v511_v46, %v510_v39  ;;  %v512_v56 = vmax.f32 %v448_v47, 0.0  ;;  %v381_v57 = vmul.f32 %v1168_v48, %v1543_v0  ;;  %v382_v58 = vmul.f32 %v1169_v49, %v1543_v0 }
  0x3a   : > { %v513_v59 = vmax.f32 %v449_v50, 0.0  ;;  %v450_v60 = vadd.f32 %v1552_v9, %v379_v51  ;;  %v451_v61 = vadd.f32 %v1552_v9, %v380_v52  ;;  %v1173_v62 = vunpack.c.h.bf16 %v1400_v41 }
  0x3b   : > { %1427 = vst [vmem:[%s1577_s26 + $0x78] sm:$0xff] %v1300_v55   ;;  %v452_v63 = vadd.f32 %v1552_v9, %v381_v57  ;;  %v453_v1 = vadd.f32 %v1552_v9, %v382_v58  ;;  %v383_v2 = vmul.f32 %v1172_v53, %v1543_v0  ;;  %v1176_v3 = vunpack.c.l.bf16 %v1401_v54 }
  0x3c   : > { %v1305_v5 = vpack.c.bf16 %v513_v59, %v512_v56  ;;  %v514_v6 = vmax.f32 %v450_v60, 0.0  ;;  %v515_v7 = vmax.f32 %v451_v61, 0.0  ;;  %v384_v8 = vmul.f32 %v1173_v62, %v1543_v0 }
  0x3d   : > { %v516_v10 = vmax.f32 %v452_v63, 0.0  ;;  %v517_v11 = vmax.f32 %v453_v1, 0.0  ;;  %v454_v12 = vadd.f32 %v1552_v9, %v383_v2  ;;  %v1177_v13 = vunpack.c.h.bf16 %v1401_v54  ;;  %v1407_v54 = vld [vmem:[%s1538_s19 + $0xd0] sm:$0xff]   ;;  %v1408_v63 = vld [vmem:[%s1538_s19 + $0xd8] sm:$0xff]  }
  0x3e   : > { %1428 = vst [vmem:[%s1577_s26 + $0x80] sm:$0xff] %v1305_v5   ;;  %v1310_v15 = vpack.c.bf16 %v515_v7, %v514_v6  ;;  %v455_v16 = vadd.f32 %v1552_v9, %v384_v8  ;;  %v385_v17 = vmul.f32 %v1176_v3, %v1543_v0  ;;  %v1180_v18 = vunpack.c.l.bf16 %v1402_v4 }
  0x3f   : > { %v1315_v20 = vpack.c.bf16 %v517_v11, %v516_v10  ;;  %v518_v21 = vmax.f32 %v454_v12, 0.0  ;;  %v386_v22 = vmul.f32 %v1177_v13, %v1543_v0  ;;  %v1181_v23 = vunpack.c.h.bf16 %v1402_v4  ;;  %v1409_v10 = vld [vmem:[%s1538_s19 + $0xe0] sm:$0xff]  }
  0x40   : > { %1429 = vst [vmem:[%s1577_s26 + $0x88] sm:$0xff] %v1310_v15   ;;  %v519_v24 = vmax.f32 %v455_v16, 0.0  ;;  %v456_v25 = vadd.f32 %v1552_v9, %v385_v17  ;;  %v387_v26 = vmul.f32 %v1180_v18, %v1543_v0  ;;  %v1184_v27 = vunpack.c.l.bf16 %v1403_v14 }
  0x41   : > { %1430 = vst [vmem:[%s1577_s26 + $0x90] sm:$0xff] %v1315_v20   ;;  %v457_v28 = vadd.f32 %v1552_v9, %v386_v22  ;;  %v388_v29 = vmul.f32 %v1181_v23, %v1543_v0  ;;  %v1185_v30 = vunpack.c.h.bf16 %v1403_v14  ;;  %v1188_v31 = vunpack.c.l.bf16 %v1404_v19  ;;  %v1410_v23 = vld [vmem:[%s1538_s19 + $0xe8] sm:$0xff]  }
  0x42   : > { %v1320_v33 = vpack.c.bf16 %v519_v24, %v518_v21  ;;  %v520_v34 = vmax.f32 %v456_v25, 0.0  ;;  %v458_v35 = vadd.f32 %v1552_v9, %v387_v26  ;;  %v389_v36 = vmul.f32 %v1184_v27, %v1543_v0 }
  0x43   : > { %v521_v37 = vmax.f32 %v457_v28, 0.0  ;;  %v459_v38 = vadd.f32 %v1552_v9, %v388_v29  ;;  %v390_v39 = vmul.f32 %v1185_v30, %v1543_v0  ;;  %v1189_v40 = vunpack.c.h.bf16 %v1404_v19 }
  0x44   : > { %1431 = vst [vmem:[%s1577_s26 + $0x98] sm:$0xff] %v1320_v33   ;;  %v522_v41 = vmax.f32 %v458_v35, 0.0  ;;  %v460_v42 = vadd.f32 %v1552_v9, %v389_v36  ;;  %v391_v43 = vmul.f32 %v1188_v31, %v1543_v0  ;;  %v1192_v44 = vunpack.c.l.bf16 %v1405_v32 }
  0x45   : > { %v1325_v46 = vpack.c.bf16 %v521_v37, %v520_v34  ;;  %v523_v47 = vmax.f32 %v459_v38, 0.0  ;;  %v461_v48 = vadd.f32 %v1552_v9, %v390_v39  ;;  %v392_v49 = vmul.f32 %v1189_v40, %v1543_v0 }
  0x46   : > { %v524_v50 = vmax.f32 %v460_v42, 0.0  ;;  %v462_v51 = vadd.f32 %v1552_v9, %v391_v43  ;;  %v1193_v52 = vunpack.c.h.bf16 %v1405_v32  ;;  %v393_v53 = vmul.f32 %v1192_v44, %v1543_v0  ;;  %v1411_v32 = vld [vmem:[%s1538_s19 + $0xf0] sm:$0xff]  }
  0x47   : > { %1432 = vst [vmem:[%s1577_s26 + $0xa0] sm:$0xff] %v1325_v46   ;;  %v1330_v55 = vpack.c.bf16 %v523_v47, %v522_v41  ;;  %v525_v56 = vmax.f32 %v461_v48, 0.0  ;;  %v463_v57 = vadd.f32 %v1552_v9, %v392_v49  ;;  %v1196_v58 = vunpack.c.l.bf16 %v1406_v45  ;;  %v1412_v41 = vld [vmem:[%s1538_s19 + $0xf8] sm:$0xff]  }
  0x48   : > { %v526_v59 = vmax.f32 %v462_v51, 0.0  ;;  %v394_v60 = vmul.f32 %v1193_v52, %v1543_v0  ;;  %v464_v61 = vadd.f32 %v1552_v9, %v393_v53  ;;  %v1197_v62 = vunpack.c.h.bf16 %v1406_v45 }
  0x49   : > { %1433 = vst [vmem:[%s1577_s26 + $0xa8] sm:$0xff] %v1330_v55   ;;  %v1335_v1 = vpack.c.bf16 %v525_v56, %v524_v50  ;;  %v527_v2 = vmax.f32 %v463_v57, 0.0  ;;  %v395_v3 = vmul.f32 %v1196_v58, %v1543_v0  ;;  %v1200_v4 = vunpack.c.l.bf16 %v1407_v54 }
  0x4a   : > { %v465_v5 = vadd.f32 %v1552_v9, %v394_v60  ;;  %v528_v6 = vmax.f32 %v464_v61, 0.0  ;;  %v396_v7 = vmul.f32 %v1197_v62, %v1543_v0  ;;  %v1201_v8 = vunpack.c.h.bf16 %v1407_v54 }
  0x4b   : > { %1434 = vst [vmem:[%s1577_s26 + $0xb0] sm:$0xff] %v1335_v1   ;;  %v1340_v11 = vpack.c.bf16 %v527_v2, %v526_v59  ;;  %v466_v12 = vadd.f32 %v1552_v9, %v395_v3  ;;  %v397_v13 = vmul.f32 %v1200_v4, %v1543_v0  ;;  %v1204_v14 = vunpack.c.l.bf16 %v1408_v63 }
  0x4c   : > { %v529_v15 = vmax.f32 %v465_v5, 0.0  ;;  %v467_v16 = vadd.f32 %v1552_v9, %v396_v7  ;;  %v398_v17 = vmul.f32 %v1201_v8, %v1543_v0  ;;  %v1205_v18 = vunpack.c.h.bf16 %v1408_v63 }
  0x4d   : > { %1435 = vst [vmem:[%s1577_s26 + $0xb8] sm:$0xff] %v1340_v11   ;;  %v530_v19 = vmax.f32 %v466_v12, 0.0  ;;  %v468_v20 = vadd.f32 %v1552_v9, %v397_v13  ;;  %v399_v21 = vmul.f32 %v1204_v14, %v1543_v0  ;;  %v1208_v22 = vunpack.c.l.bf16 %v1409_v10 }
  0x4e   : > { %v1345_v24 = vpack.c.bf16 %v529_v15, %v528_v6  ;;  %v531_v25 = vmax.f32 %v467_v16, 0.0  ;;  %v469_v26 = vadd.f32 %v1552_v9, %v398_v17  ;;  %v400_v27 = vmul.f32 %v1205_v18, %v1543_v0 }
  0x4f   : > { %v532_v28 = vmax.f32 %v468_v20, 0.0  ;;  %v470_v29 = vadd.f32 %v1552_v9, %v399_v21  ;;  %v1209_v30 = vunpack.c.h.bf16 %v1409_v10  ;;  %v401_v31 = vmul.f32 %v1208_v22, %v1543_v0 }
  0x50   : > { %1436 = vst [vmem:[%s1577_s26 + $0xc0] sm:$0xff] %v1345_v24   ;;  %v1350_v33 = vpack.c.bf16 %v531_v25, %v530_v19  ;;  %v533_v34 = vmax.f32 %v469_v26, 0.0  ;;  %v471_v35 = vadd.f32 %v1552_v9, %v400_v27  ;;  %v1212_v36 = vunpack.c.l.bf16 %v1410_v23 }
  0x51   : > { %v534_v37 = vmax.f32 %v470_v29, 0.0  ;;  %v402_v38 = vmul.f32 %v1209_v30, %v1543_v0  ;;  %v472_v39 = vadd.f32 %v1552_v9, %v401_v31  ;;  %v1213_v40 = vunpack.c.h.bf16 %v1410_v23 }
  0x52   : > { %1437 = vst [vmem:[%s1577_s26 + $0xc8] sm:$0xff] %v1350_v33   ;;  %v1355_v42 = vpack.c.bf16 %v533_v34, %v532_v28  ;;  %v535_v43 = vmax.f32 %v471_v35, 0.0  ;;  %v403_v44 = vmul.f32 %v1212_v36, %v1543_v0  ;;  %v1216_v45 = vunpack.c.l.bf16 %v1411_v32 }
  0x53   : > { %v473_v46 = vadd.f32 %v1552_v9, %v402_v38  ;;  %v536_v47 = vmax.f32 %v472_v39, 0.0  ;;  %v404_v48 = vmul.f32 %v1213_v40, %v1543_v0  ;;  %v1217_v49 = vunpack.c.h.bf16 %v1411_v32 }
  0x54   : > { %1438 = vst [vmem:[%s1577_s26 + $0xd0] sm:$0xff] %v1355_v42   ;;  %v1360_v50 = vpack.c.bf16 %v535_v43, %v534_v37  ;;  %v474_v51 = vadd.f32 %v1552_v9, %v403_v44  ;;  %v405_v52 = vmul.f32 %v1216_v45, %v1543_v0  ;;  %v1220_v53 = vunpack.c.l.bf16 %v1412_v41 }
  0x55   : > { %v537_v54 = vmax.f32 %v473_v46, 0.0  ;;  %v475_v55 = vadd.f32 %v1552_v9, %v404_v48  ;;  %v406_v56 = vmul.f32 %v1217_v49, %v1543_v0  ;;  %v1221_v57 = vunpack.c.h.bf16 %v1412_v41 }
  0x56   : > { %1439 = vst [vmem:[%s1577_s26 + $0xd8] sm:$0xff] %v1360_v50   ;;  %v538_v58 = vmax.f32 %v474_v51, 0.0  ;;  %v476_v59 = vadd.f32 %v1552_v9, %v405_v52  ;;  %v407_v60 = vmul.f32 %v1220_v53, %v1543_v0 }
  0x57   : > { %v1365_v61 = vpack.c.bf16 %v537_v54, %v536_v47  ;;  %v539_v62 = vmax.f32 %v475_v55, 0.0  ;;  %v477_v63 = vadd.f32 %v1552_v9, %v406_v56  ;;  %v408_v1 = vmul.f32 %v1221_v57, %v1543_v0 }
  0x58   : > { %v540_v2 = vmax.f32 %v476_v59, 0.0  ;;  %v478_v3 = vadd.f32 %v1552_v9, %v407_v60 }
  0x59   : > { %1440 = vst [vmem:[%s1577_s26 + $0xe0] sm:$0xff] %v1365_v61   ;;  %v1370_v4 = vpack.c.bf16 %v539_v62, %v538_v58  ;;  %v541_v5 = vmax.f32 %v477_v63, 0.0  ;;  %v479_v6 = vadd.f32 %v1552_v9, %v408_v1 }
  0x5a   : > { %v542_v7 = vmax.f32 %v478_v3, 0.0 }
  0x5b   : > { %1441 = vst [vmem:[%s1577_s26 + $0xe8] sm:$0xff] %v1370_v4   ;;  %v1375_v8 = vpack.c.bf16 %v541_v5, %v540_v2  ;;  %v543_v10 = vmax.f32 %v479_v6, 0.0 }
  0x5d   : > { %1442 = vst [vmem:[%s1577_s26 + $0xf0] sm:$0xff] %v1375_v8   ;;  %v1380_v11 = vpack.c.bf16 %v543_v10, %v542_v7 }
  0x5f   : > { %1443 = vst [vmem:[%s1577_s26 + $0xf8] sm:$0xff] %v1380_v11  }
  0x60 PF: > { %s13_s14 = sadd.s32 1, %s1490_s14   ;;  %s1762_s12 = smov %s1486_s13 }
  0x61   : > { %p10_p5 = scmp.ge.s32.totalorder %s13_s14, 6   ;;  %s1763_s13 = smov %s1765_s15 }
  0x63   :  { %12 = sbr.rel (!%p10_p5) target bundleno = 2 (0x2), region = 62 }

// kernel: generator_forward.15
= control target key start
LH: loop header
LB: loop body
LE: loop exit
PB: predicated region body
PF: predicated region fallthrough
CT: control target
= control target key end

     0   :  { %s2544_s12 = smov 0   ;;  %s2546_s13 = smov 0   ;;  %s2884_s0 = inlined_call_operand.vmem [shape: bf16[4,512,64], index: 0, kind: input, shape index: {}]   ;;  %s2885_s1 = inlined_call_operand.vmem [shape: bf16[4,64,128], index: 1, kind: input, shape index: {}]   ;;  %s2886_s2 = inlined_call_operand.vmem [shape: bf16[4,512,128], index: 2, kind: output, shape index: {0}]   ;;  %s2887_s3 = inlined_call_operand.vmem [shape: f32[4,2,128], index: 3, kind: output, shape index: {1}]  }
   0x1   :  { %s2548_s14 = smov 0  }
   0x2 LB: > { %s33_s15 = sadd.s32 1, %s2518_s13  ;;  %p1924_p0 = scmp.ge.s32.totalorder %s2522_s14, 1  ;;  %s2522_s14 = sphi %s2548_s14, %s14_s14   ;;  %s2518_s13 = sphi %s2546_s13, %s2889_s13   ;;  %s2514_s12 = sphi %s2544_s12, %s2888_s12  }
   0x3   : > { %p35_p1 = scmp.ge.s32.totalorder %s33_s15, 4  ;;  %p192_p2 = scmp.lt.s32.totalorder %s2522_s14, 5 }
   0x5   : > { %s2891_s15 = smov (%p35_p1, %s33_s15), 0  ;;  %p193_p3 = pnand %p1924_p0, %p192_p2 }
   0x6   : > { %p242_p4 = scmp.lt.s32.totalorder (!%p193_p3), %s2514_s12, 3  ;;  %vm669_vm0 = vcmask (!%p193_p3), 523264   ;;  %vm1772_vm1 = vcmask (!%p193_p3), 1040384  }
   0x7   : > { %196 = sbr.rel (%p193_p3) target bundleno = 391 (0x187), region = 28 }
   0xe   : > { %s2893_s12 = smov (!%p242_p4, %s2514_s12), 3 }
   0xf   : > { %s2066_s16 = sshll.u32 %s2893_s12, 8  ;;  %s2067_s17 = sshll.u32 %s2893_s12, 5 }
  0x10   : > { %s262_s20 = scalar_lea.vmem %s2885_s1, %s2067_s17  ;;  %s2574_s23 = scalar_lea.vmem %s2884_s0, %s2066_s16 }
  0x11   : > { %v2464_v0 = vld [vmem:[%s262_s20] sm:$0xff]   ;;  %v2465_v1 = vld [vmem:[%s262_s20 + $0x8] sm:$0xff]   ;;  %v2466_v2 = vld [vmem:[%s262_s20 + $0x10] sm:$0xff]   ;;  %s2645_s26 = scalar_lea.vmem %s2886_s2, %s2066_s16  ;;  %s1931_s27 = sshll.u32 %s2893_s12, 1 }
  0x12   : > { %2360 = vmatprep.subr.bf16.mxu0 %v2464_v0  ;;  %2432 = vmatprep.subr.bf16.mxu1 %v2464_v0  ;;  %v2468_v3 = vld [vmem:[%s2574_s23] sm:$0xff]   ;;  %v2467_v4 = vld [vmem:[%s262_s20 + $0x18] sm:$0xff]   ;;  %v2469_v5 = vld [vmem:[%s2574_s23 + $0x8] sm:$0xff]   ;;  %s278_s30 = scalar_lea.vmem %s2887_s3, %s1931_s27 }
  0x13   : > { %2361 = vmatpush3.bf16.msra.mxu0 %v2464_v0  ;;  %2436 = vmatpush3.bf16.msra.mxu1 %v2464_v0  ;;  %v2470_v6 = vld [vmem:[%s2574_s23 + $0x10] sm:$0xff]   ;;  %v2471_v7 = vld [vmem:[%s2574_s23 + $0x18] sm:$0xff]   ;;  %v2484_v8 = vld [vmem:[%s2574_s23 + $0x80] sm:$0xff]  }
  0x14   : > { %2362 = vmatprep.subr.bf16.mxu0 %v2465_v1  ;;  %2433 = vmatprep.subr.bf16.mxu1 %v2465_v1  ;;  %v2485_v9 = vld [vmem:[%s2574_s23 + $0x88] sm:$0xff]   ;;  %v2486_v10 = vld [vmem:[%s2574_s23 + $0x90] sm:$0xff]   ;;  %v2472_v11 = vld [vmem:[%s2574_s23 + $0x20] sm:$0xff]  }
  0x15   : > { %2368 = vmatprep.mubr.msk.bf16.mxu0 %vm669_vm0, %v2468_v3  ;;  %2400 = vmatprep.mubr.msk.bf16.mxu1 %vm669_vm0, %v2484_v8  ;;  %v2487_v12 = vld [vmem:[%s2574_s23 + $0x98] sm:$0xff]   ;;  %v2488_v13 = vld [vmem:[%s2574_s23 + $0xa0] sm:$0xff]   ;;  %v2473_v14 = vld [vmem:[%s2574_s23 + $0x28] sm:$0xff]  }
  0x16   : > { %v2474_v15 = vld [vmem:[%s2574_s23 + $0x30] sm:$0xff]   ;;  %v2489_v16 = vld [vmem:[%s2574_s23 + $0xa8] sm:$0xff]   ;;  %v2475_v18 = vld [vmem:[%s2574_s23 + $0x38] sm:$0xff]  }
  0x17   : > { %2363 = vmatpush3.bf16.msra.mxu0 %v2465_v1  ;;  %2437 = vmatpush3.bf16.msra.mxu1 %v2465_v1  ;;  %v2490_v17 = vld [vmem:[%s2574_s23 + $0xb0] sm:$0xff]   ;;  %v2476_v19 = vld [vmem:[%s2574_s23 + $0x40] sm:$0xff]   ;;  %v2491_v20 = vld [vmem:[%s2574_s23 + $0xb8] sm:$0xff]  }
  0x18   : > { %2364 = vmatprep.subr.bf16.mxu0 %v2466_v2  ;;  %2434 = vmatprep.subr.bf16.mxu1 %v2466_v2  ;;  %v2492_v21 = vld [vmem:[%s2574_s23 + $0xc0] sm:$0xff]   ;;  %v2477_v22 = vld [vmem:[%s2574_s23 + $0x48] sm:$0xff]   ;;  %v2478_v23 = vld [vmem:[%s2574_s23 + $0x50] sm:$0xff]  }
  0x19   : > { %v2493_v24 = vld [vmem:[%s2574_s23 + $0xc8] sm:$0xff]   ;;  %v2494_v25 = vld [vmem:[%s2574_s23 + $0xd0] sm:$0xff]   ;;  %v2479_v26 = vld [vmem:[%s2574_s23 + $0x58] sm:$0xff]  }
  0x1a   : > { %v2480_v27 = vld [vmem:[%s2574_s23 + $0x60] sm:$0xff]   ;;  %v2495_v28 = vld [vmem:[%s2574_s23 + $0xd8] sm:$0xff]   ;;  %v2481_v30 = vld [vmem:[%s2574_s23 + $0x68] sm:$0xff]  }
  0x1b   : > { %2365 = vmatpush3.bf16.msra.mxu0 %v2466_v2  ;;  %2438 = vmatpush3.bf16.msra.mxu1 %v2466_v2  ;;  %v2496_v29 = vld [vmem:[%s2574_s23 + $0xe0] sm:$0xff]   ;;  %v2482_v31 = vld [vmem:[%s2574_s23 + $0x70] sm:$0xff]   ;;  %v2497_v32 = vld [vmem:[%s2574_s23 + $0xe8] sm:$0xff]  }
  0x1c   : > { %2366 = vmatprep.subr.bf16.mxu0 %v2467_v4  ;;  %2435 = vmatprep.subr.bf16.mxu1 %v2467_v4  ;;  %v2498_v33 = vld [vmem:[%s2574_s23 + $0xf0] sm:$0xff]   ;;  %v2483_v34 = vld [vmem:[%s2574_s23 + $0x78] sm:$0xff]  }
  0x1d   : > { %v2499_v35 = vld [vmem:[%s2574_s23 + $0xf8] sm:$0xff]  }
  0x1f   : > { %2367 = vmatpush3.bf16.msra.mxu0 %v2467_v4  ;;  %2439 = vmatpush3.bf16.msra.mxu1 %v2467_v4 }
  0x22   : > { %2369 = vmatmul.mubr.msk.bf16.vlgmr.msra.gmra.mrb[0].mxu0 %vm669_vm0, %v2469_v5  ;;  %2401 = vmatmul.mubr.msk.bf16.vlgmr.msra.gmra.mrb[0].mxu1 %vm669_vm0, %v2485_v9 }
  0x23   : > { %2372 = vmatprep.mubr.msk.bf16.mxu0 %vm669_vm0, %v2470_v6  ;;  %2404 = vmatprep.mubr.msk.bf16.mxu1 %vm669_vm0, %v2486_v10 }
  0x2a   : > { %2373 = vmatmul.mubr.msk.bf16.gmra.mrb[4].mxu0 %vm669_vm0, %v2471_v7  ;;  %2405 = vmatmul.mubr.msk.bf16.gmra.mrb[4].mxu1 %vm669_vm0, %v2487_v12 }
  0x2b   : > { %2376 = vmatprep.mubr.msk.bf16.mxu0 %vm669_vm0, %v2472_v11  ;;  %2408 = vmatprep.mubr.msk.bf16.mxu1 %vm669_vm0, %v2488_v13 }
  0x32   : > { %2377 = vmatmul.mubr.msk.bf16.gmra.mrb[8].mxu0 %vm669_vm0, %v2473_v14  ;;  %2409 = vmatmul.mubr.msk.bf16.gmra.mrb[8].mxu1 %vm669_vm0, %v2489_v16 }
  0x33   : > { %2380 = vmatprep.mubr.msk.bf16.mxu0 %vm669_vm0, %v2474_v15  ;;  %2412 = vmatprep.mubr.msk.bf16.mxu1 %vm669_vm0, %v2490_v17 }
  0x3a   : > { %2381 = vmatmul.mubr.msk.bf16.gmra.mrb[12].mxu0 %vm669_vm0, %v2475_v18  ;;  %2413 = vmatmul.mubr.msk.bf16.gmra.mrb[12].mxu1 %vm669_vm0, %v2491_v20 }
  0x3b   : > { %2384 = vmatprep.mubr.msk.bf16.mxu0 %vm669_vm0, %v2476_v19  ;;  %2416 = vmatprep.mubr.msk.bf16.mxu1 %vm669_vm0, %v2492_v21 }
  0x42   : > { %2385 = vmatmul.mubr.msk.bf16.gmra.mrb[16].mxu0 %vm669_vm0, %v2477_v22  ;;  %2417 = vmatmul.mubr.msk.bf16.gmra.mrb[16].mxu1 %vm669_vm0, %v2493_v24 }
  0x43   : > { %2388 = vmatprep.mubr.msk.bf16.mxu0 %vm669_vm0, %v2478_v23  ;;  %2420 = vmatprep.mubr.msk.bf16.mxu1 %vm669_vm0, %v2494_v25 }
  0x4a   : > { %2389 = vmatmul.mubr.msk.bf16.gmra.mrb[20].mxu0 %vm669_vm0, %v2479_v26  ;;  %2421 = vmatmul.mubr.msk.bf16.gmra.mrb[20].mxu1 %vm669_vm0, %v2495_v28 }
  0x4b   : > { %2392 = vmatprep.mubr.msk.bf16.mxu0 %vm669_vm0, %v2480_v27  ;;  %2424 = vmatprep.mubr.msk.bf16.mxu1 %vm669_vm0, %v2496_v29 }
  0x52   : > { %2393 = vmatmul.mubr.msk.bf16.gmra.mrb[24].mxu0 %vm669_vm0, %v2481_v30  ;;  %2425 = vmatmul.mubr.msk.bf16.gmra.mrb[24].mxu1 %vm669_vm0, %v2497_v32 }
  0x53   : > { %2396 = vmatprep.mubr.msk.bf16.mxu0 %vm669_vm0, %v2482_v31  ;;  %2428 = vmatprep.mubr.msk.bf16.mxu1 %vm669_vm0, %v2498_v33 }
  0x5a   : > { %2397 = vmatmul.mubr.msk.bf16.gmra.mrb[28].mxu0 %vm669_vm0, %v2483_v34  ;;  %2429 = vmatmul.mubr.msk.bf16.gmra.mrb[28].mxu1 %vm669_vm0, %v2499_v35 }
  0xf5   : > { %v2370_v36 = vpop.f32.mrb[0].mxu0  ;;  %v2648_v45 = vpop.f32.mrb[0].mxu1 }
  0xf6   : > { %v800_v37 = vpop.f32.mrb[1].mxu0  ;;  %v1641_v46 = vmul.f32 %v2370_v36, %v2370_v36  ;;  %v2651_v49 = vpop.f32.mrb[1].mxu1 }
  0xf7   : > { %v2371_v38 = vpop.f32.mrb[2].mxu0  ;;  %v1639_v41 = vmul.f32 %v800_v37, %v800_v37  ;;  %v2653_v50 = vpop.f32.mrb[2].mxu1 }
  0xf8   : > { %v2141_v39 = vpack.c.bf16 %v2371_v38, %v2370_v36  ;;  %v803_v40 = vpop.f32.mrb[3].mxu0  ;;  %v1642_v51 = vmul.f32 %v2371_v38, %v2371_v38  ;;  %v2221_v55 = vpack.c.bf16 %v2653_v50, %v2648_v45  ;;  %v2657_v56 = vpop.f32.mrb[3].mxu1 }
  0xf9   : > { %v2136_v42 = vpack.c.bf16 %v803_v40, %v800_v37  ;;  %v1570_v43 = vadd.f32 %v803_v40, %v800_v37  ;;  %v1640_v44 = vmul.f32 %v803_v40, %v803_v40  ;;  %v2216_v58 = vpack.c.bf16 %v2657_v56, %v2651_v49 }
  0xfa   : > { %2293 = vst [vmem:[%s2645_s26 + $0x8] sm:$0xff] %v2141_v39   ;;  %2309 = vst [vmem:[%s2645_s26 + $0x88] sm:$0xff] %v2221_v55  }
  0xfb   : > { %2137 = vst [vmem:[%s2645_s26] sm:$0xff] %v2136_v42   ;;  %v1571_v47 = vadd.f32 %v2370_v36, %v1570_v43  ;;  %v1703_v48 = vadd.f32 %v1640_v44, %v1639_v41  ;;  %2308 = vst [vmem:[%s2645_s26 + $0x80] sm:$0xff] %v2216_v58  }
  0xfd   : > { %v1704_v52 = vadd.f32 %v1703_v48, %v1641_v46  ;;  %v2374_v53 = vpop.f32.mrb[4].mxu0  ;;  %v1572_v54 = vadd.f32 %v2371_v38, %v1571_v47  ;;  %v2664_v5 = vpop.f32.mrb[4].mxu1 }
  0xfe   : > { %v816_v57 = vpop.f32.mrb[5].mxu0  ;;  %v1645_v6 = vmul.f32 %v2374_v53, %v2374_v53  ;;  %v2667_v9 = vpop.f32.mrb[5].mxu1 }
  0xff   : > { %v1573_v59 = vadd.f32 %v1572_v54, %v816_v57  ;;  %v1643_v60 = vmul.f32 %v816_v57, %v816_v57  ;;  %v1705_v61 = vadd.f32 %v1704_v52, %v1642_v51  ;;  %v2375_v62 = vpop.f32.mrb[6].mxu0  ;;  %v2669_v10 = vpop.f32.mrb[6].mxu1 }
 0x100   : > { %v2151_v63 = vpack.c.bf16 %v2375_v62, %v2374_v53  ;;  %v819_v0 = vpop.f32.mrb[7].mxu0  ;;  %v1646_v11 = vmul.f32 %v2375_v62, %v2375_v62  ;;  %v2231_v15 = vpack.c.bf16 %v2669_v10, %v2664_v5  ;;  %v2673_v16 = vpop.f32.mrb[7].mxu1 }
 0x101   : > { %v1706_v1 = vadd.f32 %v1705_v61, %v1643_v60  ;;  %v2146_v2 = vpack.c.bf16 %v819_v0, %v816_v57  ;;  %v1574_v3 = vadd.f32 %v1573_v59, %v819_v0  ;;  %v1644_v4 = vmul.f32 %v819_v0, %v819_v0 }
 0x102   : > { %2295 = vst [vmem:[%s2645_s26 + $0x18] sm:$0xff] %v2151_v63   ;;  %v2226_v18 = vpack.c.bf16 %v2673_v16, %v2667_v9  ;;  %2311 = vst [vmem:[%s2645_s26 + $0x98] sm:$0xff] %v2231_v15  }
 0x103   : > { %2294 = vst [vmem:[%s2645_s26 + $0x10] sm:$0xff] %v2146_v2   ;;  %v1575_v7 = vadd.f32 %v2374_v53, %v1574_v3  ;;  %v1707_v8 = vadd.f32 %v1706_v1, %v1644_v4 }
 0x104   : > { %2310 = vst [vmem:[%s2645_s26 + $0x90] sm:$0xff] %v2226_v18  }
 0x105   : > { %v1708_v12 = vadd.f32 %v1707_v8, %v1645_v6  ;;  %v2378_v13 = vpop.f32.mrb[8].mxu0  ;;  %v1576_v14 = vadd.f32 %v2375_v62, %v1575_v7  ;;  %v2680_v29 = vpop.f32.mrb[8].mxu1 }
 0x106   : > { %v832_v17 = vpop.f32.mrb[9].mxu0  ;;  %v1649_v30 = vmul.f32 %v2378_v13, %v2378_v13  ;;  %v2683_v33 = vpop.f32.mrb[9].mxu1 }
 0x107   : > { %v1577_v19 = vadd.f32 %v1576_v14, %v832_v17  ;;  %v1647_v20 = vmul.f32 %v832_v17, %v832_v17  ;;  %v1709_v21 = vadd.f32 %v1708_v12, %v1646_v11  ;;  %v2379_v22 = vpop.f32.mrb[10].mxu0  ;;  %v2685_v34 = vpop.f32.mrb[10].mxu1 }
 0x108   : > { %v2161_v23 = vpack.c.bf16 %v2379_v22, %v2378_v13  ;;  %v835_v24 = vpop.f32.mrb[11].mxu0  ;;  %v1650_v35 = vmul.f32 %v2379_v22, %v2379_v22  ;;  %v2241_v39 = vpack.c.bf16 %v2685_v34, %v2680_v29  ;;  %v2689_v40 = vpop.f32.mrb[11].mxu1 }
 0x109   : > { %v1710_v25 = vadd.f32 %v1709_v21, %v1647_v20  ;;  %v2156_v26 = vpack.c.bf16 %v835_v24, %v832_v17  ;;  %v1578_v27 = vadd.f32 %v1577_v19, %v835_v24  ;;  %v1648_v28 = vmul.f32 %v835_v24, %v835_v24 }
 0x10a   : > { %2297 = vst [vmem:[%s2645_s26 + $0x28] sm:$0xff] %v2161_v23   ;;  %v2236_v42 = vpack.c.bf16 %v2689_v40, %v2683_v33  ;;  %2313 = vst [vmem:[%s2645_s26 + $0xa8] sm:$0xff] %v2241_v39  }
 0x10b   : > { %2296 = vst [vmem:[%s2645_s26 + $0x20] sm:$0xff] %v2156_v26   ;;  %v1579_v31 = vadd.f32 %v2378_v13, %v1578_v27  ;;  %v1711_v32 = vadd.f32 %v1710_v25, %v1648_v28 }
 0x10c   : > { %2312 = vst [vmem:[%s2645_s26 + $0xa0] sm:$0xff] %v2236_v42  }
 0x10d   : > { %v1712_v36 = vadd.f32 %v1711_v32, %v1649_v30  ;;  %v2382_v37 = vpop.f32.mrb[12].mxu0  ;;  %v1580_v38 = vadd.f32 %v2379_v22, %v1579_v31  ;;  %v2696_v57 = vpop.f32.mrb[12].mxu1 }
 0x10e   : > { %v848_v41 = vpop.f32.mrb[13].mxu0  ;;  %v1653_v58 = vmul.f32 %v2382_v37, %v2382_v37  ;;  %v2699_v61 = vpop.f32.mrb[13].mxu1 }
 0x10f   : > { %v1581_v43 = vadd.f32 %v1580_v38, %v848_v41  ;;  %v1651_v44 = vmul.f32 %v848_v41, %v848_v41  ;;  %v1713_v46 = vadd.f32 %v1712_v36, %v1650_v35  ;;  %v2383_v47 = vpop.f32.mrb[14].mxu0  ;;  %v2701_v62 = vpop.f32.mrb[14].mxu1 }
 0x110   : > { %v2171_v48 = vpack.c.bf16 %v2383_v47, %v2382_v37  ;;  %v851_v51 = vpop.f32.mrb[15].mxu0  ;;  %v1654_v63 = vmul.f32 %v2383_v47, %v2383_v47  ;;  %v2251_v3 = vpack.c.bf16 %v2701_v62, %v2696_v57  ;;  %v2705_v4 = vpop.f32.mrb[15].mxu1 }
 0x111   : > { %v1714_v52 = vadd.f32 %v1713_v46, %v1651_v44  ;;  %v2166_v53 = vpack.c.bf16 %v851_v51, %v848_v41  ;;  %v1582_v54 = vadd.f32 %v1581_v43, %v851_v51  ;;  %v1652_v55 = vmul.f32 %v851_v51, %v851_v51 }
 0x112   : > { %2299 = vst [vmem:[%s2645_s26 + $0x38] sm:$0xff] %v2171_v48   ;;  %v2246_v7 = vpack.c.bf16 %v2705_v4, %v2699_v61  ;;  %2315 = vst [vmem:[%s2645_s26 + $0xb8] sm:$0xff] %v2251_v3  }
 0x113   : > { %2298 = vst [vmem:[%s2645_s26 + $0x30] sm:$0xff] %v2166_v53   ;;  %v1583_v59 = vadd.f32 %v2382_v37, %v1582_v54  ;;  %v1715_v60 = vadd.f32 %v1714_v52, %v1652_v55 }
 0x114   : > { %2314 = vst [vmem:[%s2645_s26 + $0xb0] sm:$0xff] %v2246_v7  }
 0x115   : > { %v1716_v0 = vadd.f32 %v1715_v60, %v1653_v58  ;;  %v2386_v1 = vpop.f32.mrb[16].mxu0  ;;  %v1584_v2 = vadd.f32 %v2383_v47, %v1583_v59  ;;  %v2712_v21 = vpop.f32.mrb[16].mxu1 }
 0x116   : > { %v864_v6 = vpop.f32.mrb[17].mxu0  ;;  %v1657_v22 = vmul.f32 %v2386_v1, %v2386_v1  ;;  %v2715_v25 = vpop.f32.mrb[17].mxu1 }
 0x117   : > { %v1585_v8 = vadd.f32 %v1584_v2, %v864_v6  ;;  %v1655_v11 = vmul.f32 %v864_v6, %v864_v6  ;;  %v1717_v12 = vadd.f32 %v1716_v0, %v1654_v63  ;;  %v2387_v13 = vpop.f32.mrb[18].mxu0  ;;  %v2717_v26 = vpop.f32.mrb[18].mxu1 }
 0x118   : > { %v2181_v14 = vpack.c.bf16 %v2387_v13, %v2386_v1  ;;  %v867_v15 = vpop.f32.mrb[19].mxu0  ;;  %v1658_v27 = vmul.f32 %v2387_v13, %v2387_v13  ;;  %v2261_v32 = vpack.c.bf16 %v2717_v26, %v2712_v21  ;;  %v2721_v35 = vpop.f32.mrb[19].mxu1 }
 0x119   : > { %v1718_v17 = vadd.f32 %v1717_v12, %v1655_v11  ;;  %v2176_v18 = vpack.c.bf16 %v867_v15, %v864_v6  ;;  %v1586_v19 = vadd.f32 %v1585_v8, %v867_v15  ;;  %v1656_v20 = vmul.f32 %v867_v15, %v867_v15 }
 0x11a   : > { %2301 = vst [vmem:[%s2645_s26 + $0x48] sm:$0xff] %v2181_v14   ;;  %v2256_v37 = vpack.c.bf16 %v2721_v35, %v2715_v25  ;;  %2317 = vst [vmem:[%s2645_s26 + $0xc8] sm:$0xff] %v2261_v32  }
 0x11b   : > { %2300 = vst [vmem:[%s2645_s26 + $0x40] sm:$0xff] %v2176_v18   ;;  %v1587_v23 = vadd.f32 %v2386_v1, %v1586_v19  ;;  %v1719_v24 = vadd.f32 %v1718_v17, %v1656_v20 }
 0x11c   : > { %2316 = vst [vmem:[%s2645_s26 + $0xc0] sm:$0xff] %v2256_v37  }
 0x11d   : > { %v1720_v28 = vadd.f32 %v1719_v24, %v1657_v22  ;;  %v2390_v30 = vpop.f32.mrb[20].mxu0  ;;  %v1588_v31 = vadd.f32 %v2387_v13, %v1587_v23  ;;  %v2728_v52 = vpop.f32.mrb[20].mxu1 }
 0x11e   : > { %v880_v36 = vpop.f32.mrb[21].mxu0  ;;  %v1661_v53 = vmul.f32 %v2390_v30, %v2390_v30  ;;  %v2731_v58 = vpop.f32.mrb[21].mxu1 }
 0x11f   : > { %v1589_v38 = vadd.f32 %v1588_v31, %v880_v36  ;;  %v1659_v39 = vmul.f32 %v880_v36, %v880_v36  ;;  %v1721_v41 = vadd.f32 %v1720_v28, %v1658_v27  ;;  %v2391_v42 = vpop.f32.mrb[22].mxu0  ;;  %v2733_v59 = vpop.f32.mrb[22].mxu1 }
 0x120   : > { %v2191_v43 = vpack.c.bf16 %v2391_v42, %v2390_v30  ;;  %v883_v44 = vpop.f32.mrb[23].mxu0  ;;  %v1662_v60 = vmul.f32 %v2391_v42, %v2391_v42  ;;  %v2271_v2 = vpack.c.bf16 %v2733_v59, %v2728_v52  ;;  %v2737_v3 = vpop.f32.mrb[23].mxu1 }
 0x121   : > { %v1722_v46 = vadd.f32 %v1721_v41, %v1659_v39  ;;  %v2186_v47 = vpack.c.bf16 %v883_v44, %v880_v36  ;;  %v1590_v48 = vadd.f32 %v1589_v38, %v883_v44  ;;  %v1660_v51 = vmul.f32 %v883_v44, %v883_v44 }
 0x122   : > { %2303 = vst [vmem:[%s2645_s26 + $0x58] sm:$0xff] %v2191_v43   ;;  %v2266_v7 = vpack.c.bf16 %v2737_v3, %v2731_v58  ;;  %2319 = vst [vmem:[%s2645_s26 + $0xd8] sm:$0xff] %v2271_v2  }
 0x123   : > { %2302 = vst [vmem:[%s2645_s26 + $0x50] sm:$0xff] %v2186_v47   ;;  %v1591_v54 = vadd.f32 %v2390_v30, %v1590_v48  ;;  %v1723_v55 = vadd.f32 %v1722_v46, %v1660_v51 }
 0x124   : > { %2318 = vst [vmem:[%s2645_s26 + $0xd0] sm:$0xff] %v2266_v7   ;;  %v1671_v7 = vmul.f32 %v2651_v49, %v2651_v49 }
 0x125   : > { %v1724_v63 = vadd.f32 %v1723_v55, %v1661_v53  ;;  %v2394_v0 = vpop.f32.mrb[24].mxu0  ;;  %v1592_v1 = vadd.f32 %v2391_v42, %v1591_v54  ;;  %v2744_v22 = vpop.f32.mrb[24].mxu1 }
 0x126   : > { %v896_v6 = vpop.f32.mrb[25].mxu0  ;;  %v1665_v23 = vmul.f32 %v2394_v0, %v2394_v0  ;;  %v2747_v28 = vpop.f32.mrb[25].mxu1 }
 0x127   : > { %v1593_v8 = vadd.f32 %v1592_v1, %v896_v6  ;;  %v1663_v11 = vmul.f32 %v896_v6, %v896_v6  ;;  %v1725_v12 = vadd.f32 %v1724_v63, %v1662_v60  ;;  %v2395_v13 = vpop.f32.mrb[26].mxu0  ;;  %v2749_v30 = vpop.f32.mrb[26].mxu1 }
 0x128   : > { %v2201_v14 = vpack.c.bf16 %v2395_v13, %v2394_v0  ;;  %v899_v15 = vpop.f32.mrb[27].mxu0  ;;  %v1666_v31 = vmul.f32 %v2395_v13, %v2395_v13  ;;  %v2281_v38 = vpack.c.bf16 %v2749_v30, %v2744_v22  ;;  %v2753_v39 = vpop.f32.mrb[27].mxu1 }
 0x129   : > { %v1726_v17 = vadd.f32 %v1725_v12, %v1663_v11  ;;  %v2196_v18 = vpack.c.bf16 %v899_v15, %v896_v6  ;;  %v1594_v19 = vadd.f32 %v1593_v8, %v899_v15  ;;  %v1664_v20 = vmul.f32 %v899_v15, %v899_v15 }
 0x12a   : > { %2305 = vst [vmem:[%s2645_s26 + $0x68] sm:$0xff] %v2201_v14   ;;  %v2276_v42 = vpack.c.bf16 %v2753_v39, %v2747_v28  ;;  %2321 = vst [vmem:[%s2645_s26 + $0xe8] sm:$0xff] %v2281_v38   ;;  %v1675_v38 = vmul.f32 %v2667_v9, %v2667_v9 }
 0x12b   : > { %2304 = vst [vmem:[%s2645_s26 + $0x60] sm:$0xff] %v2196_v18   ;;  %v1595_v24 = vadd.f32 %v2394_v0, %v1594_v19  ;;  %v1727_v27 = vadd.f32 %v1726_v17, %v1664_v20 }
 0x12c   : > { %2320 = vst [vmem:[%s2645_s26 + $0xe0] sm:$0xff] %v2276_v42  }
 0x12d   : > { %v1728_v32 = vadd.f32 %v1727_v27, %v1665_v23  ;;  %v2398_v36 = vpop.f32.mrb[28].mxu0  ;;  %v1596_v37 = vadd.f32 %v2395_v13, %v1595_v24  ;;  %v2760_v63 = vpop.f32.mrb[28].mxu1  ;;  %v1672_v24 = vmul.f32 %v2657_v56, %v2657_v56  ;;  %v1673_v27 = vmul.f32 %v2648_v45, %v2648_v45 }
 0x12e   : > { %v912_v41 = vpop.f32.mrb[29].mxu0  ;;  %v1669_v0 = vmul.f32 %v2398_v36, %v2398_v36  ;;  %v2763_v6 = vpop.f32.mrb[29].mxu1 }
 0x12f   : > { %v1597_v43 = vadd.f32 %v1596_v37, %v912_v41  ;;  %v1667_v44 = vmul.f32 %v912_v41, %v912_v41  ;;  %v1729_v46 = vadd.f32 %v1728_v32, %v1666_v31  ;;  %v2399_v47 = vpop.f32.mrb[30].mxu0  ;;  %v2767_v8 = vpop.f32.mrb[30].mxu1 }
 0x130   : > { %v2211_v48 = vpack.c.bf16 %v2399_v47, %v2398_v36  ;;  %v915_v51 = vpop.f32.mrb[31].mxu0  ;;  %v1670_v11 = vmul.f32 %v2399_v47, %v2399_v47  ;;  %v2291_v14 = vpack.c.bf16 %v2767_v8, %v2760_v63  ;;  %v2771_v15 = vpop.f32.mrb[31].mxu1 }
 0x131   : > { %v1730_v53 = vadd.f32 %v1729_v46, %v1667_v44  ;;  %v2206_v54 = vpack.c.bf16 %v915_v51, %v912_v41  ;;  %v1598_v55 = vadd.f32 %v1597_v43, %v915_v51  ;;  %v1668_v60 = vmul.f32 %v915_v51, %v915_v51 }
 0x132   : > { %2307 = vst [vmem:[%s2645_s26 + $0x78] sm:$0xff] %v2211_v48   ;;  %v2286_v17 = vpack.c.bf16 %v2771_v15, %v2763_v6  ;;  %2323 = vst [vmem:[%s2645_s26 + $0xf8] sm:$0xff] %v2291_v14   ;;  %v1676_v44 = vmul.f32 %v2673_v16, %v2673_v16  ;;  %v1684_v14 = vmul.f32 %v2705_v4, %v2705_v4 }
 0x133   : > { %2306 = vst [vmem:[%s2645_s26 + $0x70] sm:$0xff] %v2206_v54   ;;  %v1599_v1 = vadd.f32 %v2398_v36, %v1598_v55  ;;  %v1731_v2 = vadd.f32 %v1730_v53, %v1668_v60  ;;  %v1674_v36 = vmul.f32 %v2653_v50, %v2653_v50  ;;  %v1680_v60 = vmul.f32 %v2689_v40, %v2689_v40 }
 0x134   : > { %2322 = vst [vmem:[%s2645_s26 + $0xf0] sm:$0xff] %v2286_v17  }
 0x135   : > { %v1732_v12 = vadd.f32 %v1731_v2, %v1669_v0  ;;  %v1600_v13 = vadd.f32 %v2399_v47, %v1599_v1 }
 0x137   : > { %v1601_v18 = vadd.f32 %v1600_v13, %v2651_v49  ;;  %v1733_v19 = vadd.f32 %v1732_v12, %v1670_v11 }
 0x139   : > { %v1734_v20 = vadd.f32 %v1733_v19, %v1671_v7  ;;  %v1602_v23 = vadd.f32 %v1601_v18, %v2657_v56 }
 0x13b   : > { %v1603_v31 = vadd.f32 %v2648_v45, %v1602_v23  ;;  %v1735_v32 = vadd.f32 %v1734_v20, %v1672_v24  ;;  %v1677_v45 = vmul.f32 %v2664_v5, %v2664_v5 }
 0x13d   : > { %v1736_v37 = vadd.f32 %v1735_v32, %v1673_v27  ;;  %v1604_v49 = vadd.f32 %v2653_v50, %v1603_v31  ;;  %v1678_v50 = vmul.f32 %v2669_v10, %v2669_v10  ;;  %v1688_v31 = vmul.f32 %v2721_v35, %v2721_v35 }
 0x13f   : > { %v1605_v41 = vadd.f32 %v1604_v49, %v2667_v9  ;;  %v1737_v42 = vadd.f32 %v1736_v37, %v1674_v36  ;;  %v1679_v9 = vmul.f32 %v2683_v33, %v2683_v33 }
 0x141   : > { %v1738_v43 = vadd.f32 %v1737_v42, %v1675_v38  ;;  %v1606_v56 = vadd.f32 %v1605_v41, %v2673_v16 }
 0x143   : > { %v1607_v46 = vadd.f32 %v2664_v5, %v1606_v56  ;;  %v1739_v47 = vadd.f32 %v1738_v43, %v1676_v44  ;;  %v1681_v5 = vmul.f32 %v2680_v29, %v2680_v29  ;;  %v1692_v43 = vmul.f32 %v2737_v3, %v2737_v3 }
 0x145   : > { %v1740_v48 = vadd.f32 %v1739_v47, %v1677_v45  ;;  %v1608_v51 = vadd.f32 %v2669_v10, %v1607_v46  ;;  %v1682_v10 = vmul.f32 %v2685_v34, %v2685_v34 }
 0x147   : > { %v1609_v53 = vadd.f32 %v1608_v51, %v2683_v33  ;;  %v1741_v54 = vadd.f32 %v1740_v48, %v1678_v50  ;;  %v1683_v33 = vmul.f32 %v2699_v61, %v2699_v61  ;;  %v1696_v51 = vmul.f32 %v2753_v39, %v2753_v39 }
 0x149   : > { %v1742_v55 = vadd.f32 %v1741_v54, %v1679_v9  ;;  %v1610_v16 = vadd.f32 %v1609_v53, %v2689_v40 }
 0x14b   : > { %v1611_v0 = vadd.f32 %v2680_v29, %v1610_v16  ;;  %v1743_v1 = vadd.f32 %v1742_v55, %v1680_v60  ;;  %v1685_v29 = vmul.f32 %v2696_v57, %v2696_v57 }
 0x14d   : > { %v1744_v2 = vadd.f32 %v1743_v1, %v1681_v5  ;;  %v1612_v7 = vadd.f32 %v2685_v34, %v1611_v0  ;;  %v1686_v34 = vmul.f32 %v2701_v62, %v2701_v62  ;;  %v1700_v0 = vmul.f32 %v2771_v15, %v2771_v15 }
 0x14f   : > { %v1613_v11 = vadd.f32 %v1612_v7, %v2699_v61  ;;  %v1745_v12 = vadd.f32 %v1744_v2, %v1682_v10  ;;  %v1687_v61 = vmul.f32 %v2715_v25, %v2715_v25 }
 0x151   : > { %v1746_v13 = vadd.f32 %v1745_v12, %v1683_v33  ;;  %v1614_v40 = vadd.f32 %v1613_v11, %v2705_v4 }
 0x153   : > { %v1615_v17 = vadd.f32 %v2696_v57, %v1614_v40  ;;  %v1747_v18 = vadd.f32 %v1746_v13, %v1684_v14  ;;  %v1689_v57 = vmul.f32 %v2712_v21, %v2712_v21 }
 0x155   : > { %v1748_v19 = vadd.f32 %v1747_v18, %v1685_v29  ;;  %v1616_v20 = vadd.f32 %v2701_v62, %v1615_v17  ;;  %v1690_v62 = vmul.f32 %v2717_v26, %v2717_v26 }
 0x157   : > { %v1617_v23 = vadd.f32 %v1616_v20, %v2715_v25  ;;  %v1749_v24 = vadd.f32 %v1748_v19, %v1686_v34  ;;  %v1691_v25 = vmul.f32 %v2731_v58, %v2731_v58 }
 0x159   : > { %v1750_v27 = vadd.f32 %v1749_v24, %v1687_v61  ;;  %v1618_v4 = vadd.f32 %v1617_v23, %v2721_v35 }
 0x15b   : > { %v1619_v32 = vadd.f32 %v2712_v21, %v1618_v4  ;;  %v1751_v36 = vadd.f32 %v1750_v27, %v1688_v31  ;;  %v1693_v21 = vmul.f32 %v2728_v52, %v2728_v52 }
 0x15d   : > { %v1752_v37 = vadd.f32 %v1751_v36, %v1689_v57  ;;  %v1620_v49 = vadd.f32 %v2717_v26, %v1619_v32  ;;  %v1694_v26 = vmul.f32 %v2733_v59, %v2733_v59 }
 0x15f   : > { %v1621_v38 = vadd.f32 %v1620_v49, %v2731_v58  ;;  %v1753_v41 = vadd.f32 %v1752_v37, %v1690_v62  ;;  %v1695_v58 = vmul.f32 %v2747_v28, %v2747_v28 }
 0x161   : > { %v1754_v42 = vadd.f32 %v1753_v41, %v1691_v25  ;;  %v1622_v35 = vadd.f32 %v1621_v38, %v2737_v3 }
 0x163   : > { %v1623_v56 = vadd.f32 %v2728_v52, %v1622_v35  ;;  %v1755_v44 = vadd.f32 %v1754_v42, %v1692_v43  ;;  %v1697_v52 = vmul.f32 %v2744_v22, %v2744_v22 }
 0x165   : > { %v1756_v45 = vadd.f32 %v1755_v44, %v1693_v21  ;;  %v1624_v46 = vadd.f32 %v2733_v59, %v1623_v56  ;;  %v1698_v59 = vmul.f32 %v2749_v30, %v2749_v30 }
 0x167   : > { %v1625_v47 = vadd.f32 %v1624_v46, %v2747_v28  ;;  %v1757_v50 = vadd.f32 %v1756_v45, %v1694_v26  ;;  %v1699_v28 = vmul.f32 %v2763_v6, %v2763_v6 }
 0x169   : > { %v1758_v48 = vadd.f32 %v1757_v50, %v1695_v58  ;;  %v1626_v3 = vadd.f32 %v1625_v47, %v2753_v39 }
 0x16b   : > { %v1627_v9 = vadd.f32 %v2744_v22, %v1626_v3  ;;  %v1759_v53 = vadd.f32 %v1758_v48, %v1696_v51  ;;  %v1701_v22 = vmul.f32 %v2760_v63, %v2760_v63 }
 0x16d   : > { %v1760_v54 = vadd.f32 %v1759_v53, %v1697_v52  ;;  %v1628_v55 = vadd.f32 %v2749_v30, %v1627_v9  ;;  %v1702_v30 = vmul.f32 %v2767_v8, %v2767_v8 }
 0x16f   : > { %v1629_v16 = vadd.f32 %v1628_v55, %v2763_v6  ;;  %v1761_v60 = vadd.f32 %v1760_v54, %v1698_v59 }
 0x171   : > { %v1762_v5 = vadd.f32 %v1761_v60, %v1699_v28  ;;  %v1630_v39 = vadd.f32 %v1629_v16, %v2771_v15 }
 0x173   : > { %v1631_v1 = vadd.f32 %v2760_v63, %v1630_v39  ;;  %v1763_v10 = vadd.f32 %v1762_v5, %v1700_v0 }
 0x175   : > { %v1632_v2 = vadd.f32 %v2767_v8, %v1631_v1  ;;  %v1764_v6 = vadd.f32 %v1763_v10, %v1701_v22 }
 0x177   : > { %v1633_v7 = vrot.slane %v1632_v2, 4  ;;  %v1765_v33 = vadd.f32 %v1764_v6, %v1702_v30 }
 0x179   : > { %v1634_v11 = vadd.f32 %v1633_v7, %v1632_v2  ;;  %v1766_v12 = vrot.slane %v1765_v33, 4 }
 0x17b   : > { %v1635_v13 = vrot.slane %v1634_v11, 2  ;;  %v1767_v40 = vadd.f32 %v1766_v12, %v1765_v33 }
 0x17d   : > { %v1636_v15 = vadd.f32 %v1635_v13, %v1634_v11  ;;  %v1768_v14 = vrot.slane %v1767_v40, 2 }
 0x17f   : > { %v1637_v29 = vrot.slane %v1636_v15, 1  ;;  %v1769_v17 = vadd.f32 %v1768_v14, %v1767_v40 }
 0x181   : > { %v1770_v18 = vrot.slane %v1769_v17, 1  ;;  %v1638_v63 = vadd.f32 %v1637_v29, %v1636_v15 }
 0x183   : > { %v1771_v8 = vadd.f32 %v1770_v18, %v1769_v17 }
 0x185   : > { %v1773_v34 = vsel %vm1772_vm1, %v1638_v63, %v1771_v8 }
 0x186   : > { %1774 = vst [vmem:[%s278_s30] sm:$0x3] %v1773_v34 }
 0x187 PF: > { %s14_s14 = sadd.s32 1, %s2522_s14   ;;  %s2888_s12 = smov %s2518_s13 }
 0x188   : > { %p11_p5 = scmp.ge.s32.totalorder %s14_s14, 6   ;;  %s2889_s13 = smov %s2891_s15 }
 0x18a   :  { %13 = sbr.rel (!%p11_p5) target bundleno = 2 (0x2), region = 81 }

// kernel: generator_forward.17
= control target key start
LH: loop header
LB: loop body
LE: loop exit
PB: predicated region body
PF: predicated region fallthrough
CT: control target
= control target key end

     0   :  { %s1878_s9 = smov 0   ;;  %s1880_s10 = smov 0   ;;  %s2068_s0 = inlined_call_operand.vmem [shape: bf16[4,2048,32], index: 0, kind: input, shape index: {}]   ;;  %s2069_s1 = inlined_call_operand.vmem [shape: bf16[4,32,128], index: 1, kind: input, shape index: {}]   ;;  %s2070_s2 = inlined_call_operand.vmem [shape: f32[4,2048,128], index: 2, kind: output, shape index: {}]  }
   0x1   :  { %s1882_s11 = smov 0   ;;  %s1884_s12 = smov 0  }
   0x2   :  { %s1886_s13 = smov 0  }
   0x3 LB: > { %s27_s14 = sadd.s32 1, %s1853_s11  ;;  %s31_s15 = sadd.s32 1, %s1857_s12  ;;  %s1861_s13 = sphi %s1886_s13, %s12_s13   ;;  %s1857_s12 = sphi %s1884_s12, %s2074_s12   ;;  %s1853_s11 = sphi %s1882_s11, %s2073_s11   ;;  %s1849_s10 = sphi %s1880_s10, %s2072_s10   ;;  %s1845_s9 = sphi %s1878_s9, %s2071_s9  }
   0x4   : > { %p29_p0 = scmp.ge.s32.totalorder %s27_s14, 4  ;;  %p1437_p1 = scmp.ge.s32.totalorder %s1861_s13, 1 }
   0x5   : > { %p162_p2 = scmp.lt.s32.totalorder %s1861_s13, 17 }
   0x6   : > { %s2076_s14 = smov (%p29_p0, %s27_s14), 0  ;;  %s2078_s15 = smov (!%p29_p0, %s31_s15), %s1857_s12 }
   0x7   : > { %p163_p3 = pnand %p1437_p1, %p162_p2  ;;  %p33_p4 = scmp.ge.s32.totalorder %s2078_s15, 4 }
   0x8   : > { %s1438_s16 = sshll.u32 (!%p163_p3), %s1845_s9, 6  ;;  %p205_p5 = scmp.lt.s32.totalorder (!%p163_p3), %s1849_s10, 3  ;;  %vm610_vm0 = vcmask (!%p163_p3), 261120  }
   0x9   : > { %s2080_s15 = smov (%p33_p4, %s2078_s15), 0  ;;  %166 = sbr.rel (%p163_p3) target bundleno = 318 (0x13e), region = 28 }
   0xa   : > { %p207_p6 = scmp.lt.s32.totalorder (!%p163_p3), %s1438_s16, 255 }
  0x10   : > { %s2082_s10 = smov (!%p205_p5, %s1849_s10), 3  ;;  %s2084_s16 = smov (!%p207_p6, %s1438_s16), 255 }
  0x11   : > { %s1439_s17 = sshll.u32 %s2082_s10, 8  ;;  %s1514_s18 = sshll.u32 %s2082_s10, 4 }
  0x12   : > { %s1908_s19 = sadd.s32 %s1439_s17, %s2084_s16  ;;  %s225_s22 = scalar_lea.vmem %s2069_s1, %s1514_s18 }
  0x13   : > { %s1440_s23 = sshll.u32 %s1908_s19, 2  ;;  %v1661_v0 = vld [vmem:[%s225_s22] sm:$0xff]   ;;  %v1662_v1 = vld [vmem:[%s225_s22 + $0x8] sm:$0xff]   ;;  %s1445_s27 = sshll.u32 %s1908_s19, 3 }
  0x14   : > { %s1917_s26 = scalar_lea.vmem %s2068_s0, %s1440_s23  ;;  %1549 = vmatprep.subr.bf16.mxu0 %v1661_v0  ;;  %1617 = vmatprep.subr.bf16.mxu1 %v1661_v0  ;;  %s1987_s30 = scalar_lea.vmem %s2070_s2, %s1445_s27 }
  0x15   : > { %v1663_v2 = vld [vmem:[%s1917_s26] sm:$0xff]   ;;  %1550 = vmatpush3.bf16.msra.mxu0 %v1661_v0  ;;  %1619 = vmatpush3.bf16.msra.mxu1 %v1661_v0  ;;  %v1665_v4 = vld [vmem:[%s1917_s26 + $0x8] sm:$0xff]   ;;  %v1667_v6 = vld [vmem:[%s1917_s26 + $0x10] sm:$0xff]  }
  0x16   : > { %v1664_v3 = vld [vmem:[%s1917_s26 + $0x80] sm:$0xff]   ;;  %1551 = vmatprep.subr.bf16.mxu0 %v1662_v1  ;;  %1618 = vmatprep.subr.bf16.mxu1 %v1662_v1  ;;  %v1666_v5 = vld [vmem:[%s1917_s26 + $0x88] sm:$0xff]   ;;  %v1668_v7 = vld [vmem:[%s1917_s26 + $0x90] sm:$0xff]  }
  0x17   : > { %1553 = vmatprep.mubr.msk.bf16.mxu0 %vm610_vm0, %v1663_v2  ;;  %1585 = vmatprep.mubr.msk.bf16.mxu1 %vm610_vm0, %v1664_v3  ;;  %v1669_v8 = vld [vmem:[%s1917_s26 + $0x18] sm:$0xff]   ;;  %v1671_v10 = vld [vmem:[%s1917_s26 + $0x20] sm:$0xff]   ;;  %v1673_v12 = vld [vmem:[%s1917_s26 + $0x28] sm:$0xff]  }
  0x18   : > { %v1670_v9 = vld [vmem:[%s1917_s26 + $0x98] sm:$0xff]   ;;  %v1672_v11 = vld [vmem:[%s1917_s26 + $0xa0] sm:$0xff]   ;;  %v1674_v13 = vld [vmem:[%s1917_s26 + $0xa8] sm:$0xff]  }
  0x19   : > { %1552 = vmatpush3.bf16.msra.mxu0 %v1662_v1  ;;  %1620 = vmatpush3.bf16.msra.mxu1 %v1662_v1  ;;  %v1675_v14 = vld [vmem:[%s1917_s26 + $0x30] sm:$0xff]   ;;  %v1677_v16 = vld [vmem:[%s1917_s26 + $0x38] sm:$0xff]   ;;  %v1679_v18 = vld [vmem:[%s1917_s26 + $0x40] sm:$0xff]  }
  0x1a   : > { %v1676_v15 = vld [vmem:[%s1917_s26 + $0xb0] sm:$0xff]   ;;  %v1678_v17 = vld [vmem:[%s1917_s26 + $0xb8] sm:$0xff]   ;;  %v1680_v19 = vld [vmem:[%s1917_s26 + $0xc0] sm:$0xff]  }
  0x1b   : > { %v1681_v20 = vld [vmem:[%s1917_s26 + $0x48] sm:$0xff]   ;;  %v1683_v22 = vld [vmem:[%s1917_s26 + $0x50] sm:$0xff]   ;;  %v1685_v24 = vld [vmem:[%s1917_s26 + $0x58] sm:$0xff]  }
  0x1c   : > { %1554 = vmatmul.mubr.msk.bf16.vlgmr.msra.gmra.mrb[0].mxu0 %vm610_vm0, %v1665_v4  ;;  %1586 = vmatmul.mubr.msk.bf16.vlgmr.msra.gmra.mrb[0].mxu1 %vm610_vm0, %v1666_v5  ;;  %v1682_v21 = vld [vmem:[%s1917_s26 + $0xc8] sm:$0xff]   ;;  %v1684_v23 = vld [vmem:[%s1917_s26 + $0xd0] sm:$0xff]   ;;  %v1686_v25 = vld [vmem:[%s1917_s26 + $0xd8] sm:$0xff]  }
  0x1d   : > { %1557 = vmatprep.mubr.msk.bf16.mxu0 %vm610_vm0, %v1667_v6  ;;  %1589 = vmatprep.mubr.msk.bf16.mxu1 %vm610_vm0, %v1668_v7  ;;  %v1687_v26 = vld [vmem:[%s1917_s26 + $0x60] sm:$0xff]   ;;  %v1689_v28 = vld [vmem:[%s1917_s26 + $0x68] sm:$0xff]   ;;  %v1691_v30 = vld [vmem:[%s1917_s26 + $0x70] sm:$0xff]  }
  0x1e   : > { %v1688_v27 = vld [vmem:[%s1917_s26 + $0xe0] sm:$0xff]   ;;  %v1690_v29 = vld [vmem:[%s1917_s26 + $0xe8] sm:$0xff]   ;;  %v1692_v31 = vld [vmem:[%s1917_s26 + $0xf0] sm:$0xff]  }
  0x1f   : > { %v1693_v32 = vld [vmem:[%s1917_s26 + $0x78] sm:$0xff]  }
  0x20   : > { %v1694_v33 = vld [vmem:[%s1917_s26 + $0xf8] sm:$0xff]  }
  0x24   : > { %1558 = vmatmul.mubr.msk.bf16.gmra.mrb[4].mxu0 %vm610_vm0, %v1669_v8  ;;  %1590 = vmatmul.mubr.msk.bf16.gmra.mrb[4].mxu1 %vm610_vm0, %v1670_v9 }
  0x25   : > { %1561 = vmatprep.mubr.msk.bf16.mxu0 %vm610_vm0, %v1671_v10  ;;  %1593 = vmatprep.mubr.msk.bf16.mxu1 %vm610_vm0, %v1672_v11 }
  0x2c   : > { %1562 = vmatmul.mubr.msk.bf16.gmra.mrb[8].mxu0 %vm610_vm0, %v1673_v12  ;;  %1594 = vmatmul.mubr.msk.bf16.gmra.mrb[8].mxu1 %vm610_vm0, %v1674_v13 }
  0x2d   : > { %1565 = vmatprep.mubr.msk.bf16.mxu0 %vm610_vm0, %v1675_v14  ;;  %1597 = vmatprep.mubr.msk.bf16.mxu1 %vm610_vm0, %v1676_v15 }
  0x34   : > { %1566 = vmatmul.mubr.msk.bf16.gmra.mrb[12].mxu0 %vm610_vm0, %v1677_v16  ;;  %1598 = vmatmul.mubr.msk.bf16.gmra.mrb[12].mxu1 %vm610_vm0, %v1678_v17 }
  0x35   : > { %1569 = vmatprep.mubr.msk.bf16.mxu0 %vm610_vm0, %v1679_v18  ;;  %1601 = vmatprep.mubr.msk.bf16.mxu1 %vm610_vm0, %v1680_v19 }
  0x3c   : > { %1570 = vmatmul.mubr.msk.bf16.gmra.mrb[16].mxu0 %vm610_vm0, %v1681_v20  ;;  %1602 = vmatmul.mubr.msk.bf16.gmra.mrb[16].mxu1 %vm610_vm0, %v1682_v21 }
  0x3d   : > { %1573 = vmatprep.mubr.msk.bf16.mxu0 %vm610_vm0, %v1683_v22  ;;  %1605 = vmatprep.mubr.msk.bf16.mxu1 %vm610_vm0, %v1684_v23 }
  0x44   : > { %1574 = vmatmul.mubr.msk.bf16.gmra.mrb[20].mxu0 %vm610_vm0, %v1685_v24  ;;  %1606 = vmatmul.mubr.msk.bf16.gmra.mrb[20].mxu1 %vm610_vm0, %v1686_v25 }
  0x45   : > { %1577 = vmatprep.mubr.msk.bf16.mxu0 %vm610_vm0, %v1687_v26  ;;  %1609 = vmatprep.mubr.msk.bf16.mxu1 %vm610_vm0, %v1688_v27 }
  0x4c   : > { %1578 = vmatmul.mubr.msk.bf16.gmra.mrb[24].mxu0 %vm610_vm0, %v1689_v28  ;;  %1610 = vmatmul.mubr.msk.bf16.gmra.mrb[24].mxu1 %vm610_vm0, %v1690_v29 }
  0x4d   : > { %1581 = vmatprep.mubr.msk.bf16.mxu0 %vm610_vm0, %v1691_v30  ;;  %1613 = vmatprep.mubr.msk.bf16.mxu1 %vm610_vm0, %v1692_v31 }
  0x54   : > { %1582 = vmatmul.mubr.msk.bf16.gmra.mrb[28].mxu0 %vm610_vm0, %v1693_v32  ;;  %1614 = vmatmul.mubr.msk.bf16.gmra.mrb[28].mxu1 %vm610_vm0, %v1694_v33 }
  0xef   : > { %v1555_v34 = vpop.f32.mrb[0].mxu0  ;;  %v1587_v35 = vpop.f32.mrb[0].mxu1 }
  0xf0   : > { %1695 = vtanh.f32 %v1555_v34  ;;  %v741_v36 = vpop.f32.mrb[1].mxu0  ;;  %v869_v37 = vpop.f32.mrb[1].mxu1 }
  0xf1   : > { %1697 = vtanh.f32 %v1587_v35  ;;  %v1556_v38 = vpop.f32.mrb[2].mxu0  ;;  %v1588_v39 = vpop.f32.mrb[2].mxu1 }
  0xf2   : > { %1699 = vtanh.f32 %v741_v36  ;;  %v744_v40 = vpop.f32.mrb[3].mxu0  ;;  %v872_v41 = vpop.f32.mrb[3].mxu1 }
  0xf3   : > { %1701 = vtanh.f32 %v869_v37 }
  0xf4   : > { %1703 = vtanh.f32 %v1556_v38 }
  0xf5   : > { %1705 = vtanh.f32 %v1588_v39 }
  0xf6   : > { %1707 = vtanh.f32 %v744_v40 }
  0xf7   : > { %1709 = vtanh.f32 %v872_v41  ;;  %v1559_v42 = vpop.f32.mrb[4].mxu0  ;;  %v1591_v43 = vpop.f32.mrb[4].mxu1 }
  0xf8   : > { %1711 = vtanh.f32 %v1559_v42  ;;  %v757_v44 = vpop.f32.mrb[5].mxu0  ;;  %v885_v45 = vpop.f32.mrb[5].mxu1 }
  0xf9   : > { %1713 = vtanh.f32 %v1591_v43  ;;  %v1560_v46 = vpop.f32.mrb[6].mxu0  ;;  %v1592_v47 = vpop.f32.mrb[6].mxu1 }
  0xfa   : > { %v1696_v48 = vpop.eup %1695  ;;  %1715 = vtanh.f32 %v757_v44  ;;  %v760_v49 = vpop.f32.mrb[7].mxu0 }
  0xfb   : > { %v888_v50 = vpop.f32.mrb[7].mxu1  ;;  %v1698_v51 = vpop.eup %1697  ;;  %1257 = vst [vmem:[%s1987_s30 + $0x10] sm:$0xff] %v1696_v48  ;;  %1717 = vtanh.f32 %v885_v45 }
  0xfc   : > { %v1700_v52 = vpop.eup %1699  ;;  %1289 = vst [vmem:[%s1987_s30 + $0x110] sm:$0xff] %v1698_v51  ;;  %1719 = vtanh.f32 %v1560_v46 }
  0xfd   : > { %v1702_v53 = vpop.eup %1701  ;;  %1255 = vst [vmem:[%s1987_s30] sm:$0xff] %v1700_v52  ;;  %1721 = vtanh.f32 %v1592_v47 }
  0xfe   : > { %v1704_v54 = vpop.eup %1703  ;;  %1287 = vst [vmem:[%s1987_s30 + $0x100] sm:$0xff] %v1702_v53  ;;  %1723 = vtanh.f32 %v760_v49 }
  0xff   : > { %v1706_v55 = vpop.eup %1705  ;;  %1258 = vst [vmem:[%s1987_s30 + $0x18] sm:$0xff] %v1704_v54  ;;  %1725 = vtanh.f32 %v888_v50  ;;  %v1563_v56 = vpop.f32.mrb[8].mxu0 }
 0x100   : > { %v1595_v57 = vpop.f32.mrb[8].mxu1  ;;  %v1708_v58 = vpop.eup %1707  ;;  %1290 = vst [vmem:[%s1987_s30 + $0x118] sm:$0xff] %v1706_v55  ;;  %1727 = vtanh.f32 %v1563_v56 }
 0x101   : > { %v773_v59 = vpop.f32.mrb[9].mxu0  ;;  %v901_v60 = vpop.f32.mrb[9].mxu1  ;;  %1256 = vst [vmem:[%s1987_s30 + $0x8] sm:$0xff] %v1708_v58  ;;  %1729 = vtanh.f32 %v1595_v57 }
 0x102   : > { %v1710_v61 = vpop.eup %1709  ;;  %v1564_v62 = vpop.f32.mrb[10].mxu0  ;;  %1731 = vtanh.f32 %v773_v59 }
 0x103   : > { %v1596_v63 = vpop.f32.mrb[10].mxu1  ;;  %v1712_v0 = vpop.eup %1711  ;;  %1288 = vst [vmem:[%s1987_s30 + $0x108] sm:$0xff] %v1710_v61  ;;  %1733 = vtanh.f32 %v901_v60 }
 0x104   : > { %v776_v1 = vpop.f32.mrb[11].mxu0  ;;  %v904_v2 = vpop.f32.mrb[11].mxu1  ;;  %1261 = vst [vmem:[%s1987_s30 + $0x30] sm:$0xff] %v1712_v0  ;;  %1735 = vtanh.f32 %v1564_v62 }
 0x105   : > { %v1714_v3 = vpop.eup %1713  ;;  %1737 = vtanh.f32 %v1596_v63 }
 0x106   : > { %v1716_v4 = vpop.eup %1715  ;;  %1293 = vst [vmem:[%s1987_s30 + $0x130] sm:$0xff] %v1714_v3  ;;  %1739 = vtanh.f32 %v776_v1 }
 0x107   : > { %v1718_v5 = vpop.eup %1717  ;;  %1259 = vst [vmem:[%s1987_s30 + $0x20] sm:$0xff] %v1716_v4  ;;  %1741 = vtanh.f32 %v904_v2  ;;  %v1567_v8 = vpop.f32.mrb[12].mxu0 }
 0x108   : > { %v1720_v6 = vpop.eup %1719  ;;  %1291 = vst [vmem:[%s1987_s30 + $0x120] sm:$0xff] %v1718_v5  ;;  %v1599_v9 = vpop.f32.mrb[12].mxu1  ;;  %1743 = vtanh.f32 %v1567_v8 }
 0x109   : > { %v1722_v7 = vpop.eup %1721  ;;  %1262 = vst [vmem:[%s1987_s30 + $0x38] sm:$0xff] %v1720_v6  ;;  %v789_v11 = vpop.f32.mrb[13].mxu0  ;;  %1745 = vtanh.f32 %v1599_v9 }
 0x10a   : > { %v1724_v10 = vpop.eup %1723  ;;  %1294 = vst [vmem:[%s1987_s30 + $0x138] sm:$0xff] %v1722_v7  ;;  %v917_v12 = vpop.f32.mrb[13].mxu1  ;;  %1747 = vtanh.f32 %v789_v11 }
 0x10b   : > { %v1726_v13 = vpop.eup %1725  ;;  %1260 = vst [vmem:[%s1987_s30 + $0x28] sm:$0xff] %v1724_v10  ;;  %v1568_v14 = vpop.f32.mrb[14].mxu0  ;;  %1749 = vtanh.f32 %v917_v12 }
 0x10c   : > { %v1600_v15 = vpop.f32.mrb[14].mxu1  ;;  %v1728_v16 = vpop.eup %1727  ;;  %1292 = vst [vmem:[%s1987_s30 + $0x128] sm:$0xff] %v1726_v13  ;;  %1751 = vtanh.f32 %v1568_v14 }
 0x10d   : > { %v792_v17 = vpop.f32.mrb[15].mxu0  ;;  %v920_v18 = vpop.f32.mrb[15].mxu1  ;;  %1265 = vst [vmem:[%s1987_s30 + $0x50] sm:$0xff] %v1728_v16  ;;  %1753 = vtanh.f32 %v1600_v15 }
 0x10e   : > { %v1730_v19 = vpop.eup %1729  ;;  %1755 = vtanh.f32 %v792_v17 }
 0x10f   : > { %v1732_v20 = vpop.eup %1731  ;;  %1297 = vst [vmem:[%s1987_s30 + $0x150] sm:$0xff] %v1730_v19  ;;  %1757 = vtanh.f32 %v920_v18  ;;  %v1571_v24 = vpop.f32.mrb[16].mxu0 }
 0x110   : > { %v1734_v21 = vpop.eup %1733  ;;  %1263 = vst [vmem:[%s1987_s30 + $0x40] sm:$0xff] %v1732_v20  ;;  %v1603_v25 = vpop.f32.mrb[16].mxu1  ;;  %1759 = vtanh.f32 %v1571_v24 }
 0x111   : > { %v1736_v22 = vpop.eup %1735  ;;  %1295 = vst [vmem:[%s1987_s30 + $0x140] sm:$0xff] %v1734_v21  ;;  %v805_v27 = vpop.f32.mrb[17].mxu0  ;;  %1761 = vtanh.f32 %v1603_v25 }
 0x112   : > { %v1738_v23 = vpop.eup %1737  ;;  %1266 = vst [vmem:[%s1987_s30 + $0x58] sm:$0xff] %v1736_v22  ;;  %v933_v28 = vpop.f32.mrb[17].mxu1  ;;  %1763 = vtanh.f32 %v805_v27 }
 0x113   : > { %v1740_v26 = vpop.eup %1739  ;;  %1298 = vst [vmem:[%s1987_s30 + $0x158] sm:$0xff] %v1738_v23  ;;  %v1572_v30 = vpop.f32.mrb[18].mxu0  ;;  %1765 = vtanh.f32 %v933_v28 }
 0x114   : > { %v1742_v29 = vpop.eup %1741  ;;  %1264 = vst [vmem:[%s1987_s30 + $0x48] sm:$0xff] %v1740_v26  ;;  %v1604_v31 = vpop.f32.mrb[18].mxu1  ;;  %1767 = vtanh.f32 %v1572_v30 }
 0x115   : > { %v1744_v32 = vpop.eup %1743  ;;  %1296 = vst [vmem:[%s1987_s30 + $0x148] sm:$0xff] %v1742_v29  ;;  %v808_v33 = vpop.f32.mrb[19].mxu0  ;;  %1769 = vtanh.f32 %v1604_v31 }
 0x116   : > { %v936_v34 = vpop.f32.mrb[19].mxu1  ;;  %v1746_v35 = vpop.eup %1745  ;;  %1269 = vst [vmem:[%s1987_s30 + $0x70] sm:$0xff] %v1744_v32  ;;  %1771 = vtanh.f32 %v808_v33 }
 0x117   : > { %v1748_v36 = vpop.eup %1747  ;;  %1301 = vst [vmem:[%s1987_s30 + $0x170] sm:$0xff] %v1746_v35  ;;  %1773 = vtanh.f32 %v936_v34  ;;  %v1575_v40 = vpop.f32.mrb[20].mxu0 }
 0x118   : > { %v1750_v37 = vpop.eup %1749  ;;  %1267 = vst [vmem:[%s1987_s30 + $0x60] sm:$0xff] %v1748_v36  ;;  %v1607_v41 = vpop.f32.mrb[20].mxu1  ;;  %1775 = vtanh.f32 %v1575_v40 }
 0x119   : > { %v1752_v38 = vpop.eup %1751  ;;  %1299 = vst [vmem:[%s1987_s30 + $0x160] sm:$0xff] %v1750_v37  ;;  %v821_v43 = vpop.f32.mrb[21].mxu0  ;;  %1777 = vtanh.f32 %v1607_v41 }
 0x11a   : > { %v1754_v39 = vpop.eup %1753  ;;  %1270 = vst [vmem:[%s1987_s30 + $0x78] sm:$0xff] %v1752_v38  ;;  %v949_v44 = vpop.f32.mrb[21].mxu1  ;;  %1779 = vtanh.f32 %v821_v43 }
 0x11b   : > { %v1756_v42 = vpop.eup %1755  ;;  %1302 = vst [vmem:[%s1987_s30 + $0x178] sm:$0xff] %v1754_v39  ;;  %v1576_v46 = vpop.f32.mrb[22].mxu0  ;;  %1781 = vtanh.f32 %v949_v44 }
 0x11c   : > { %v1758_v45 = vpop.eup %1757  ;;  %1268 = vst [vmem:[%s1987_s30 + $0x68] sm:$0xff] %v1756_v42  ;;  %v1608_v47 = vpop.f32.mrb[22].mxu1  ;;  %1783 = vtanh.f32 %v1576_v46 }
 0x11d   : > { %v1760_v48 = vpop.eup %1759  ;;  %1300 = vst [vmem:[%s1987_s30 + $0x168] sm:$0xff] %v1758_v45  ;;  %v824_v49 = vpop.f32.mrb[23].mxu0  ;;  %1785 = vtanh.f32 %v1608_v47 }
 0x11e   : > { %v952_v50 = vpop.f32.mrb[23].mxu1  ;;  %v1762_v51 = vpop.eup %1761  ;;  %1273 = vst [vmem:[%s1987_s30 + $0x90] sm:$0xff] %v1760_v48  ;;  %1787 = vtanh.f32 %v824_v49 }
 0x11f   : > { %v1764_v52 = vpop.eup %1763  ;;  %1305 = vst [vmem:[%s1987_s30 + $0x190] sm:$0xff] %v1762_v51  ;;  %1789 = vtanh.f32 %v952_v50  ;;  %v1579_v56 = vpop.f32.mrb[24].mxu0 }
 0x120   : > { %v1766_v53 = vpop.eup %1765  ;;  %1271 = vst [vmem:[%s1987_s30 + $0x80] sm:$0xff] %v1764_v52  ;;  %v1611_v57 = vpop.f32.mrb[24].mxu1  ;;  %1791 = vtanh.f32 %v1579_v56 }
 0x121   : > { %v1768_v54 = vpop.eup %1767  ;;  %1303 = vst [vmem:[%s1987_s30 + $0x180] sm:$0xff] %v1766_v53  ;;  %v837_v59 = vpop.f32.mrb[25].mxu0  ;;  %1793 = vtanh.f32 %v1611_v57 }
 0x122   : > { %v1770_v55 = vpop.eup %1769  ;;  %1274 = vst [vmem:[%s1987_s30 + $0x98] sm:$0xff] %v1768_v54  ;;  %v965_v60 = vpop.f32.mrb[25].mxu1  ;;  %1795 = vtanh.f32 %v837_v59 }
 0x123   : > { %v1772_v58 = vpop.eup %1771  ;;  %1306 = vst [vmem:[%s1987_s30 + $0x198] sm:$0xff] %v1770_v55  ;;  %v1580_v62 = vpop.f32.mrb[26].mxu0  ;;  %1797 = vtanh.f32 %v965_v60 }
 0x124   : > { %v1774_v61 = vpop.eup %1773  ;;  %1272 = vst [vmem:[%s1987_s30 + $0x88] sm:$0xff] %v1772_v58  ;;  %v1612_v63 = vpop.f32.mrb[26].mxu1  ;;  %1799 = vtanh.f32 %v1580_v62 }
 0x125   : > { %v1776_v0 = vpop.eup %1775  ;;  %1304 = vst [vmem:[%s1987_s30 + $0x188] sm:$0xff] %v1774_v61  ;;  %v840_v1 = vpop.f32.mrb[27].mxu0  ;;  %1801 = vtanh.f32 %v1612_v63 }
 0x126   : > { %v968_v2 = vpop.f32.mrb[27].mxu1  ;;  %v1778_v3 = vpop.eup %1777  ;;  %1277 = vst [vmem:[%s1987_s30 + $0xb0] sm:$0xff] %v1776_v0  ;;  %1803 = vtanh.f32 %v840_v1 }
 0x127   : > { %v1780_v4 = vpop.eup %1779  ;;  %1309 = vst [vmem:[%s1987_s30 + $0x1b0] sm:$0xff] %v1778_v3  ;;  %1805 = vtanh.f32 %v968_v2  ;;  %v1583_v8 = vpop.f32.mrb[28].mxu0 }
 0x128   : > { %v1782_v5 = vpop.eup %1781  ;;  %1275 = vst [vmem:[%s1987_s30 + $0xa0] sm:$0xff] %v1780_v4  ;;  %v1615_v9 = vpop.f32.mrb[28].mxu1  ;;  %1807 = vtanh.f32 %v1583_v8 }
 0x129   : > { %v1784_v6 = vpop.eup %1783  ;;  %1307 = vst [vmem:[%s1987_s30 + $0x1a0] sm:$0xff] %v1782_v5  ;;  %v853_v11 = vpop.f32.mrb[29].mxu0  ;;  %1809 = vtanh.f32 %v1615_v9 }
 0x12a   : > { %v1786_v7 = vpop.eup %1785  ;;  %1278 = vst [vmem:[%s1987_s30 + $0xb8] sm:$0xff] %v1784_v6  ;;  %v981_v12 = vpop.f32.mrb[29].mxu1  ;;  %1811 = vtanh.f32 %v853_v11 }
 0x12b   : > { %v1788_v10 = vpop.eup %1787  ;;  %1310 = vst [vmem:[%s1987_s30 + $0x1b8] sm:$0xff] %v1786_v7  ;;  %v1584_v14 = vpop.f32.mrb[30].mxu0  ;;  %1813 = vtanh.f32 %v981_v12 }
 0x12c   : > { %v1790_v13 = vpop.eup %1789  ;;  %1276 = vst [vmem:[%s1987_s30 + $0xa8] sm:$0xff] %v1788_v10  ;;  %v1616_v15 = vpop.f32.mrb[30].mxu1  ;;  %1815 = vtanh.f32 %v1584_v14 }
 0x12d   : > { %v1792_v16 = vpop.eup %1791  ;;  %1308 = vst [vmem:[%s1987_s30 + $0x1a8] sm:$0xff] %v1790_v13  ;;  %v856_v17 = vpop.f32.mrb[31].mxu0  ;;  %1817 = vtanh.f32 %v1616_v15 }
 0x12e   : > { %v984_v18 = vpop.f32.mrb[31].mxu1  ;;  %v1794_v19 = vpop.eup %1793  ;;  %1281 = vst [vmem:[%s1987_s30 + $0xd0] sm:$0xff] %v1792_v16  ;;  %1819 = vtanh.f32 %v856_v17 }
 0x12f   : > { %v1796_v20 = vpop.eup %1795  ;;  %1313 = vst [vmem:[%s1987_s30 + $0x1d0] sm:$0xff] %v1794_v19  ;;  %1821 = vtanh.f32 %v984_v18 }
 0x130   : > { %v1798_v21 = vpop.eup %1797  ;;  %1279 = vst [vmem:[%s1987_s30 + $0xc0] sm:$0xff] %v1796_v20 }
 0x131   : > { %v1800_v22 = vpop.eup %1799  ;;  %1311 = vst [vmem:[%s1987_s30 + $0x1c0] sm:$0xff] %v1798_v21 }
 0x132   : > { %v1802_v23 = vpop.eup %1801  ;;  %1282 = vst [vmem:[%s1987_s30 + $0xd8] sm:$0xff] %v1800_v22 }
 0x133   : > { %v1804_v24 = vpop.eup %1803  ;;  %1314 = vst [vmem:[%s1987_s30 + $0x1d8] sm:$0xff] %v1802_v23 }
 0x134   : > { %v1806_v25 = vpop.eup %1805  ;;  %1280 = vst [vmem:[%s1987_s30 + $0xc8] sm:$0xff] %v1804_v24 }
 0x135   : > { %v1808_v26 = vpop.eup %1807  ;;  %1312 = vst [vmem:[%s1987_s30 + $0x1c8] sm:$0xff] %v1806_v25 }
 0x136   : > { %v1810_v27 = vpop.eup %1809  ;;  %1285 = vst [vmem:[%s1987_s30 + $0xf0] sm:$0xff] %v1808_v26 }
 0x137   : > { %v1812_v28 = vpop.eup %1811  ;;  %1317 = vst [vmem:[%s1987_s30 + $0x1f0] sm:$0xff] %v1810_v27 }
 0x138   : > { %v1814_v29 = vpop.eup %1813  ;;  %1283 = vst [vmem:[%s1987_s30 + $0xe0] sm:$0xff] %v1812_v28 }
 0x139   : > { %v1816_v30 = vpop.eup %1815  ;;  %1315 = vst [vmem:[%s1987_s30 + $0x1e0] sm:$0xff] %v1814_v29 }
 0x13a   : > { %v1818_v31 = vpop.eup %1817  ;;  %1286 = vst [vmem:[%s1987_s30 + $0xf8] sm:$0xff] %v1816_v30 }
 0x13b   : > { %v1820_v32 = vpop.eup %1819  ;;  %1318 = vst [vmem:[%s1987_s30 + $0x1f8] sm:$0xff] %v1818_v31 }
 0x13c   : > { %v1822_v33 = vpop.eup %1821  ;;  %1284 = vst [vmem:[%s1987_s30 + $0xe8] sm:$0xff] %v1820_v32 }
 0x13d   : > { %1316 = vst [vmem:[%s1987_s30 + $0x1e8] sm:$0xff] %v1822_v33 }
 0x13e PF: > { %s12_s13 = sadd.s32 1, %s1861_s13   ;;  %s2071_s9 = smov %s1853_s11 }
 0x13f   : > { %p9_p7 = scmp.ge.s32.totalorder %s12_s13, 18   ;;  %s2072_s10 = smov %s1857_s12 }
 0x140   : > { %s2073_s11 = smov %s2076_s14  ;;  %s2074_s12 = smov %s2080_s15 }
 0x141   :  { %11 = sbr.rel (!%p9_p7) target bundleno = 3 (0x3), region = 69 }

</bundles_post_ra>
